<compile_context>
chip_gen: v7x
topology: tpu7x:2x2x1
jax: 0.10.0
libtpu: 0.0.40
codegen_flags: <defaults>
</compile_context>

<pallas_src>
import functools

import jax
import jax.numpy as jnp
from jax import lax
from jax.experimental import pallas as pl
from jax.experimental.pallas import tpu as pltpu

_BN_EPS = 1e-5
_MIN_CIN = 8  # pad channels so the MXU contraction dim is never 1


# -----------------------------------------------------------------------------
# Pallas kernels
# -----------------------------------------------------------------------------
def _rescnn_block_kernel(x_ref, dw_ref, s1_ref, t1_ref, s2_ref, t2_ref,
                         wp_ref, s3_ref, t3_ref, sr_ref, tr_ref, wr_ref,
                         br_ref, m_ref, o_ref, pad_ref):
    """Fused ResCNNBlock2D forward for one batch element (NHWC layout).

    x_ref : (1, H, W, Cin)      dw_ref : (3, 3, Cin)
    wp_ref/wr_ref : (Cin, Cout) br_ref : (1, Cout)
    s*/t* : (1, Cin) or (1, Cout) BN scale/shift
    m_ref : (1, H, W, 1) dropout keep-mask (or (1-p) fill in eval)
    o_ref : (1, H, W, Cout)     pad_ref: VMEM scratch (H+2, W+2, Cin)
    """
    _, H, W, Cin = x_ref.shape
    Cout = o_ref.shape[3]

    # BN1 affine + zero padding (left=2, right=0, top=1, bottom=1) in VMEM.
    pad_ref[...] = jnp.zeros(pad_ref.shape, pad_ref.dtype)
    pad_ref[1:H + 1, 2:W + 2, :] = (
        x_ref[0].astype(jnp.float32) * s1_ref[0] + t1_ref[0])

    # Depthwise 3x3 conv: 9 shifted multiply-accumulates (VPU), per-channel
    # weights broadcast along lanes.
    acc = jnp.zeros((H, W, Cin), jnp.float32)
    for ki in range(3):
        for kj in range(3):
            acc = acc + pad_ref[ki:ki + H, kj:kj + W, :] * dw_ref[ki, kj, :]

    # BN2 affine -> pointwise 1x1 conv (MXU) -> BN3 affine -> ReLU.
    y = (acc * s2_ref[0] + t2_ref[0]).reshape(H * W, Cin)
    fx = jnp.dot(y, wp_ref[...], preferred_element_type=jnp.float32)
    fx = jnp.maximum(fx * s3_ref[0] + t3_ref[0], 0.0)

    # Residual branch: BN affine -> 1x1 conv with bias (MXU).
    r = (x_ref[0].astype(jnp.float32) * sr_ref[0] + tr_ref[0]).reshape(H * W, Cin)
    res = jnp.dot(r, wr_ref[...], preferred_element_type=jnp.float32) + br_ref[0]

    # Add + VariationalDropout2D (mask varies over H, broadcast over W and C).
    out = (fx + res).reshape(H, W, Cout) * m_ref[0]
    o_ref[0] = out.astype(o_ref.dtype)


def _linear_kernel(x_ref, w_ref, b_ref, o_ref):
    o_ref[...] = (jnp.dot(x_ref[...], w_ref[...],
                          preferred_element_type=jnp.float32)
                  + b_ref[0]).astype(o_ref.dtype)


# -----------------------------------------------------------------------------
# Wrappers around pallas_call
# -----------------------------------------------------------------------------
def _rescnn_block(x_nhwc, blk, mask_bhw1):
    B, H, W, Cin = x_nhwc.shape
    Cout = blk["wp"].shape[1]

    spec_x    = pl.BlockSpec((1, H, W, Cin),  lambda b: (b, 0, 0, 0))
    spec_m    = pl.BlockSpec((1, H, W, 1),    lambda b: (b, 0, 0, 0))
    spec_o    = pl.BlockSpec((1, H, W, Cout), lambda b: (b, 0, 0, 0))
    spec_dw   = pl.BlockSpec((3, 3, Cin),     lambda b: (0, 0, 0))
    spec_cin  = pl.BlockSpec((1, Cin),        lambda b: (0, 0))
    spec_cout = pl.BlockSpec((1, Cout),       lambda b: (0, 0))
    spec_w    = pl.BlockSpec((Cin, Cout),     lambda b: (0, 0))

    return pl.pallas_call(
        _rescnn_block_kernel,
        out_shape=jax.ShapeDtypeStruct((B, H, W, Cout), x_nhwc.dtype),
        grid=(B,),
        in_specs=[spec_x, spec_dw, spec_cin, spec_cin, spec_cin, spec_cin,
                  spec_w, spec_cout, spec_cout, spec_cin, spec_cin, spec_w,
                  spec_cout, spec_m],
        out_specs=spec_o,
        scratch_shapes=[pltpu.VMEM((H + 2, W + 2, Cin), jnp.float32)],
        compiler_params=pltpu.CompilerParams(
            dimension_semantics=("parallel",)),
    )(x_nhwc, blk["dw"], blk["s1"], blk["t1"], blk["s2"], blk["t2"],
      blk["wp"], blk["s3"], blk["t3"], blk["sr"], blk["tr"], blk["wr"],
      blk["br"], mask_bhw1)


def _linear(x2d, w, b):
    N, D = x2d.shape
    O = w.shape[1]
    return pl.pallas_call(
        _linear_kernel,
        out_shape=jax.ShapeDtypeStruct((N, O), x2d.dtype),
        grid=(1,),
        in_specs=[pl.BlockSpec((N, D), lambda i: (0, 0)),
                  pl.BlockSpec((D, O), lambda i: (0, 0)),
                  pl.BlockSpec((1, O), lambda i: (0, 0))],
        out_specs=pl.BlockSpec((N, O), lambda i: (0, 0)),
        compiler_params=pltpu.CompilerParams(
            dimension_semantics=("arbitrary",)),
    )(x2d, w, b.reshape(1, O))


# -----------------------------------------------------------------------------
# Parameter handling
# -----------------------------------------------------------------------------
def _bn_affine(bn):
    scale = bn["gamma"] / jnp.sqrt(bn["var"] + _BN_EPS)
    shift = bn["beta"] - bn["mean"] * scale
    return scale, shift


def _prep_block(bp):
    """Convert torch-layout block params to kernel layout (channel-padded)."""
    cin = bp["dw_w"].shape[0]
    cpad = max(cin, _MIN_CIN)
    padc = lambda v: jnp.pad(v, ((0, cpad - cin),))
    s1, t1 = map(padc, _bn_affine(bp["bn1"]))
    s2, t2 = map(padc, _bn_affine(bp["bn2"]))
    sr, tr = map(padc, _bn_affine(bp["bnr"]))
    s3, t3 = _bn_affine(bp["bn3"])
    dw = jnp.pad(bp["dw_w"][:, 0].transpose(1, 2, 0),            # (3,3,cpad)
                 ((0, 0), (0, 0), (0, cpad - cin)))
    wp = jnp.pad(bp["pw_w"][:, :, 0, 0].T, ((0, cpad - cin), (0, 0)))
    wr = jnp.pad(bp["res_w"][:, :, 0, 0].T, ((0, cpad - cin), (0, 0)))
    row = lambda v: v.reshape(1, -1)
    return dict(dw=dw, wp=wp, wr=wr, br=row(bp["res_b"]),
                s1=row(s1), t1=row(t1), s2=row(s2), t2=row(t2),
                s3=row(s3), t3=row(t3), sr=row(sr), tr=row(tr)), cpad


def init_params(key, idim, odim):
    ks = jax.random.split(key, 4)

    def conv_w(k, shape, fan_in):
        return jax.random.normal(k, shape, jnp.float32) / jnp.sqrt(float(fan_in))

    def bn_params(k, c):
        k1, k2, k3, k4 = jax.random.split(k, 4)
        return dict(gamma=1.0 + 0.2 * jax.random.normal(k1, (c,), jnp.float32),
                    beta=0.1 * jax.random.normal(k2, (c,), jnp.float32),
                    mean=0.1 * jax.random.normal(k3, (c,), jnp.float32),
                    var=jax.random.uniform(k4, (c,), jnp.float32, 0.5, 1.5))

    def block_params(k, cin, cout):
        kk = jax.random.split(k, 8)
        return dict(dw_w=conv_w(kk[0], (cin, 1, 3, 3), 9),
                    pw_w=conv_w(kk[1], (cout, cin, 1, 1), cin),
                    res_w=conv_w(kk[2], (cout, cin, 1, 1), cin),
                    res_b=0.1 * jax.random.normal(kk[3], (cout,), jnp.float32),
                    bn1=bn_params(kk[4], cin), bn2=bn_params(kk[5], cin),
                    bn3=bn_params(kk[6], cout), bnr=bn_params(kk[7], cin))

    f_out = idim // 4
    return dict(block1=block_params(ks[0], 1, 64),
                block2=block_params(ks[1], 64, 128),
                lin_w=conv_w(ks[2], (odim, 128 * f_out), 128 * f_out),
                lin_b=0.1 * jax.random.normal(ks[3], (odim,), jnp.float32))


# -----------------------------------------------------------------------------
# Full forward (Pallas path)
# -----------------------------------------------------------------------------
def _dropout_masks(key, p_drop, training, B, T, dtype):
    """Variational keep-masks for the two ResCNN blocks (per batch & time)."""
    if training:
        k1, k2 = jax.random.split(key)
        m1 = jax.random.bernoulli(k1, 1.0 - p_drop, (B, T)).astype(dtype)
        m2 = jax.random.bernoulli(k2, 1.0 - p_drop, (B, T // 2)).astype(dtype)
    else:
        m1 = jnp.full((B, T), 1.0 - p_drop, dtype)
        m2 = jnp.full((B, T // 2), 1.0 - p_drop, dtype)
    return m1, m2


def _maxpool2x2_nhwc(x):
    return lax.reduce_window(x, -jnp.inf, lax.max,
                             (1, 2, 2, 1), (1, 2, 2, 1), "VALID")


def conv2d_subsampling_forward(params, x, x_mask, p_drop, *,
                               training=True, rng_key=None):
    """x: (B, T, idim) float32, x_mask: (B, 1, T) or None -> (y, subsampled mask)."""
    B, T, Fi = x.shape
    assert T % 4 == 0 and Fi % 4 == 0, "demo wrapper assumes T, idim divisible by 4"
    if rng_key is None:
        rng_key = jax.random.PRNGKey(0)
    m1, m2 = _dropout_masks(rng_key, p_drop, training, B, T, x.dtype)

    blk1, c1pad = _prep_block(params["block1"])
    blk2, _ = _prep_block(params["block2"])

    # x.unsqueeze(1) -> NCHW (B,1,T,F); internally use NHWC (B,T,F,C), C padded.
    h = jnp.pad(x[:, :, :, None], ((0, 0), (0, 0), (0, 0), (0, c1pad - 1)))

    h = _rescnn_block(h, blk1,
                      jnp.broadcast_to(m1[:, :, None, None], (B, T, Fi, 1)))
    h = _maxpool2x2_nhwc(h)                                   # (B, T/2, F/2, 64)

    _, H2, W2, _ = h.shape
    h = _rescnn_block(h, blk2,
                      jnp.broadcast_to(m2[:, :, None, None], (B, H2, W2, 1)))
    h = _maxpool2x2_nhwc(h)                                   # (B, T/4, F/4, 128)

    # PyTorch flattens (c, f) channel-major; our NHWC flatten is (f, c), so
    # permute the Linear weight columns instead of transposing the activation.
    _, T4, F4, C2 = h.shape
    w = params["lin_w"]                                       # (odim, C2*F4)
    odim = w.shape[0]
    w_eff = w.reshape(odim, C2, F4).transpose(0, 2, 1).reshape(odim, F4 * C2).T
    y = _linear(h.reshape(B * T4, F4 * C2), w_eff, params["lin_b"])
    y = y.reshape(B, T4, odim)
    # TODO(synk): PositionalEncoding (self.out[1]) not defined in the spec; skipped.

    if x_mask is None:
        return y, None
    return y, x_mask[:, :, 1::2][:, :, 1::2]


# -----------------------------------------------------------------------------
# Pure-JAX reference (mirrors the PyTorch module literally, NCHW)
# -----------------------------------------------------------------------------
def _reference_forward(params, x, x_mask, p_drop, training, rng_key):
    B, T, Fi = x.shape
    m1, m2 = _dropout_masks(rng_key, p_drop, training, B, T, x.dtype)

    def bn(h, bnp):
        s, t = _bn_affine(bnp)
        return h * s[None, :, None, None] + t[None, :, None, None]

    def conv(h, w, groups=1):
        return lax.conv_general_dilated(
            h, w, (1, 1), "VALID",
            dimension_numbers=("NCHW", "OIHW", "NCHW"),
            feature_group_count=groups,
            precision=lax.Precision.HIGHEST)

    def block(h, bp, mask):
        cin = bp["dw_w"].shape[0]
        z = bn(h, bp["bn1"])
        z = jnp.pad(z, ((0, 0), (0, 0), (1, 1), (2, 0)))
        z = conv(z, bp["dw_w"], groups=cin)
        z = bn(z, bp["bn2"])
        z = conv(z, bp["pw_w"])
        fx = jnp.maximum(bn(z, bp["bn3"]), 0.0)
        r = conv(bn(h, bp["bnr"]), bp["res_w"]) + bp["res_b"][None, :, None, None]
        return (fx + r) * mask

    def pool(h):
        return lax.reduce_window(h, -jnp.inf, lax.max,
                                 (1, 1, 2, 2), (1, 1, 2, 2), "VALID")

    h = x[:, None, :, :]
    h = pool(block(h, params["block1"], m1[:, None, :, None]))
    h = pool(block(h, params["block2"], m2[:, None, :, None]))
    b, c, t, f = h.shape
    flat = jnp.transpose(h, (0, 2, 1, 3)).reshape(b, t, c * f)
    y = jnp.einsum("btd,od->bto", flat, params["lin_w"],
                   precision=lax.Precision.HIGHEST) + params["lin_b"]
    if x_mask is None:
        return y, None
    return y, x_mask[:, :, 1::2][:, :, 1::2]


# -----------------------------------------------------------------------------
# Demo / self-check
# -----------------------------------------------------------------------------
if __name__ == "__main__":
    B, T, idim, odim, p_drop = 2, 16, 16, 32, 0.1
    root = jax.random.PRNGKey(0)
    k_param, k_x, k_drop = jax.random.split(root, 3)

    params = init_params(k_param, idim, odim)
    x = jax.random.normal(k_x, (B, T, idim), jnp.float32)
    x_mask = jnp.ones((B, 1, T), jnp.bool_)

    @functools.partial(jax.jit, static_argnames=("training",))
    def fwd(params, x, x_mask, key, training):
        return conv2d_subsampling_forward(params, x, x_mask, p_drop,
                                          training=training, rng_key=key)

    # Training mode: random variational dropout mask (shared over C and freq).
    y_tr, mask_tr = fwd(params, x, x_mask, k_drop, training=True)
    y_tr = jax.block_until_ready(y_tr)
    y_tr_ref, _ = _reference_forward(params, x, x_mask, p_drop, True, k_drop)

    # Eval mode: deterministic (1 - p) scaling.
    y_ev, _ = fwd(params, x, x_mask, k_drop, training=False)
    y_ev = jax.block_until_ready(y_ev)
    y_ev_ref, _ = _reference_forward(params, x, x_mask, p_drop, False, k_drop)

    assert y_tr.shape == (B, T // 4, odim)
    assert mask_tr.shape == (B, 1, T // 4)
    assert bool(jnp.allclose(y_tr, y_tr_ref, rtol=2e-2, atol=2e-2)), \
        "training-mode Pallas forward mismatch vs reference"
    assert bool(jnp.allclose(y_ev, y_ev_ref, rtol=2e-2, atol=2e-2)), \
        "eval-mode Pallas forward mismatch vs reference"

    print("KERNEL_OK")
</pallas_src>

<mosaic_0001>
module attributes {stable_mosaic.version = 11 : i64} {
  func.func @_rescnn_block_kernel(%arg0: i32, %arg1: memref<1x16x16x8xf32, #tpu.memory_space<vmem>>, %arg2: memref<3x3x8xf32, #tpu.memory_space<vmem>>, %arg3: memref<1x8xf32, #tpu.memory_space<vmem>>, %arg4: memref<1x8xf32, #tpu.memory_space<vmem>>, %arg5: memref<1x8xf32, #tpu.memory_space<vmem>>, %arg6: memref<1x8xf32, #tpu.memory_space<vmem>>, %arg7: memref<8x64xf32, #tpu.memory_space<vmem>>, %arg8: memref<1x64xf32, #tpu.memory_space<vmem>>, %arg9: memref<1x64xf32, #tpu.memory_space<vmem>>, %arg10: memref<1x8xf32, #tpu.memory_space<vmem>>, %arg11: memref<1x8xf32, #tpu.memory_space<vmem>>, %arg12: memref<8x64xf32, #tpu.memory_space<vmem>>, %arg13: memref<1x64xf32, #tpu.memory_space<vmem>>, %arg14: memref<1x16x16x1xf32, #tpu.memory_space<vmem>>, %arg15: memref<1x16x16x64xf32, #tpu.memory_space<vmem>>, %arg16: memref<18x18x8xf32, #tpu.memory_space<vmem>>) attributes {dimension_semantics = [#tpu.dimension_semantics<parallel>], iteration_bounds = array<i64: 2>, scalar_prefetch = 0 : i64, scratch_operands = 1 : i64, tpu.core_type = #tpu.core_type<tc>, window_params = [{transform_indices = @transform_0, window_bounds = array<i64: 1, 16, 16, 8>}, {pipeline_mode = #tpu.pipeline_mode<synchronous>, transform_indices = @transform_1, window_bounds = array<i64: 3, 3, 8>}, {pipeline_mode = #tpu.pipeline_mode<synchronous>, transform_indices = @transform_2, window_bounds = array<i64: 1, 8>}, {pipeline_mode = #tpu.pipeline_mode<synchronous>, transform_indices = @transform_3, window_bounds = array<i64: 1, 8>}, {pipeline_mode = #tpu.pipeline_mode<synchronous>, transform_indices = @transform_4, window_bounds = array<i64: 1, 8>}, {pipeline_mode = #tpu.pipeline_mode<synchronous>, transform_indices = @transform_5, window_bounds = array<i64: 1, 8>}, {pipeline_mode = #tpu.pipeline_mode<synchronous>, transform_indices = @transform_6, window_bounds = array<i64: 8, 64>}, {pipeline_mode = #tpu.pipeline_mode<synchronous>, transform_indices = @transform_7, window_bounds = array<i64: 1, 64>}, {pipeline_mode = #tpu.pipeline_mode<synchronous>, transform_indices = @transform_8, window_bounds = array<i64: 1, 64>}, {pipeline_mode = #tpu.pipeline_mode<synchronous>, transform_indices = @transform_9, window_bounds = array<i64: 1, 8>}, {pipeline_mode = #tpu.pipeline_mode<synchronous>, transform_indices = @transform_10, window_bounds = array<i64: 1, 8>}, {pipeline_mode = #tpu.pipeline_mode<synchronous>, transform_indices = @transform_11, window_bounds = array<i64: 8, 64>}, {pipeline_mode = #tpu.pipeline_mode<synchronous>, transform_indices = @transform_12, window_bounds = array<i64: 1, 64>}, {transform_indices = @transform_13, window_bounds = array<i64: 1, 16, 16, 1>}, {transform_indices = @transform_14, window_bounds = array<i64: 1, 16, 16, 64>}]} {
    %cst = arith.constant 0.000000e+00 : f32
    %0 = vector.broadcast %cst : f32 to vector<18x18x8xf32>
    %c0 = arith.constant 0 : index
    %c0_0 = arith.constant 0 : index
    %c0_1 = arith.constant 0 : index
    %1 = vector.load %arg16[%c0, %c0_0, %c0_1] : memref<18x18x8xf32, #tpu.memory_space<vmem>>, vector<18x18x8xf32>
    tpu.vector_store %arg16[%c0, %c0_0, %c0_1], %0 {strides = array<i32>} : memref<18x18x8xf32, #tpu.memory_space<vmem>>, vector<18x18x8xf32>,
    %c0_2 = arith.constant 0 : index
    %c0_3 = arith.constant 0 : index
    %c0_4 = arith.constant 0 : index
    %c0_5 = arith.constant 0 : index
    %2 = vector.load %arg1[%c0_2, %c0_3, %c0_4, %c0_5] : memref<1x16x16x8xf32, #tpu.memory_space<vmem>>, vector<1x16x16x8xf32>
    %3 = vector.shape_cast %2 : vector<1x16x16x8xf32> to vector<16x16x8xf32>
    %c0_6 = arith.constant 0 : index
    %c0_7 = arith.constant 0 : index
    %4 = vector.load %arg3[%c0_6, %c0_7] : memref<1x8xf32, #tpu.memory_space<vmem>>, vector<1x8xf32>
    %5 = vector.shape_cast %4 : vector<1x8xf32> to vector<8xf32>
    %6 = vector.shape_cast %5 : vector<8xf32> to vector<1x1x8xf32>
    %7 = vector.broadcast %6 : vector<1x1x8xf32> to vector<16x16x8xf32>
    %8 = arith.mulf %3, %7 : vector<16x16x8xf32>
    %c0_8 = arith.constant 0 : index
    %c0_9 = arith.constant 0 : index
    %9 = vector.load %arg4[%c0_8, %c0_9] : memref<1x8xf32, #tpu.memory_space<vmem>>, vector<1x8xf32>
    %10 = vector.shape_cast %9 : vector<1x8xf32> to vector<8xf32>
    %11 = vector.shape_cast %10 : vector<8xf32> to vector<1x1x8xf32>
    %12 = vector.broadcast %11 : vector<1x1x8xf32> to vector<16x16x8xf32>
    %13 = arith.addf %8, %12 : vector<16x16x8xf32>
    %c1 = arith.constant 1 : index
    %c2 = arith.constant 2 : index
    %c0_10 = arith.constant 0 : index
    %14 = vector.load %arg16[%c1, %c2, %c0_10] : memref<18x18x8xf32, #tpu.memory_space<vmem>>, vector<16x16x8xf32>
    tpu.vector_store %arg16[%c1, %c2, %c0_10], %13 {strides = array<i32>} : memref<18x18x8xf32, #tpu.memory_space<vmem>>, vector<16x16x8xf32>,
    %cst_11 = arith.constant 0.000000e+00 : f32
    %15 = vector.broadcast %cst_11 : f32 to vector<16x16x8xf32>
    %c0_12 = arith.constant 0 : index
    %c0_13 = arith.constant 0 : index
    %c0_14 = arith.constant 0 : index
    %16 = vector.load %arg16[%c0_12, %c0_13, %c0_14] : memref<18x18x8xf32, #tpu.memory_space<vmem>>, vector<16x16x8xf32>
    %c0_15 = arith.constant 0 : index
    %c0_16 = arith.constant 0 : index
    %c0_17 = arith.constant 0 : index
    %17 = vector.load %arg2[%c0_15, %c0_16, %c0_17] : memref<3x3x8xf32, #tpu.memory_space<vmem>>, vector<1x1x8xf32>
    %18 = vector.shape_cast %17 : vector<1x1x8xf32> to vector<8xf32>
    %19 = vector.shape_cast %18 : vector<8xf32> to vector<1x1x8xf32>
    %20 = vector.broadcast %19 : vector<1x1x8xf32> to vector<16x16x8xf32>
    %21 = arith.mulf %16, %20 : vector<16x16x8xf32>
    %22 = arith.addf %15, %21 : vector<16x16x8xf32>
    %c0_18 = arith.constant 0 : index
    %c1_19 = arith.constant 1 : index
    %c0_20 = arith.constant 0 : index
    %23 = vector.load %arg16[%c0_18, %c1_19, %c0_20] : memref<18x18x8xf32, #tpu.memory_space<vmem>>, vector<16x16x8xf32>
    %c0_21 = arith.constant 0 : index
    %c1_22 = arith.constant 1 : index
    %c0_23 = arith.constant 0 : index
    %24 = vector.load %arg2[%c0_21, %c1_22, %c0_23] : memref<3x3x8xf32, #tpu.memory_space<vmem>>, vector<1x1x8xf32>
    %25 = vector.shape_cast %24 : vector<1x1x8xf32> to vector<8xf32>
    %26 = vector.shape_cast %25 : vector<8xf32> to vector<1x1x8xf32>
    %27 = vector.broadcast %26 : vector<1x1x8xf32> to vector<16x16x8xf32>
    %28 = arith.mulf %23, %27 : vector<16x16x8xf32>
    %29 = arith.addf %22, %28 : vector<16x16x8xf32>
    %c0_24 = arith.constant 0 : index
    %c2_25 = arith.constant 2 : index
    %c0_26 = arith.constant 0 : index
    %30 = vector.load %arg16[%c0_24, %c2_25, %c0_26] : memref<18x18x8xf32, #tpu.memory_space<vmem>>, vector<16x16x8xf32>
    %c0_27 = arith.constant 0 : index
    %c2_28 = arith.constant 2 : index
    %c0_29 = arith.constant 0 : index
    %31 = vector.load %arg2[%c0_27, %c2_28, %c0_29] : memref<3x3x8xf32, #tpu.memory_space<vmem>>, vector<1x1x8xf32>
    %32 = vector.shape_cast %31 : vector<1x1x8xf32> to vector<8xf32>
    %33 = vector.shape_cast %32 : vector<8xf32> to vector<1x1x8xf32>
    %34 = vector.broadcast %33 : vector<1x1x8xf32> to vector<16x16x8xf32>
    %35 = arith.mulf %30, %34 : vector<16x16x8xf32>
    %36 = arith.addf %29, %35 : vector<16x16x8xf32>
    %c1_30 = arith.constant 1 : index
    %c0_31 = arith.constant 0 : index
    %c0_32 = arith.constant 0 : index
    %37 = vector.load %arg16[%c1_30, %c0_31, %c0_32] : memref<18x18x8xf32, #tpu.memory_space<vmem>>, vector<16x16x8xf32>
    %c1_33 = arith.constant 1 : index
    %c0_34 = arith.constant 0 : index
    %c0_35 = arith.constant 0 : index
    %38 = vector.load %arg2[%c1_33, %c0_34, %c0_35] : memref<3x3x8xf32, #tpu.memory_space<vmem>>, vector<1x1x8xf32>
    %39 = vector.shape_cast %38 : vector<1x1x8xf32> to vector<8xf32>
    %40 = vector.shape_cast %39 : vector<8xf32> to vector<1x1x8xf32>
    %41 = vector.broadcast %40 : vector<1x1x8xf32> to vector<16x16x8xf32>
    %42 = arith.mulf %37, %41 : vector<16x16x8xf32>
    %43 = arith.addf %36, %42 : vector<16x16x8xf32>
    %c1_36 = arith.constant 1 : index
    %c1_37 = arith.constant 1 : index
    %c0_38 = arith.constant 0 : index
    %44 = vector.load %arg16[%c1_36, %c1_37, %c0_38] : memref<18x18x8xf32, #tpu.memory_space<vmem>>, vector<16x16x8xf32>
    %c1_39 = arith.constant 1 : index
    %c1_40 = arith.constant 1 : index
    %c0_41 = arith.constant 0 : index
    %45 = vector.load %arg2[%c1_39, %c1_40, %c0_41] : memref<3x3x8xf32, #tpu.memory_space<vmem>>, vector<1x1x8xf32>
    %46 = vector.shape_cast %45 : vector<1x1x8xf32> to vector<8xf32>
    %47 = vector.shape_cast %46 : vector<8xf32> to vector<1x1x8xf32>
    %48 = vector.broadcast %47 : vector<1x1x8xf32> to vector<16x16x8xf32>
    %49 = arith.mulf %44, %48 : vector<16x16x8xf32>
    %50 = arith.addf %43, %49 : vector<16x16x8xf32>
    %c1_42 = arith.constant 1 : index
    %c2_43 = arith.constant 2 : index
    %c0_44 = arith.constant 0 : index
    %51 = vector.load %arg16[%c1_42, %c2_43, %c0_44] : memref<18x18x8xf32, #tpu.memory_space<vmem>>, vector<16x16x8xf32>
    %c1_45 = arith.constant 1 : index
    %c2_46 = arith.constant 2 : index
    %c0_47 = arith.constant 0 : index
    %52 = vector.load %arg2[%c1_45, %c2_46, %c0_47] : memref<3x3x8xf32, #tpu.memory_space<vmem>>, vector<1x1x8xf32>
    %53 = vector.shape_cast %52 : vector<1x1x8xf32> to vector<8xf32>
    %54 = vector.shape_cast %53 : vector<8xf32> to vector<1x1x8xf32>
    %55 = vector.broadcast %54 : vector<1x1x8xf32> to vector<16x16x8xf32>
    %56 = arith.mulf %51, %55 : vector<16x16x8xf32>
    %57 = arith.addf %50, %56 : vector<16x16x8xf32>
    %c2_48 = arith.constant 2 : index
    %c0_49 = arith.constant 0 : index
    %c0_50 = arith.constant 0 : index
    %58 = vector.load %arg16[%c2_48, %c0_49, %c0_50] : memref<18x18x8xf32, #tpu.memory_space<vmem>>, vector<16x16x8xf32>
    %c2_51 = arith.constant 2 : index
    %c0_52 = arith.constant 0 : index
    %c0_53 = arith.constant 0 : index
    %59 = vector.load %arg2[%c2_51, %c0_52, %c0_53] : memref<3x3x8xf32, #tpu.memory_space<vmem>>, vector<1x1x8xf32>
    %60 = vector.shape_cast %59 : vector<1x1x8xf32> to vector<8xf32>
    %61 = vector.shape_cast %60 : vector<8xf32> to vector<1x1x8xf32>
    %62 = vector.broadcast %61 : vector<1x1x8xf32> to vector<16x16x8xf32>
    %63 = arith.mulf %58, %62 : vector<16x16x8xf32>
    %64 = arith.addf %57, %63 : vector<16x16x8xf32>
    %c2_54 = arith.constant 2 : index
    %c1_55 = arith.constant 1 : index
    %c0_56 = arith.constant 0 : index
    %65 = vector.load %arg16[%c2_54, %c1_55, %c0_56] : memref<18x18x8xf32, #tpu.memory_space<vmem>>, vector<16x16x8xf32>
    %c2_57 = arith.constant 2 : index
    %c1_58 = arith.constant 1 : index
    %c0_59 = arith.constant 0 : index
    %66 = vector.load %arg2[%c2_57, %c1_58, %c0_59] : memref<3x3x8xf32, #tpu.memory_space<vmem>>, vector<1x1x8xf32>
    %67 = vector.shape_cast %66 : vector<1x1x8xf32> to vector<8xf32>
    %68 = vector.shape_cast %67 : vector<8xf32> to vector<1x1x8xf32>
    %69 = vector.broadcast %68 : vector<1x1x8xf32> to vector<16x16x8xf32>
    %70 = arith.mulf %65, %69 : vector<16x16x8xf32>
    %71 = arith.addf %64, %70 : vector<16x16x8xf32>
    %c2_60 = arith.constant 2 : index
    %c2_61 = arith.constant 2 : index
    %c0_62 = arith.constant 0 : index
    %72 = vector.load %arg16[%c2_60, %c2_61, %c0_62] : memref<18x18x8xf32, #tpu.memory_space<vmem>>, vector<16x16x8xf32>
    %c2_63 = arith.constant 2 : index
    %c2_64 = arith.constant 2 : index
    %c0_65 = arith.constant 0 : index
    %73 = vector.load %arg2[%c2_63, %c2_64, %c0_65] : memref<3x3x8xf32, #tpu.memory_space<vmem>>, vector<1x1x8xf32>
    %74 = vector.shape_cast %73 : vector<1x1x8xf32> to vector<8xf32>
    %75 = vector.shape_cast %74 : vector<8xf32> to vector<1x1x8xf32>
    %76 = vector.broadcast %75 : vector<1x1x8xf32> to vector<16x16x8xf32>
    %77 = arith.mulf %72, %76 : vector<16x16x8xf32>
    %78 = arith.addf %71, %77 : vector<16x16x8xf32>
    %c0_66 = arith.constant 0 : index
    %c0_67 = arith.constant 0 : index
    %79 = vector.load %arg5[%c0_66, %c0_67] : memref<1x8xf32, #tpu.memory_space<vmem>>, vector<1x8xf32>
    %80 = vector.shape_cast %79 : vector<1x8xf32> to vector<8xf32>
    %81 = vector.shape_cast %80 : vector<8xf32> to vector<1x1x8xf32>
    %82 = vector.broadcast %81 : vector<1x1x8xf32> to vector<16x16x8xf32>
    %83 = arith.mulf %78, %82 : vector<16x16x8xf32>
    %c0_68 = arith.constant 0 : index
    %c0_69 = arith.constant 0 : index
    %84 = vector.load %arg6[%c0_68, %c0_69] : memref<1x8xf32, #tpu.memory_space<vmem>>, vector<1x8xf32>
    %85 = vector.shape_cast %84 : vector<1x8xf32> to vector<8xf32>
    %86 = vector.shape_cast %85 : vector<8xf32> to vector<1x1x8xf32>
    %87 = vector.broadcast %86 : vector<1x1x8xf32> to vector<16x16x8xf32>
    %88 = arith.addf %83, %87 : vector<16x16x8xf32>
    %89 = vector.shape_cast %88 : vector<16x16x8xf32> to vector<256x8xf32>
    %c0_70 = arith.constant 0 : index
    %c0_71 = arith.constant 0 : index
    %90 = vector.load %arg7[%c0_70, %c0_71] : memref<8x64xf32, #tpu.memory_space<vmem>>, vector<8x64xf32>
    %cst_72 = arith.constant dense<0.000000e+00> : vector<256x64xf32>
    %91 = tpu.matmul %89, %90, %cst_72 {dimension_numbers = #tpu.dot_dimension_numbers<[1], [0], [0], [1], [0, 0, 1, 1], [], []>} : vector<256x8xf32>, vector<8x64xf32>, vector<256x64xf32> -> vector<256x64xf32>
    %c0_73 = arith.constant 0 : index
    %c0_74 = arith.constant 0 : index
    %92 = vector.load %arg8[%c0_73, %c0_74] : memref<1x64xf32, #tpu.memory_space<vmem>>, vector<1x64xf32>
    %93 = vector.shape_cast %92 : vector<1x64xf32> to vector<64xf32>
    %94 = vector.shape_cast %93 : vector<64xf32> to vector<1x64xf32>
    %95 = vector.broadcast %94 : vector<1x64xf32> to vector<256x64xf32>
    %96 = arith.mulf %91, %95 : vector<256x64xf32>
    %c0_75 = arith.constant 0 : index
    %c0_76 = arith.constant 0 : index
    %97 = vector.load %arg9[%c0_75, %c0_76] : memref<1x64xf32, #tpu.memory_space<vmem>>, vector<1x64xf32>
    %98 = vector.shape_cast %97 : vector<1x64xf32> to vector<64xf32>
    %99 = vector.shape_cast %98 : vector<64xf32> to vector<1x64xf32>
    %100 = vector.broadcast %99 : vector<1x64xf32> to vector<256x64xf32>
    %101 = arith.addf %96, %100 : vector<256x64xf32>
    %cst_77 = arith.constant 0.000000e+00 : f32
    %102 = vector.broadcast %cst_77 : f32 to vector<256x64xf32>
    %103 = arith.maximumf %101, %102 : vector<256x64xf32>
    %c0_78 = arith.constant 0 : index
    %c0_79 = arith.constant 0 : index
    %c0_80 = arith.constant 0 : index
    %c0_81 = arith.constant 0 : index
    %104 = vector.load %arg1[%c0_78, %c0_79, %c0_80, %c0_81] : memref<1x16x16x8xf32, #tpu.memory_space<vmem>>, vector<1x16x16x8xf32>
    %105 = vector.shape_cast %104 : vector<1x16x16x8xf32> to vector<16x16x8xf32>
    %c0_82 = arith.constant 0 : index
    %c0_83 = arith.constant 0 : index
    %106 = vector.load %arg10[%c0_82, %c0_83] : memref<1x8xf32, #tpu.memory_space<vmem>>, vector<1x8xf32>
    %107 = vector.shape_cast %106 : vector<1x8xf32> to vector<8xf32>
    %108 = vector.shape_cast %107 : vector<8xf32> to vector<1x1x8xf32>
    %109 = vector.broadcast %108 : vector<1x1x8xf32> to vector<16x16x8xf32>
    %110 = arith.mulf %105, %109 : vector<16x16x8xf32>
    %c0_84 = arith.constant 0 : index
    %c0_85 = arith.constant 0 : index
    %111 = vector.load %arg11[%c0_84, %c0_85] : memref<1x8xf32, #tpu.memory_space<vmem>>, vector<1x8xf32>
    %112 = vector.shape_cast %111 : vector<1x8xf32> to vector<8xf32>
    %113 = vector.shape_cast %112 : vector<8xf32> to vector<1x1x8xf32>
    %114 = vector.broadcast %113 : vector<1x1x8xf32> to vector<16x16x8xf32>
    %115 = arith.addf %110, %114 : vector<16x16x8xf32>
    %116 = vector.shape_cast %115 : vector<16x16x8xf32> to vector<256x8xf32>
    %c0_86 = arith.constant 0 : index
    %c0_87 = arith.constant 0 : index
    %117 = vector.load %arg12[%c0_86, %c0_87] : memref<8x64xf32, #tpu.memory_space<vmem>>, vector<8x64xf32>
    %cst_88 = arith.constant dense<0.000000e+00> : vector<256x64xf32>
    %118 = tpu.matmul %116, %117, %cst_88 {dimension_numbers = #tpu.dot_dimension_numbers<[1], [0], [0], [1], [0, 0, 1, 1], [], []>} : vector<256x8xf32>, vector<8x64xf32>, vector<256x64xf32> -> vector<256x64xf32>
    %c0_89 = arith.constant 0 : index
    %c0_90 = arith.constant 0 : index
    %119 = vector.load %arg13[%c0_89, %c0_90] : memref<1x64xf32, #tpu.memory_space<vmem>>, vector<1x64xf32>
    %120 = vector.shape_cast %119 : vector<1x64xf32> to vector<64xf32>
    %121 = vector.shape_cast %120 : vector<64xf32> to vector<1x64xf32>
    %122 = vector.broadcast %121 : vector<1x64xf32> to vector<256x64xf32>
    %123 = arith.addf %118, %122 : vector<256x64xf32>
    %124 = arith.addf %103, %123 : vector<256x64xf32>
    %125 = vector.shape_cast %124 : vector<256x64xf32> to vector<16x16x64xf32>
    %c0_91 = arith.constant 0 : index
    %c0_92 = arith.constant 0 : index
    %c0_93 = arith.constant 0 : index
    %c0_94 = arith.constant 0 : index
    %126 = vector.load %arg14[%c0_91, %c0_92, %c0_93, %c0_94] : memref<1x16x16x1xf32, #tpu.memory_space<vmem>>, vector<1x16x16x1xf32>
    %127 = vector.shape_cast %126 : vector<1x16x16x1xf32> to vector<16x16x1xf32>
    %128 = vector.broadcast %127 : vector<16x16x1xf32> to vector<16x16x64xf32>
    %129 = arith.mulf %125, %128 : vector<16x16x64xf32>
    %c0_95 = arith.constant 0 : index
    %c0_96 = arith.constant 0 : index
    %c0_97 = arith.constant 0 : index
    %c0_98 = arith.constant 0 : index
    %130 = vector.load %arg15[%c0_95, %c0_96, %c0_97, %c0_98] : memref<1x16x16x64xf32, #tpu.memory_space<vmem>>, vector<1x16x16x64xf32>
    %131 = vector.shape_cast %130 : vector<1x16x16x64xf32> to vector<16x16x64xf32>
    %132 = vector.shape_cast %129 : vector<16x16x64xf32> to vector<1x16x16x64xf32>
    tpu.vector_store %arg15[%c0_95, %c0_96, %c0_97, %c0_98], %132 {strides = array<i32>} : memref<1x16x16x64xf32, #tpu.memory_space<vmem>>, vector<1x16x16x64xf32>,
    return
  }
  func.func @transform_0(%arg0: i32) -> (i32, i32, i32, i32) {
    %c0_i32 = arith.constant 0 : i32
    %c0_i32_0 = arith.constant 0 : i32
    %c0_i32_1 = arith.constant 0 : i32
    %c0_i32_2 = arith.constant 0 : i32
    return %arg0, %c0_i32, %c0_i32_0, %c0_i32_1 : i32, i32, i32, i32
  }
  func.func @transform_1(%arg0: i32) -> (i32, i32, i32) {
    %c0_i32 = arith.constant 0 : i32
    %c0_i32_0 = arith.constant 0 : i32
    %c0_i32_1 = arith.constant 0 : i32
    %c0_i32_2 = arith.constant 0 : i32
    return %c0_i32, %c0_i32_0, %c0_i32_1 : i32, i32, i32
  }
  func.func @transform_2(%arg0: i32) -> (i32, i32) {
    %c0_i32 = arith.constant 0 : i32
    %c0_i32_0 = arith.constant 0 : i32
    %c0_i32_1 = arith.constant 0 : i32
    return %c0_i32, %c0_i32_0 : i32, i32
  }
  func.func @transform_3(%arg0: i32) -> (i32, i32) {
    %c0_i32 = arith.constant 0 : i32
    %c0_i32_0 = arith.constant 0 : i32
    %c0_i32_1 = arith.constant 0 : i32
    return %c0_i32, %c0_i32_0 : i32, i32
  }
  func.func @transform_4(%arg0: i32) -> (i32, i32) {
    %c0_i32 = arith.constant 0 : i32
    %c0_i32_0 = arith.constant 0 : i32
    %c0_i32_1 = arith.constant 0 : i32
    return %c0_i32, %c0_i32_0 : i32, i32
  }
  func.func @transform_5(%arg0: i32) -> (i32, i32) {
    %c0_i32 = arith.constant 0 : i32
    %c0_i32_0 = arith.constant 0 : i32
    %c0_i32_1 = arith.constant 0 : i32
    return %c0_i32, %c0_i32_0 : i32, i32
  }
  func.func @transform_6(%arg0: i32) -> (i32, i32) {
    %c0_i32 = arith.constant 0 : i32
    %c0_i32_0 = arith.constant 0 : i32
    %c0_i32_1 = arith.constant 0 : i32
    return %c0_i32, %c0_i32_0 : i32, i32
  }
  func.func @transform_7(%arg0: i32) -> (i32, i32) {
    %c0_i32 = arith.constant 0 : i32
    %c0_i32_0 = arith.constant 0 : i32
    %c0_i32_1 = arith.constant 0 : i32
    return %c0_i32, %c0_i32_0 : i32, i32
  }
  func.func @transform_8(%arg0: i32) -> (i32, i32) {
    %c0_i32 = arith.constant 0 : i32
    %c0_i32_0 = arith.constant 0 : i32
    %c0_i32_1 = arith.constant 0 : i32
    return %c0_i32, %c0_i32_0 : i32, i32
  }
  func.func @transform_9(%arg0: i32) -> (i32, i32) {
    %c0_i32 = arith.constant 0 : i32
    %c0_i32_0 = arith.constant 0 : i32
    %c0_i32_1 = arith.constant 0 : i32
    return %c0_i32, %c0_i32_0 : i32, i32
  }
  func.func @transform_10(%arg0: i32) -> (i32, i32) {
    %c0_i32 = arith.constant 0 : i32
    %c0_i32_0 = arith.constant 0 : i32
    %c0_i32_1 = arith.constant 0 : i32
    return %c0_i32, %c0_i32_0 : i32, i32
  }
  func.func @transform_11(%arg0: i32) -> (i32, i32) {
    %c0_i32 = arith.constant 0 : i32
    %c0_i32_0 = arith.constant 0 : i32
    %c0_i32_1 = arith.constant 0 : i32
    return %c0_i32, %c0_i32_0 : i32, i32
  }
  func.func @transform_12(%arg0: i32) -> (i32, i32) {
    %c0_i32 = arith.constant 0 : i32
    %c0_i32_0 = arith.constant 0 : i32
    %c0_i32_1 = arith.constant 0 : i32
    return %c0_i32, %c0_i32_0 : i32, i32
  }
  func.func @transform_13(%arg0: i32) -> (i32, i32, i32, i32) {
    %c0_i32 = arith.constant 0 : i32
    %c0_i32_0 = arith.constant 0 : i32
    %c0_i32_1 = arith.constant 0 : i32
    %c0_i32_2 = arith.constant 0 : i32
    return %arg0, %c0_i32, %c0_i32_0, %c0_i32_1 : i32, i32, i32, i32
  }
  func.func @transform_14(%arg0: i32) -> (i32, i32, i32, i32) {
    %c0_i32 = arith.constant 0 : i32
    %c0_i32_0 = arith.constant 0 : i32
    %c0_i32_1 = arith.constant 0 : i32
    %c0_i32_2 = arith.constant 0 : i32
    return %arg0, %c0_i32, %c0_i32_0, %c0_i32_1 : i32, i32, i32, i32
  }
}

module attributes {stable_mosaic.version = 11 : i64} {
  func.func @_rescnn_block_kernel(%arg0: i32, %arg1: memref<1x8x8x64xf32, #tpu.memory_space<vmem>>, %arg2: memref<3x3x64xf32, #tpu.memory_space<vmem>>, %arg3: memref<1x64xf32, #tpu.memory_space<vmem>>, %arg4: memref<1x64xf32, #tpu.memory_space<vmem>>, %arg5: memref<1x64xf32, #tpu.memory_space<vmem>>, %arg6: memref<1x64xf32, #tpu.memory_space<vmem>>, %arg7: memref<64x128xf32, #tpu.memory_space<vmem>>, %arg8: memref<1x128xf32, #tpu.memory_space<vmem>>, %arg9: memref<1x128xf32, #tpu.memory_space<vmem>>, %arg10: memref<1x64xf32, #tpu.memory_space<vmem>>, %arg11: memref<1x64xf32, #tpu.memory_space<vmem>>, %arg12: memref<64x128xf32, #tpu.memory_space<vmem>>, %arg13: memref<1x128xf32, #tpu.memory_space<vmem>>, %arg14: memref<1x8x8x1xf32, #tpu.memory_space<vmem>>, %arg15: memref<1x8x8x128xf32, #tpu.memory_space<vmem>>, %arg16: memref<10x10x64xf32, #tpu.memory_space<vmem>>) attributes {dimension_semantics = [#tpu.dimension_semantics<parallel>], iteration_bounds = array<i64: 2>, scalar_prefetch = 0 : i64, scratch_operands = 1 : i64, tpu.core_type = #tpu.core_type<tc>, window_params = [{transform_indices = @transform_0, window_bounds = array<i64: 1, 8, 8, 64>}, {pipeline_mode = #tpu.pipeline_mode<synchronous>, transform_indices = @transform_1, window_bounds = array<i64: 3, 3, 64>}, {pipeline_mode = #tpu.pipeline_mode<synchronous>, transform_indices = @transform_2, window_bounds = array<i64: 1, 64>}, {pipeline_mode = #tpu.pipeline_mode<synchronous>, transform_indices = @transform_3, window_bounds = array<i64: 1, 64>}, {pipeline_mode = #tpu.pipeline_mode<synchronous>, transform_indices = @transform_4, window_bounds = array<i64: 1, 64>}, {pipeline_mode = #tpu.pipeline_mode<synchronous>, transform_indices = @transform_5, window_bounds = array<i64: 1, 64>}, {pipeline_mode = #tpu.pipeline_mode<synchronous>, transform_indices = @transform_6, window_bounds = array<i64: 64, 128>}, {pipeline_mode = #tpu.pipeline_mode<synchronous>, transform_indices = @transform_7, window_bounds = array<i64: 1, 128>}, {pipeline_mode = #tpu.pipeline_mode<synchronous>, transform_indices = @transform_8, window_bounds = array<i64: 1, 128>}, {pipeline_mode = #tpu.pipeline_mode<synchronous>, transform_indices = @transform_9, window_bounds = array<i64: 1, 64>}, {pipeline_mode = #tpu.pipeline_mode<synchronous>, transform_indices = @transform_10, window_bounds = array<i64: 1, 64>}, {pipeline_mode = #tpu.pipeline_mode<synchronous>, transform_indices = @transform_11, window_bounds = array<i64: 64, 128>}, {pipeline_mode = #tpu.pipeline_mode<synchronous>, transform_indices = @transform_12, window_bounds = array<i64: 1, 128>}, {transform_indices = @transform_13, window_bounds = array<i64: 1, 8, 8, 1>}, {transform_indices = @transform_14, window_bounds = array<i64: 1, 8, 8, 128>}]} {
    %cst = arith.constant 0.000000e+00 : f32
    %0 = vector.broadcast %cst : f32 to vector<10x10x64xf32>
    %c0 = arith.constant 0 : index
    %c0_0 = arith.constant 0 : index
    %c0_1 = arith.constant 0 : index
    %1 = vector.load %arg16[%c0, %c0_0, %c0_1] : memref<10x10x64xf32, #tpu.memory_space<vmem>>, vector<10x10x64xf32>
    tpu.vector_store %arg16[%c0, %c0_0, %c0_1], %0 {strides = array<i32>} : memref<10x10x64xf32, #tpu.memory_space<vmem>>, vector<10x10x64xf32>,
    %c0_2 = arith.constant 0 : index
    %c0_3 = arith.constant 0 : index
    %c0_4 = arith.constant 0 : index
    %c0_5 = arith.constant 0 : index
    %2 = vector.load %arg1[%c0_2, %c0_3, %c0_4, %c0_5] : memref<1x8x8x64xf32, #tpu.memory_space<vmem>>, vector<1x8x8x64xf32>
    %3 = vector.shape_cast %2 : vector<1x8x8x64xf32> to vector<8x8x64xf32>
    %c0_6 = arith.constant 0 : index
    %c0_7 = arith.constant 0 : index
    %4 = vector.load %arg3[%c0_6, %c0_7] : memref<1x64xf32, #tpu.memory_space<vmem>>, vector<1x64xf32>
    %5 = vector.shape_cast %4 : vector<1x64xf32> to vector<64xf32>
    %6 = vector.shape_cast %5 : vector<64xf32> to vector<1x1x64xf32>
    %7 = vector.broadcast %6 : vector<1x1x64xf32> to vector<8x8x64xf32>
    %8 = arith.mulf %3, %7 : vector<8x8x64xf32>
    %c0_8 = arith.constant 0 : index
    %c0_9 = arith.constant 0 : index
    %9 = vector.load %arg4[%c0_8, %c0_9] : memref<1x64xf32, #tpu.memory_space<vmem>>, vector<1x64xf32>
    %10 = vector.shape_cast %9 : vector<1x64xf32> to vector<64xf32>
    %11 = vector.shape_cast %10 : vector<64xf32> to vector<1x1x64xf32>
    %12 = vector.broadcast %11 : vector<1x1x64xf32> to vector<8x8x64xf32>
    %13 = arith.addf %8, %12 : vector<8x8x64xf32>
    %c1 = arith.constant 1 : index
    %c2 = arith.constant 2 : index
    %c0_10 = arith.constant 0 : index
    %14 = vector.load %arg16[%c1, %c2, %c0_10] : memref<10x10x64xf32, #tpu.memory_space<vmem>>, vector<8x8x64xf32>
    tpu.vector_store %arg16[%c1, %c2, %c0_10], %13 {strides = array<i32>} : memref<10x10x64xf32, #tpu.memory_space<vmem>>, vector<8x8x64xf32>,
    %cst_11 = arith.constant 0.000000e+00 : f32
    %15 = vector.broadcast %cst_11 : f32 to vector<8x8x64xf32>
    %c0_12 = arith.constant 0 : index
    %c0_13 = arith.constant 0 : index
    %c0_14 = arith.constant 0 : index
    %16 = vector.load %arg16[%c0_12, %c0_13, %c0_14] : memref<10x10x64xf32, #tpu.memory_space<vmem>>, vector<8x8x64xf32>
    %c0_15 = arith.constant 0 : index
    %c0_16 = arith.constant 0 : index
    %c0_17 = arith.constant 0 : index
    %17 = vector.load %arg2[%c0_15, %c0_16, %c0_17] : memref<3x3x64xf32, #tpu.memory_space<vmem>>, vector<1x1x64xf32>
    %18 = vector.shape_cast %17 : vector<1x1x64xf32> to vector<64xf32>
    %19 = vector.shape_cast %18 : vector<64xf32> to vector<1x1x64xf32>
    %20 = vector.broadcast %19 : vector<1x1x64xf32> to vector<8x8x64xf32>
    %21 = arith.mulf %16, %20 : vector<8x8x64xf32>
    %22 = arith.addf %15, %21 : vector<8x8x64xf32>
    %c0_18 = arith.constant 0 : index
    %c1_19 = arith.constant 1 : index
    %c0_20 = arith.constant 0 : index
    %23 = vector.load %arg16[%c0_18, %c1_19, %c0_20] : memref<10x10x64xf32, #tpu.memory_space<vmem>>, vector<8x8x64xf32>
    %c0_21 = arith.constant 0 : index
    %c1_22 = arith.constant 1 : index
    %c0_23 = arith.constant 0 : index
    %24 = vector.load %arg2[%c0_21, %c1_22, %c0_23] : memref<3x3x64xf32, #tpu.memory_space<vmem>>, vector<1x1x64xf32>
    %25 = vector.shape_cast %24 : vector<1x1x64xf32> to vector<64xf32>
    %26 = vector.shape_cast %25 : vector<64xf32> to vector<1x1x64xf32>
    %27 = vector.broadcast %26 : vector<1x1x64xf32> to vector<8x8x64xf32>
    %28 = arith.mulf %23, %27 : vector<8x8x64xf32>
    %29 = arith.addf %22, %28 : vector<8x8x64xf32>
    %c0_24 = arith.constant 0 : index
    %c2_25 = arith.constant 2 : index
    %c0_26 = arith.constant 0 : index
    %30 = vector.load %arg16[%c0_24, %c2_25, %c0_26] : memref<10x10x64xf32, #tpu.memory_space<vmem>>, vector<8x8x64xf32>
    %c0_27 = arith.constant 0 : index
    %c2_28 = arith.constant 2 : index
    %c0_29 = arith.constant 0 : index
    %31 = vector.load %arg2[%c0_27, %c2_28, %c0_29] : memref<3x3x64xf32, #tpu.memory_space<vmem>>, vector<1x1x64xf32>
    %32 = vector.shape_cast %31 : vector<1x1x64xf32> to vector<64xf32>
    %33 = vector.shape_cast %32 : vector<64xf32> to vector<1x1x64xf32>
    %34 = vector.broadcast %33 : vector<1x1x64xf32> to vector<8x8x64xf32>
    %35 = arith.mulf %30, %34 : vector<8x8x64xf32>
    %36 = arith.addf %29, %35 : vector<8x8x64xf32>
    %c1_30 = arith.constant 1 : index
    %c0_31 = arith.constant 0 : index
    %c0_32 = arith.constant 0 : index
    %37 = vector.load %arg16[%c1_30, %c0_31, %c0_32] : memref<10x10x64xf32, #tpu.memory_space<vmem>>, vector<8x8x64xf32>
    %c1_33 = arith.constant 1 : index
    %c0_34 = arith.constant 0 : index
    %c0_35 = arith.constant 0 : index
    %38 = vector.load %arg2[%c1_33, %c0_34, %c0_35] : memref<3x3x64xf32, #tpu.memory_space<vmem>>, vector<1x1x64xf32>
    %39 = vector.shape_cast %38 : vector<1x1x64xf32> to vector<64xf32>
    %40 = vector.shape_cast %39 : vector<64xf32> to vector<1x1x64xf32>
    %41 = vector.broadcast %40 : vector<1x1x64xf32> to vector<8x8x64xf32>
    %42 = arith.mulf %37, %41 : vector<8x8x64xf32>
    %43 = arith.addf %36, %42 : vector<8x8x64xf32>
    %c1_36 = arith.constant 1 : index
    %c1_37 = arith.constant 1 : index
    %c0_38 = arith.constant 0 : index
    %44 = vector.load %arg16[%c1_36, %c1_37, %c0_38] : memref<10x10x64xf32, #tpu.memory_space<vmem>>, vector<8x8x64xf32>
    %c1_39 = arith.constant 1 : index
    %c1_40 = arith.constant 1 : index
    %c0_41 = arith.constant 0 : index
    %45 = vector.load %arg2[%c1_39, %c1_40, %c0_41] : memref<3x3x64xf32, #tpu.memory_space<vmem>>, vector<1x1x64xf32>
    %46 = vector.shape_cast %45 : vector<1x1x64xf32> to vector<64xf32>
    %47 = vector.shape_cast %46 : vector<64xf32> to vector<1x1x64xf32>
    %48 = vector.broadcast %47 : vector<1x1x64xf32> to vector<8x8x64xf32>
    %49 = arith.mulf %44, %48 : vector<8x8x64xf32>
    %50 = arith.addf %43, %49 : vector<8x8x64xf32>
    %c1_42 = arith.constant 1 : index
    %c2_43 = arith.constant 2 : index
    %c0_44 = arith.constant 0 : index
    %51 = vector.load %arg16[%c1_42, %c2_43, %c0_44] : memref<10x10x64xf32, #tpu.memory_space<vmem>>, vector<8x8x64xf32>
    %c1_45 = arith.constant 1 : index
    %c2_46 = arith.constant 2 : index
    %c0_47 = arith.constant 0 : index
    %52 = vector.load %arg2[%c1_45, %c2_46, %c0_47] : memref<3x3x64xf32, #tpu.memory_space<vmem>>, vector<1x1x64xf32>
    %53 = vector.shape_cast %52 : vector<1x1x64xf32> to vector<64xf32>
    %54 = vector.shape_cast %53 : vector<64xf32> to vector<1x1x64xf32>
    %55 = vector.broadcast %54 : vector<1x1x64xf32> to vector<8x8x64xf32>
    %56 = arith.mulf %51, %55 : vector<8x8x64xf32>
    %57 = arith.addf %50, %56 : vector<8x8x64xf32>
    %c2_48 = arith.constant 2 : index
    %c0_49 = arith.constant 0 : index
    %c0_50 = arith.constant 0 : index
    %58 = vector.load %arg16[%c2_48, %c0_49, %c0_50] : memref<10x10x64xf32, #tpu.memory_space<vmem>>, vector<8x8x64xf32>
    %c2_51 = arith.constant 2 : index
    %c0_52 = arith.constant 0 : index
    %c0_53 = arith.constant 0 : index
    %59 = vector.load %arg2[%c2_51, %c0_52, %c0_53] : memref<3x3x64xf32, #tpu.memory_space<vmem>>, vector<1x1x64xf32>
    %60 = vector.shape_cast %59 : vector<1x1x64xf32> to vector<64xf32>
    %61 = vector.shape_cast %60 : vector<64xf32> to vector<1x1x64xf32>
    %62 = vector.broadcast %61 : vector<1x1x64xf32> to vector<8x8x64xf32>
    %63 = arith.mulf %58, %62 : vector<8x8x64xf32>
    %64 = arith.addf %57, %63 : vector<8x8x64xf32>
    %c2_54 = arith.constant 2 : index
    %c1_55 = arith.constant 1 : index
    %c0_56 = arith.constant 0 : index
    %65 = vector.load %arg16[%c2_54, %c1_55, %c0_56] : memref<10x10x64xf32, #tpu.memory_space<vmem>>, vector<8x8x64xf32>
    %c2_57 = arith.constant 2 : index
    %c1_58 = arith.constant 1 : index
    %c0_59 = arith.constant 0 : index
    %66 = vector.load %arg2[%c2_57, %c1_58, %c0_59] : memref<3x3x64xf32, #tpu.memory_space<vmem>>, vector<1x1x64xf32>
    %67 = vector.shape_cast %66 : vector<1x1x64xf32> to vector<64xf32>
    %68 = vector.shape_cast %67 : vector<64xf32> to vector<1x1x64xf32>
    %69 = vector.broadcast %68 : vector<1x1x64xf32> to vector<8x8x64xf32>
    %70 = arith.mulf %65, %69 : vector<8x8x64xf32>
    %71 = arith.addf %64, %70 : vector<8x8x64xf32>
    %c2_60 = arith.constant 2 : index
    %c2_61 = arith.constant 2 : index
    %c0_62 = arith.constant 0 : index
    %72 = vector.load %arg16[%c2_60, %c2_61, %c0_62] : memref<10x10x64xf32, #tpu.memory_space<vmem>>, vector<8x8x64xf32>
    %c2_63 = arith.constant 2 : index
    %c2_64 = arith.constant 2 : index
    %c0_65 = arith.constant 0 : index
    %73 = vector.load %arg2[%c2_63, %c2_64, %c0_65] : memref<3x3x64xf32, #tpu.memory_space<vmem>>, vector<1x1x64xf32>
    %74 = vector.shape_cast %73 : vector<1x1x64xf32> to vector<64xf32>
    %75 = vector.shape_cast %74 : vector<64xf32> to vector<1x1x64xf32>
    %76 = vector.broadcast %75 : vector<1x1x64xf32> to vector<8x8x64xf32>
    %77 = arith.mulf %72, %76 : vector<8x8x64xf32>
    %78 = arith.addf %71, %77 : vector<8x8x64xf32>
    %c0_66 = arith.constant 0 : index
    %c0_67 = arith.constant 0 : index
    %79 = vector.load %arg5[%c0_66, %c0_67] : memref<1x64xf32, #tpu.memory_space<vmem>>, vector<1x64xf32>
    %80 = vector.shape_cast %79 : vector<1x64xf32> to vector<64xf32>
    %81 = vector.shape_cast %80 : vector<64xf32> to vector<1x1x64xf32>
    %82 = vector.broadcast %81 : vector<1x1x64xf32> to vector<8x8x64xf32>
    %83 = arith.mulf %78, %82 : vector<8x8x64xf32>
    %c0_68 = arith.constant 0 : index
    %c0_69 = arith.constant 0 : index
    %84 = vector.load %arg6[%c0_68, %c0_69] : memref<1x64xf32, #tpu.memory_space<vmem>>, vector<1x64xf32>
    %85 = vector.shape_cast %84 : vector<1x64xf32> to vector<64xf32>
    %86 = vector.shape_cast %85 : vector<64xf32> to vector<1x1x64xf32>
    %87 = vector.broadcast %86 : vector<1x1x64xf32> to vector<8x8x64xf32>
    %88 = arith.addf %83, %87 : vector<8x8x64xf32>
    %89 = vector.shape_cast %88 : vector<8x8x64xf32> to vector<64x64xf32>
    %c0_70 = arith.constant 0 : index
    %c0_71 = arith.constant 0 : index
    %90 = vector.load %arg7[%c0_70, %c0_71] : memref<64x128xf32, #tpu.memory_space<vmem>>, vector<64x128xf32>
    %cst_72 = arith.constant dense<0.000000e+00> : vector<64x128xf32>
    %91 = tpu.matmul %89, %90, %cst_72 {dimension_numbers = #tpu.dot_dimension_numbers<[1], [0], [0], [1], [0, 0, 1, 1], [], []>} : vector<64x64xf32>, vector<64x128xf32>, vector<64x128xf32> -> vector<64x128xf32>
    %c0_73 = arith.constant 0 : index
    %c0_74 = arith.constant 0 : index
    %92 = vector.load %arg8[%c0_73, %c0_74] : memref<1x128xf32, #tpu.memory_space<vmem>>, vector<1x128xf32>
    %93 = vector.shape_cast %92 : vector<1x128xf32> to vector<128xf32>
    %94 = vector.shape_cast %93 : vector<128xf32> to vector<1x128xf32>
    %95 = vector.broadcast %94 : vector<1x128xf32> to vector<64x128xf32>
    %96 = arith.mulf %91, %95 : vector<64x128xf32>
    %c0_75 = arith.constant 0 : index
    %c0_76 = arith.constant 0 : index
    %97 = vector.load %arg9[%c0_75, %c0_76] : memref<1x128xf32, #tpu.memory_space<vmem>>, vector<1x128xf32>
    %98 = vector.shape_cast %97 : vector<1x128xf32> to vector<128xf32>
    %99 = vector.shape_cast %98 : vector<128xf32> to vector<1x128xf32>
    %100 = vector.broadcast %99 : vector<1x128xf32> to vector<64x128xf32>
    %101 = arith.addf %96, %100 : vector<64x128xf32>
    %cst_77 = arith.constant 0.000000e+00 : f32
    %102 = vector.broadcast %cst_77 : f32 to vector<64x128xf32>
    %103 = arith.maximumf %101, %102 : vector<64x128xf32>
    %c0_78 = arith.constant 0 : index
    %c0_79 = arith.constant 0 : index
    %c0_80 = arith.constant 0 : index
    %c0_81 = arith.constant 0 : index
    %104 = vector.load %arg1[%c0_78, %c0_79, %c0_80, %c0_81] : memref<1x8x8x64xf32, #tpu.memory_space<vmem>>, vector<1x8x8x64xf32>
    %105 = vector.shape_cast %104 : vector<1x8x8x64xf32> to vector<8x8x64xf32>
    %c0_82 = arith.constant 0 : index
    %c0_83 = arith.constant 0 : index
    %106 = vector.load %arg10[%c0_82, %c0_83] : memref<1x64xf32, #tpu.memory_space<vmem>>, vector<1x64xf32>
    %107 = vector.shape_cast %106 : vector<1x64xf32> to vector<64xf32>
    %108 = vector.shape_cast %107 : vector<64xf32> to vector<1x1x64xf32>
    %109 = vector.broadcast %108 : vector<1x1x64xf32> to vector<8x8x64xf32>
    %110 = arith.mulf %105, %109 : vector<8x8x64xf32>
    %c0_84 = arith.constant 0 : index
    %c0_85 = arith.constant 0 : index
    %111 = vector.load %arg11[%c0_84, %c0_85] : memref<1x64xf32, #tpu.memory_space<vmem>>, vector<1x64xf32>
    %112 = vector.shape_cast %111 : vector<1x64xf32> to vector<64xf32>
    %113 = vector.shape_cast %112 : vector<64xf32> to vector<1x1x64xf32>
    %114 = vector.broadcast %113 : vector<1x1x64xf32> to vector<8x8x64xf32>
    %115 = arith.addf %110, %114 : vector<8x8x64xf32>
    %116 = vector.shape_cast %115 : vector<8x8x64xf32> to vector<64x64xf32>
    %c0_86 = arith.constant 0 : index
    %c0_87 = arith.constant 0 : index
    %117 = vector.load %arg12[%c0_86, %c0_87] : memref<64x128xf32, #tpu.memory_space<vmem>>, vector<64x128xf32>
    %cst_88 = arith.constant dense<0.000000e+00> : vector<64x128xf32>
    %118 = tpu.matmul %116, %117, %cst_88 {dimension_numbers = #tpu.dot_dimension_numbers<[1], [0], [0], [1], [0, 0, 1, 1], [], []>} : vector<64x64xf32>, vector<64x128xf32>, vector<64x128xf32> -> vector<64x128xf32>
    %c0_89 = arith.constant 0 : index
    %c0_90 = arith.constant 0 : index
    %119 = vector.load %arg13[%c0_89, %c0_90] : memref<1x128xf32, #tpu.memory_space<vmem>>, vector<1x128xf32>
    %120 = vector.shape_cast %119 : vector<1x128xf32> to vector<128xf32>
    %121 = vector.shape_cast %120 : vector<128xf32> to vector<1x128xf32>
    %122 = vector.broadcast %121 : vector<1x128xf32> to vector<64x128xf32>
    %123 = arith.addf %118, %122 : vector<64x128xf32>
    %124 = arith.addf %103, %123 : vector<64x128xf32>
    %125 = vector.shape_cast %124 : vector<64x128xf32> to vector<8x8x128xf32>
    %c0_91 = arith.constant 0 : index
    %c0_92 = arith.constant 0 : index
    %c0_93 = arith.constant 0 : index
    %c0_94 = arith.constant 0 : index
    %126 = vector.load %arg14[%c0_91, %c0_92, %c0_93, %c0_94] : memref<1x8x8x1xf32, #tpu.memory_space<vmem>>, vector<1x8x8x1xf32>
    %127 = vector.shape_cast %126 : vector<1x8x8x1xf32> to vector<8x8x1xf32>
    %128 = vector.broadcast %127 : vector<8x8x1xf32> to vector<8x8x128xf32>
    %129 = arith.mulf %125, %128 : vector<8x8x128xf32>
    %c0_95 = arith.constant 0 : index
    %c0_96 = arith.constant 0 : index
    %c0_97 = arith.constant 0 : index
    %c0_98 = arith.constant 0 : index
    %130 = vector.load %arg15[%c0_95, %c0_96, %c0_97, %c0_98] : memref<1x8x8x128xf32, #tpu.memory_space<vmem>>, vector<1x8x8x128xf32>
    %131 = vector.shape_cast %130 : vector<1x8x8x128xf32> to vector<8x8x128xf32>
    %132 = vector.shape_cast %129 : vector<8x8x128xf32> to vector<1x8x8x128xf32>
    tpu.vector_store %arg15[%c0_95, %c0_96, %c0_97, %c0_98], %132 {strides = array<i32>} : memref<1x8x8x128xf32, #tpu.memory_space<vmem>>, vector<1x8x8x128xf32>,
    return
  }
  func.func @transform_0(%arg0: i32) -> (i32, i32, i32, i32) {
    %c0_i32 = arith.constant 0 : i32
    %c0_i32_0 = arith.constant 0 : i32
    %c0_i32_1 = arith.constant 0 : i32
    %c0_i32_2 = arith.constant 0 : i32
    return %arg0, %c0_i32, %c0_i32_0, %c0_i32_1 : i32, i32, i32, i32
  }
  func.func @transform_1(%arg0: i32) -> (i32, i32, i32) {
    %c0_i32 = arith.constant 0 : i32
    %c0_i32_0 = arith.constant 0 : i32
    %c0_i32_1 = arith.constant 0 : i32
    %c0_i32_2 = arith.constant 0 : i32
    return %c0_i32, %c0_i32_0, %c0_i32_1 : i32, i32, i32
  }
  func.func @transform_2(%arg0: i32) -> (i32, i32) {
    %c0_i32 = arith.constant 0 : i32
    %c0_i32_0 = arith.constant 0 : i32
    %c0_i32_1 = arith.constant 0 : i32
    return %c0_i32, %c0_i32_0 : i32, i32
  }
  func.func @transform_3(%arg0: i32) -> (i32, i32) {
    %c0_i32 = arith.constant 0 : i32
    %c0_i32_0 = arith.constant 0 : i32
    %c0_i32_1 = arith.constant 0 : i32
    return %c0_i32, %c0_i32_0 : i32, i32
  }
  func.func @transform_4(%arg0: i32) -> (i32, i32) {
    %c0_i32 = arith.constant 0 : i32
    %c0_i32_0 = arith.constant 0 : i32
    %c0_i32_1 = arith.constant 0 : i32
    return %c0_i32, %c0_i32_0 : i32, i32
  }
  func.func @transform_5(%arg0: i32) -> (i32, i32) {
    %c0_i32 = arith.constant 0 : i32
    %c0_i32_0 = arith.constant 0 : i32
    %c0_i32_1 = arith.constant 0 : i32
    return %c0_i32, %c0_i32_0 : i32, i32
  }
  func.func @transform_6(%arg0: i32) -> (i32, i32) {
    %c0_i32 = arith.constant 0 : i32
    %c0_i32_0 = arith.constant 0 : i32
    %c0_i32_1 = arith.constant 0 : i32
    return %c0_i32, %c0_i32_0 : i32, i32
  }
  func.func @transform_7(%arg0: i32) -> (i32, i32) {
    %c0_i32 = arith.constant 0 : i32
    %c0_i32_0 = arith.constant 0 : i32
    %c0_i32_1 = arith.constant 0 : i32
    return %c0_i32, %c0_i32_0 : i32, i32
  }
  func.func @transform_8(%arg0: i32) -> (i32, i32) {
    %c0_i32 = arith.constant 0 : i32
    %c0_i32_0 = arith.constant 0 : i32
    %c0_i32_1 = arith.constant 0 : i32
    return %c0_i32, %c0_i32_0 : i32, i32
  }
  func.func @transform_9(%arg0: i32) -> (i32, i32) {
    %c0_i32 = arith.constant 0 : i32
    %c0_i32_0 = arith.constant 0 : i32
    %c0_i32_1 = arith.constant 0 : i32
    return %c0_i32, %c0_i32_0 : i32, i32
  }
  func.func @transform_10(%arg0: i32) -> (i32, i32) {
    %c0_i32 = arith.constant 0 : i32
    %c0_i32_0 = arith.constant 0 : i32
    %c0_i32_1 = arith.constant 0 : i32
    return %c0_i32, %c0_i32_0 : i32, i32
  }
  func.func @transform_11(%arg0: i32) -> (i32, i32) {
    %c0_i32 = arith.constant 0 : i32
    %c0_i32_0 = arith.constant 0 : i32
    %c0_i32_1 = arith.constant 0 : i32
    return %c0_i32, %c0_i32_0 : i32, i32
  }
  func.func @transform_12(%arg0: i32) -> (i32, i32) {
    %c0_i32 = arith.constant 0 : i32
    %c0_i32_0 = arith.constant 0 : i32
    %c0_i32_1 = arith.constant 0 : i32
    return %c0_i32, %c0_i32_0 : i32, i32
  }
  func.func @transform_13(%arg0: i32) -> (i32, i32, i32, i32) {
    %c0_i32 = arith.constant 0 : i32
    %c0_i32_0 = arith.constant 0 : i32
    %c0_i32_1 = arith.constant 0 : i32
    %c0_i32_2 = arith.constant 0 : i32
    return %arg0, %c0_i32, %c0_i32_0, %c0_i32_1 : i32, i32, i32, i32
  }
  func.func @transform_14(%arg0: i32) -> (i32, i32, i32, i32) {
    %c0_i32 = arith.constant 0 : i32
    %c0_i32_0 = arith.constant 0 : i32
    %c0_i32_1 = arith.constant 0 : i32
    %c0_i32_2 = arith.constant 0 : i32
    return %arg0, %c0_i32, %c0_i32_0, %c0_i32_1 : i32, i32, i32, i32
  }
}

module attributes {stable_mosaic.version = 11 : i64} {
  func.func @_linear_kernel(%arg0: i32, %arg1: memref<8x512xf32, #tpu.memory_space<vmem>>, %arg2: memref<512x32xf32, #tpu.memory_space<vmem>>, %arg3: memref<1x32xf32, #tpu.memory_space<vmem>>, %arg4: memref<8x32xf32, #tpu.memory_space<vmem>>) attributes {dimension_semantics = [#tpu.dimension_semantics<arbitrary>], iteration_bounds = array<i64: 1>, scalar_prefetch = 0 : i64, scratch_operands = 0 : i64, tpu.core_type = #tpu.core_type<tc>, window_params = [{pipeline_mode = #tpu.pipeline_mode<synchronous>, transform_indices = @transform_0, window_bounds = array<i64: 8, 512>}, {pipeline_mode = #tpu.pipeline_mode<synchronous>, transform_indices = @transform_1, window_bounds = array<i64: 512, 32>}, {pipeline_mode = #tpu.pipeline_mode<synchronous>, transform_indices = @transform_2, window_bounds = array<i64: 1, 32>}, {pipeline_mode = #tpu.pipeline_mode<synchronous>, transform_indices = @transform_3, window_bounds = array<i64: 8, 32>}]} {
    %c0 = arith.constant 0 : index
    %c0_0 = arith.constant 0 : index
    %0 = vector.load %arg1[%c0, %c0_0] : memref<8x512xf32, #tpu.memory_space<vmem>>, vector<8x512xf32>
    %c0_1 = arith.constant 0 : index
    %c0_2 = arith.constant 0 : index
    %1 = vector.load %arg2[%c0_1, %c0_2] : memref<512x32xf32, #tpu.memory_space<vmem>>, vector<512x32xf32>
    %cst = arith.constant dense<0.000000e+00> : vector<8x32xf32>
    %2 = tpu.matmul %0, %1, %cst {dimension_numbers = #tpu.dot_dimension_numbers<[1], [0], [0], [1], [0, 0, 1, 1], [], []>} : vector<8x512xf32>, vector<512x32xf32>, vector<8x32xf32> -> vector<8x32xf32>
    %c0_3 = arith.constant 0 : index
    %c0_4 = arith.constant 0 : index
    %3 = vector.load %arg3[%c0_3, %c0_4] : memref<1x32xf32, #tpu.memory_space<vmem>>, vector<1x32xf32>
    %4 = vector.shape_cast %3 : vector<1x32xf32> to vector<32xf32>
    %5 = vector.shape_cast %4 : vector<32xf32> to vector<1x32xf32>
    %6 = vector.broadcast %5 : vector<1x32xf32> to vector<8x32xf32>
    %7 = arith.addf %2, %6 : vector<8x32xf32>
    %c0_5 = arith.constant 0 : index
    %c0_6 = arith.constant 0 : index
    %8 = vector.load %arg4[%c0_5, %c0_6] : memref<8x32xf32, #tpu.memory_space<vmem>>, vector<8x32xf32>
    tpu.vector_store %arg4[%c0_5, %c0_6], %7 {strides = array<i32>} : memref<8x32xf32, #tpu.memory_space<vmem>>, vector<8x32xf32>,
    return
  }
  func.func @transform_0(%arg0: i32) -> (i32, i32) {
    %c0_i32 = arith.constant 0 : i32
    %c0_i32_0 = arith.constant 0 : i32
    %c0_i32_1 = arith.constant 0 : i32
    return %c0_i32, %c0_i32_0 : i32, i32
  }
  func.func @transform_1(%arg0: i32) -> (i32, i32) {
    %c0_i32 = arith.constant 0 : i32
    %c0_i32_0 = arith.constant 0 : i32
    %c0_i32_1 = arith.constant 0 : i32
    return %c0_i32, %c0_i32_0 : i32, i32
  }
  func.func @transform_2(%arg0: i32) -> (i32, i32) {
    %c0_i32 = arith.constant 0 : i32
    %c0_i32_0 = arith.constant 0 : i32
    %c0_i32_1 = arith.constant 0 : i32
    return %c0_i32, %c0_i32_0 : i32, i32
  }
  func.func @transform_3(%arg0: i32) -> (i32, i32) {
    %c0_i32 = arith.constant 0 : i32
    %c0_i32_0 = arith.constant 0 : i32
    %c0_i32_1 = arith.constant 0 : i32
    return %c0_i32, %c0_i32_0 : i32, i32
  }
}

</mosaic_0001>

<bundles_post_ra>
// kernel: fwd.5
= control target key start
LH: loop header
LB: loop body
LE: loop exit
PB: predicated region body
PF: predicated region fallthrough
CT: control target
= control target key end

     0   :  { %s646_s0 = inlined_call_operand.vmem [shape: f32[8,512], index: 0, kind: input, shape index: {}]   ;;  %s647_s1 = inlined_call_operand.vmem [shape: f32[512,32], index: 1, kind: input, shape index: {}]   ;;  %s648_s2 = inlined_call_operand.vmem [shape: f32[1,32], index: 2, kind: input, shape index: {}]   ;;  %s649_s3 = inlined_call_operand.hbm [shape: f32[8,32], index: 3, kind: output, shape index: {}]  }
   0x1   :  { %v35_v0 = vld [vmem:[%s647_s1 + $0x80] sm:$0xff]  ;;  %v36_v1 = vld [vmem:[%s647_s1 + $0x88] sm:$0xff]  ;;  %v37_v11 = vld [vmem:[%s647_s1 + $0x90] sm:$0xff] }
   0x2   :  { %v19_v2 = vld [vmem:[%s647_s1] sm:$0xff]  ;;  %v317_v3 = vpack.c.bf16 %v36_v1, %v35_v0  ;;  %v20_v4 = vld [vmem:[%s647_s1 + $0x8] sm:$0xff]  ;;  %v38_v13 = vld [vmem:[%s647_s1 + $0x98] sm:$0xff] }
   0x3   :  { %v67_v5 = vld [vmem:[%s647_s1 + $0x180] sm:$0xff]  ;;  %v68_v6 = vld [vmem:[%s647_s1 + $0x188] sm:$0xff]  ;;  %v319_v7 = vpack.c.bf16 %v20_v4, %v19_v2  ;;  %v21_v14 = vld [vmem:[%s647_s1 + $0x10] sm:$0xff]  ;;  %v321_v16 = vpack.c.bf16 %v38_v13, %v37_v11 }
   0x4   :  { %v349_v8 = vpack.c.bf16 %v68_v6, %v67_v5  ;;  %v51_v9 = vld [vmem:[%s647_s1 + $0x100] sm:$0xff]  ;;  %v52_v10 = vld [vmem:[%s647_s1 + $0x108] sm:$0xff]  ;;  %318 = vmatprep.subr.bf16.mxu0 %v317_v3  ;;  %v22_v15 = vld [vmem:[%s647_s1 + $0x18] sm:$0xff] }
   0x5   :  { %v351_v12 = vpack.c.bf16 %v52_v10, %v51_v9  ;;  %320 = vmatpush3.bf16.msra.mxu0 %v319_v7  ;;  %v323_v17 = vpack.c.bf16 %v22_v15, %v21_v14  ;;  %v69_v18 = vld [vmem:[%s647_s1 + $0x190] sm:$0xff]  ;;  %v70_v19 = vld [vmem:[%s647_s1 + $0x198] sm:$0xff]  ;;  %v39_v23 = vld [vmem:[%s647_s1 + $0xa0] sm:$0xff] }
   0x6   :  { %350 = vmatprep.subr.bf16.mxu1 %v349_v8  ;;  %v53_v20 = vld [vmem:[%s647_s1 + $0x110] sm:$0xff]  ;;  %v353_v21 = vpack.c.bf16 %v70_v19, %v69_v18  ;;  %v54_v22 = vld [vmem:[%s647_s1 + $0x118] sm:$0xff]  ;;  %v40_v24 = vld [vmem:[%s647_s1 + $0xa8] sm:$0xff]  ;;  %322 = vmatprep.subr.bf16.mxu0 %v321_v16 }
   0x7   :  { %352 = vmatpush3.bf16.msra.mxu1 %v351_v12  ;;  %v355_v25 = vpack.c.bf16 %v54_v22, %v53_v20  ;;  %v325_v26 = vpack.c.bf16 %v40_v24, %v39_v23  ;;  %v23_v27 = vld [vmem:[%s647_s1 + $0x20] sm:$0xff]  ;;  %v24_v28 = vld [vmem:[%s647_s1 + $0x28] sm:$0xff]  ;;  %v41_v35 = vld [vmem:[%s647_s1 + $0xb0] sm:$0xff] }
   0x8   :  { %v71_v29 = vld [vmem:[%s647_s1 + $0x1a0] sm:$0xff]  ;;  %354 = vmatprep.subr.bf16.mxu1 %v353_v21  ;;  %v72_v30 = vld [vmem:[%s647_s1 + $0x1a8] sm:$0xff]  ;;  %v327_v33 = vpack.c.bf16 %v24_v28, %v23_v27  ;;  %v42_v36 = vld [vmem:[%s647_s1 + $0xb8] sm:$0xff] }
   0x9   :  { %v55_v31 = vld [vmem:[%s647_s1 + $0x120] sm:$0xff]  ;;  %v56_v32 = vld [vmem:[%s647_s1 + $0x128] sm:$0xff]  ;;  %324 = vmatpush3.bf16.msra.mxu0 %v323_v17  ;;  %v357_v34 = vpack.c.bf16 %v72_v30, %v71_v29  ;;  %v25_v37 = vld [vmem:[%s647_s1 + $0x30] sm:$0xff]  ;;  %v329_v39 = vpack.c.bf16 %v42_v36, %v41_v35 }
   0xa   :  { %326 = vmatprep.subr.bf16.mxu0 %v325_v26  ;;  %v359_v38 = vpack.c.bf16 %v56_v32, %v55_v31  ;;  %v26_v40 = vld [vmem:[%s647_s1 + $0x38] sm:$0xff]  ;;  %v73_v41 = vld [vmem:[%s647_s1 + $0x1b0] sm:$0xff]  ;;  %v43_v46 = vld [vmem:[%s647_s1 + $0xc0] sm:$0xff] }
   0xb   :  { %356 = vmatpush3.bf16.msra.mxu1 %v355_v25  ;;  %v74_v42 = vld [vmem:[%s647_s1 + $0x1b8] sm:$0xff]  ;;  %v57_v44 = vld [vmem:[%s647_s1 + $0x130] sm:$0xff]  ;;  %v44_v47 = vld [vmem:[%s647_s1 + $0xc8] sm:$0xff]  ;;  %v331_v48 = vpack.c.bf16 %v26_v40, %v25_v37 }
   0xc   :  { %358 = vmatprep.subr.bf16.mxu1 %v357_v34  ;;  %v361_v43 = vpack.c.bf16 %v74_v42, %v73_v41  ;;  %v58_v45 = vld [vmem:[%s647_s1 + $0x138] sm:$0xff]  ;;  %v75_v49 = vld [vmem:[%s647_s1 + $0x1c0] sm:$0xff]  ;;  %v76_v50 = vld [vmem:[%s647_s1 + $0x1c8] sm:$0xff]  ;;  %v333_v52 = vpack.c.bf16 %v44_v47, %v43_v46 }
   0xd   :  { %328 = vmatpush3.bf16.msra.mxu0 %v327_v33  ;;  %v363_v51 = vpack.c.bf16 %v58_v45, %v57_v44  ;;  %v27_v53 = vld [vmem:[%s647_s1 + $0x40] sm:$0xff]  ;;  %v28_v54 = vld [vmem:[%s647_s1 + $0x48] sm:$0xff]  ;;  %v365_v56 = vpack.c.bf16 %v76_v50, %v75_v49  ;;  %v45_v58 = vld [vmem:[%s647_s1 + $0xd0] sm:$0xff] }
   0xe   :  { %330 = vmatprep.subr.bf16.mxu0 %v329_v39  ;;  %v59_v55 = vld [vmem:[%s647_s1 + $0x140] sm:$0xff]  ;;  %v60_v57 = vld [vmem:[%s647_s1 + $0x148] sm:$0xff]  ;;  %v46_v59 = vld [vmem:[%s647_s1 + $0xd8] sm:$0xff]  ;;  %v335_v62 = vpack.c.bf16 %v28_v54, %v27_v53 }
   0xf   :  { %360 = vmatpush3.bf16.msra.mxu1 %v359_v38  ;;  %v77_v60 = vld [vmem:[%s647_s1 + $0x1d0] sm:$0xff]  ;;  %v78_v61 = vld [vmem:[%s647_s1 + $0x1d8] sm:$0xff]  ;;  %v367_v63 = vpack.c.bf16 %v60_v57, %v59_v55  ;;  %v337_v0 = vpack.c.bf16 %v46_v59, %v45_v58  ;;  %v47_v6 = vld [vmem:[%s647_s1 + $0xe0] sm:$0xff] }
  0x10   :  { %362 = vmatprep.subr.bf16.mxu1 %v361_v43  ;;  %v29_v1 = vld [vmem:[%s647_s1 + $0x50] sm:$0xff]  ;;  %v30_v2 = vld [vmem:[%s647_s1 + $0x58] sm:$0xff]  ;;  %v369_v4 = vpack.c.bf16 %v78_v61, %v77_v60  ;;  %v48_v7 = vld [vmem:[%s647_s1 + $0xe8] sm:$0xff] }
  0x11   :  { %332 = vmatpush3.bf16.msra.mxu0 %v331_v48  ;;  %v61_v3 = vld [vmem:[%s647_s1 + $0x150] sm:$0xff]  ;;  %v62_v5 = vld [vmem:[%s647_s1 + $0x158] sm:$0xff]  ;;  %v79_v8 = vld [vmem:[%s647_s1 + $0x1e0] sm:$0xff]  ;;  %v339_v10 = vpack.c.bf16 %v30_v2, %v29_v1  ;;  %v341_v15 = vpack.c.bf16 %v48_v7, %v47_v6 }
  0x12   :  { %334 = vmatprep.subr.bf16.mxu0 %v333_v52  ;;  %v80_v9 = vld [vmem:[%s647_s1 + $0x1e8] sm:$0xff]  ;;  %v31_v11 = vld [vmem:[%s647_s1 + $0x60] sm:$0xff]  ;;  %v371_v14 = vpack.c.bf16 %v62_v5, %v61_v3  ;;  %v49_v17 = vld [vmem:[%s647_s1 + $0xf0] sm:$0xff] }
  0x13   :  { %364 = vmatpush3.bf16.msra.mxu1 %v363_v51  ;;  %v32_v12 = vld [vmem:[%s647_s1 + $0x68] sm:$0xff]  ;;  %v63_v13 = vld [vmem:[%s647_s1 + $0x160] sm:$0xff]  ;;  %v373_v19 = vpack.c.bf16 %v80_v9, %v79_v8  ;;  %v50_v20 = vld [vmem:[%s647_s1 + $0xf8] sm:$0xff] }
  0x14   :  { %366 = vmatprep.subr.bf16.mxu1 %v365_v56  ;;  %v64_v16 = vld [vmem:[%s647_s1 + $0x168] sm:$0xff]  ;;  %v18_v21 = vld [vmem:[%s646_s0 + $0x18] sm:$0xff] }
  0x15   :  { %336 = vmatpush3.bf16.msra.mxu0 %v335_v62  ;;  %v16_v18 = vld [vmem:[%s646_s0 + $0x8] sm:$0xff] }
  0x16   :  { %338 = vmatprep.subr.bf16.mxu0 %v337_v0  ;;  %154 = vmatprep.mubr.f32.mxu0 %v16_v18 }
  0x17   :  { %368 = vmatpush3.bf16.msra.mxu1 %v367_v63 }
  0x18   :  { %370 = vmatprep.subr.bf16.mxu1 %v369_v4 }
  0x19   :  { %8 = vsyncpa [#allocation3], 0  ;;  %v81_v22 = vld [vmem:[%s647_s1 + $0x1f0] sm:$0xff]  ;;  %v82_v23 = vld [vmem:[%s647_s1 + $0x1f8] sm:$0xff]  ;;  %224 = vmatprep.mubr.f32.mxu1 %v18_v21  ;;  %340 = vmatpush3.bf16.msra.mxu0 %v339_v10  ;;  %v343_v24 = vpack.c.bf16 %v32_v12, %v31_v11  ;;  %v375_v25 = vpack.c.bf16 %v64_v16, %v63_v13  ;;  %v345_v26 = vpack.c.bf16 %v50_v20, %v49_v17  ;;  %s406_s14 = smov [#allocation2]   ;;  %vm230_vm0 = vcmask 261120  }
  0x1a   :  { %342 = vmatprep.subr.bf16.mxu0 %v341_v15  ;;  %v33_v27 = vld [vmem:[%s647_s1 + $0x70] sm:$0xff]  ;;  %v34_v28 = vld [vmem:[%s647_s1 + $0x78] sm:$0xff]  ;;  %v377_v29 = vpack.c.bf16 %v82_v23, %v81_v22  ;;  %v15_v34 = vld [vmem:[%s646_s0] sm:$0xff]  ;;  %s238_s15 = sshll.u32 %s406_s14, 4  ;;  %s239_s15 = int_to_ptr.vmem [resolvable:$true] %s238_s15 }
  0x1b   :  { %372 = vmatpush3.bf16.msra.mxu1 %v371_v14  ;;  %v65_v30 = vld [vmem:[%s647_s1 + $0x170] sm:$0xff]  ;;  %v66_v31 = vld [vmem:[%s647_s1 + $0x178] sm:$0xff]  ;;  %v347_v32 = vpack.c.bf16 %v34_v28, %v33_v27  ;;  %v246_v37 = vld [vmem:[%s648_s2] ss:$0 sm:$0xff]  ;;  %p387_p1 = scmp.lt.s32.totalorder %s239_s15, %s239_s15 }
  0x1c   :  { %374 = vmatprep.subr.bf16.mxu1 %v373_v19  ;;  %v379_v33 = vpack.c.bf16 %v66_v31, %v65_v30  ;;  %v17_v35 = vld [vmem:[%s646_s0 + $0x10] sm:$0xff]  ;;  %s382_s0 = scalar_lea.vmem %s239_s15, 128 }
  0x1d   :  { %344 = vmatpush3.bf16.msra.mxu0 %v343_v24  ;;  %p383_p0 = scmp.ne.s32.totalorder %s239_s15, %s382_s0  ;;  %p388_p2 = scmp.lt.s32.totalorder %s382_s0, %s382_s0 }
  0x1e   :  { %346 = vmatprep.subr.bf16.mxu0 %v345_v26 }
  0x1f   :  { %376 = vmatpush3.bf16.msra.mxu1 %v375_v25  ;;  %p389_p3 = por %p388_p2, %p387_p1 }
  0x20   :  { %378 = vmatprep.subr.bf16.mxu1 %v377_v29 }
  0x21   :  { %348 = vmatpush3.bf16.msra.mxu0 %v347_v32  ;;  %p390_p4 = pnand %p389_p3, %p383_p0 }
  0x23   :  { %380 = vmatpush3.bf16.msra.mxu1 %v379_v33 }
  0x24   :  { %155 = vmatmul.mubr.f32.vlgmr.msra.gmra.mrb[0].mxu0 %v15_v34 }
  0x26   :  { %225 = vmatmul.mubr.f32.vlgmr.msra.gmra.mrb[0].mxu1 %v17_v35 }
  0xf7   :  { %v279_v36 = vpop.f32.mrb[0].mxu0 }
  0xf8   :  { %v280_v38 = vpop.f32.mrb[1].mxu0 }
  0xf9   :  { %v314_v39 = vpop.f32.mrb[0].mxu1  ;;  %v281_v40 = vadd.f32 %v280_v38, %v279_v36 }
  0xfa   :  { %v315_v41 = vpop.f32.mrb[1].mxu1 }
  0xfb   :  { %v316_v42 = vadd.f32 %v315_v41, %v314_v39  ;;  %v157_v43 = vadd.f32 %v281_v40, %v246_v37 }
  0xfd   :  { %v227_v44 = vadd.f32 %v316_v42, %v157_v43 }
  0xff   :  { %231 = vst.msk [vmem:[#allocation2] sm:$0xff] %vm230_vm0, %v227_v44 }
 0x100   :  { %393 = shalt.err (!%p390_p4)
}
 0x101   :  { %s394_s17 = scalar_lea.hbm %s649_s3, 128 }
 0x102   :  { %p395_p5 = scmp.ne.s32.totalorder %s649_s3, %s394_s17  ;;  %p398_p6 = scmp.lt.u32.totalorder %s394_s17, %s649_s3 }
 0x104   :  { %p400_p7 = pnand %p398_p6, %p395_p5 }
 0x106   :  { %403 = shalt.err (!%p400_p7)
}
 0x107   :  { %241 = dma.vmem_to_hbm [thread:$0]  %s239_s15, 128, %s649_s3, [#allocation3]  }
 0x108   :  { %404 = dma.done.wait [#allocation3], 128  }
 0x109   :  { %405 = vsyncadd [#allocation3], 4294967168 }
 0x10a   :  { %245 = vsyncpa [#allocation3], 1 }

// kernel: fwd.4
= control target key start
LH: loop header
LB: loop body
LE: loop exit
PB: predicated region body
PF: predicated region fallthrough
CT: control target
= control target key end

     0   :  { %s1620_s29 = smov 0   ;;  %s2022_s0 = inlined_call_operand.vmem [shape: f32[2,8,8,64], index: 0, kind: input, shape index: {}]   ;;  %s2023_s1 = inlined_call_operand.vmem [shape: f32[3,3,64], index: 1, kind: input, shape index: {}]   ;;  %s2024_s2 = inlined_call_operand.vmem [shape: f32[1,64], index: 2, kind: input, shape index: {}]   ;;  %s2025_s3 = inlined_call_operand.vmem [shape: f32[1,64], index: 3, kind: input, shape index: {}]   ;;  %s2026_s4 = inlined_call_operand.vmem [shape: f32[1,64], index: 4, kind: input, shape index: {}]   ;;  %s2027_s5 = inlined_call_operand.vmem [shape: f32[1,64], index: 5, kind: input, shape index: {}]   ;;  %s2028_s6 = inlined_call_operand.vmem [shape: f32[64,128], index: 6, kind: input, shape index: {}]   ;;  %s2029_s7 = inlined_call_operand.vmem [shape: f32[1,128], index: 7, kind: input, shape index: {}]   ;;  %s2030_s8 = inlined_call_operand.vmem [shape: f32[1,128], index: 8, kind: input, shape index: {}]   ;;  %s2031_s9 = inlined_call_operand.vmem [shape: f32[1,64], index: 9, kind: input, shape index: {}]   ;;  %s2032_s10 = inlined_call_operand.vmem [shape: f32[1,64], index: 10, kind: input, shape index: {}]   ;;  %s2033_s11 = inlined_call_operand.vmem [shape: f32[64,128], index: 11, kind: input, shape index: {}]   ;;  %s2034_s12 = inlined_call_operand.vmem [shape: f32[1,128], index: 12, kind: input, shape index: {}]   ;;  %s2035_s13 = inlined_call_operand.vmem [shape: f32[2,8,8,1], index: 13, kind: input, shape index: {}]   ;;  %s2036_s14 = inlined_call_operand.vmem [shape: f32[2,8,8,128], index: 14, kind: output, shape index: {}]  }
   0x1 LB: > { %s1347_s30 = sadd.s32 4294967295, %s1541_s29   ;;  %p1351_p0 = scmp.ge.s32.totalorder %s1541_s29, 1  ;;  %s1541_s29 = sphi %s1620_s29, %s24_s29  }
   0x2   : > { %p422_p1 = scmp.lt.s32.totalorder %s1541_s29, 3 }
   0x4   : > { %p423_p2 = pnand %p1351_p0, %p422_p1 }
   0x5   : > { %v851_v0 = vld [vmem:[%s2028_s6] sm:$0xff] (!%p423_p2)  ;;  %v852_v1 = vld [vmem:[%s2028_s6 + $0x8] sm:$0xff] (!%p423_p2)  ;;  %p1639_p3 = scmp.lt.s32.totalorder (!%p423_p2), %s1347_s30, 1  ;;  %vm488_vm0 = vcmask (!%p423_p2), 523264   ;;  %v853_v5 = vld [vmem:[%s2028_s6 + $0x10] sm:$0xff] (!%p423_p2)  ;;  %v1543_v7 = vmov (!%p423_p2), 0.0  }
   0x6   : > { %426 = sbr.rel (%p423_p2) target bundleno = 302 (0x12e), region = 76  ;;  %v1064_v2 = vld [vmem:[%s2033_s11] sm:$0xff] (!%p423_p2)  ;;  %v1491_v3 = vpack.c.bf16 (!%p423_p2), %v852_v1, %v851_v0  ;;  %v1065_v4 = vld [vmem:[%s2033_s11 + $0x8] sm:$0xff] (!%p423_p2)  ;;  %v854_v6 = vld [vmem:[%s2028_s6 + $0x18] sm:$0xff] (!%p423_p2)  ;;  %489 = vst.msk [vmem:[#allocation2] sm:$0xff] (!%p423_p2), %vm488_vm0, %v1543_v7  ;;  %vm490_vm1 = vcmask (!%p423_p2), 517120  }
   0x7   : > { %492 = vst.msk [vmem:[#allocation2 + $0x10] sm:$0xff] (!%p423_p2), %vm488_vm0, %v1543_v7  ;;  %494 = vst.msk [vmem:[#allocation2 + $0x20] sm:$0xff] (!%p423_p2), %vm488_vm0, %v1543_v7  ;;  %v1507_v8 = vpack.c.bf16 (!%p423_p2), %v1065_v4, %v1064_v2  ;;  %v1495_v9 = vpack.c.bf16 (!%p423_p2), %v854_v6, %v853_v5  ;;  %v1066_v10 = vld [vmem:[%s2033_s11 + $0x10] sm:$0xff] (!%p423_p2)  ;;  %v1067_v11 = vld [vmem:[%s2033_s11 + $0x18] sm:$0xff] (!%p423_p2)  ;;  %v1544_v13 = vmov (!%p423_p2), 0  }
   0x8   : > { %496 = vst.msk [vmem:[#allocation2 + $0x30] sm:$0xff] (!%p423_p2), %vm488_vm0, %v1543_v7  ;;  %498 = vst.msk [vmem:[#allocation2 + $0x40] sm:$0xff] (!%p423_p2), %vm488_vm0, %v1543_v7  ;;  %v855_v12 = vld [vmem:[%s2028_s6 + $0x20] sm:$0xff] (!%p423_p2)  ;;  %1534 = vset.pattern.permute.xlu1 (!%p423_p2), %v1544_v13  ;;  %1533 = vset.pattern.permute.xlu0 (!%p423_p2), %v1544_v13  ;;  %v1511_v14 = vpack.c.bf16 (!%p423_p2), %v1067_v11, %v1066_v10  ;;  %v856_v15 = vld [vmem:[%s2028_s6 + $0x28] sm:$0xff] (!%p423_p2) }
   0x9   : > { %500 = vst.msk [vmem:[#allocation2 + $0x50] sm:$0xff] (!%p423_p2), %vm488_vm0, %v1543_v7  ;;  %502 = vst.msk [vmem:[#allocation2 + $0x60] sm:$0xff] (!%p423_p2), %vm488_vm0, %v1543_v7  ;;  %1492 = vmatprep.subr.bf16.mxu0 (!%p423_p2), %v1491_v3  ;;  %v1068_v16 = vld [vmem:[%s2033_s11 + $0x20] sm:$0xff] (!%p423_p2)  ;;  %v1069_v17 = vld [vmem:[%s2033_s11 + $0x28] sm:$0xff] (!%p423_p2)  ;;  %1508 = vmatprep.subr.bf16.mxu1 (!%p423_p2), %v1507_v8  ;;  %v1499_v19 = vpack.c.bf16 (!%p423_p2), %v856_v15, %v855_v12 }
   0xa   : > { %504 = vst.msk [vmem:[#allocation2 + $0x70] sm:$0xff] (!%p423_p2), %vm488_vm0, %v1543_v7  ;;  %506 = vst.msk [vmem:[#allocation2 + $0x80] sm:$0xff] (!%p423_p2), %vm488_vm0, %v1543_v7  ;;  %1494 = vmatpush3.bf16.msra.mxu0 (!%p423_p2), %v1491_v3  ;;  %v1699_v18 = vld [vmem:[%s2024_s2] ss:$0 sm:$0xff] (!%p423_p2)  ;;  %1510 = vmatpush3.bf16.msra.mxu1 (!%p423_p2), %v1507_v8  ;;  %v857_v20 = vld [vmem:[%s2028_s6 + $0x30] sm:$0xff] (!%p423_p2)  ;;  %v1515_v23 = vpack.c.bf16 (!%p423_p2), %v1069_v17, %v1068_v16 }
   0xb   : > { %508 = vst.msk [vmem:[#allocation2 + $0x90] sm:$0xff] (!%p423_p2), %vm488_vm0, %v1543_v7  ;;  %1496 = vmatprep.subr.bf16.mxu0 (!%p423_p2), %v1495_v9  ;;  %v858_v21 = vld [vmem:[%s2028_s6 + $0x38] sm:$0xff] (!%p423_p2)  ;;  %v1716_v22 = vld [vmem:[%s2025_s3] ss:$0 sm:$0xff] (!%p423_p2)  ;;  %1512 = vmatprep.subr.bf16.mxu1 (!%p423_p2), %v1511_v14  ;;  %v1730_v29 = vld [vmem:[%s2023_s1 + $0x1] ss:$0 sm:$0xff] (!%p423_p2) }
   0xc   : > { %491 = vst.msk [vmem:[#allocation2 + $0x8] sm:$0x3] (!%p423_p2), %vm490_vm1, %v1543_v7  ;;  %493 = vst.msk [vmem:[#allocation2 + $0x18] sm:$0x3] (!%p423_p2), %vm490_vm1, %v1543_v7  ;;  %v1723_v26 = vld [vmem:[%s2023_s1] ss:$0 sm:$0xff] (!%p423_p2)  ;;  %v1503_v30 = vpack.c.bf16 (!%p423_p2), %v858_v21, %v857_v20 }
   0xd   : > { %s2039_s30 = smov (!%p1639_p3, %s1347_s30), 1  ;;  %495 = vst.msk [vmem:[#allocation2 + $0x28] sm:$0x3] %vm490_vm1, %v1543_v7  ;;  %497 = vst.msk [vmem:[#allocation2 + $0x38] sm:$0x3] %vm490_vm1, %v1543_v7  ;;  %v557_v31 = vld [vmem:[#allocation2] sm:$0xff] }
   0xe   : > { %499 = vst.msk [vmem:[#allocation2 + $0x48] sm:$0x3] %vm490_vm1, %v1543_v7  ;;  %501 = vst.msk [vmem:[#allocation2 + $0x58] sm:$0x3] %vm490_vm1, %v1543_v7  ;;  %s1694_s26 = sshll.u32 %s2039_s30, 6  ;;  %1498 = vmatpush3.bf16.msra.mxu0 %v1495_v9  ;;  %1514 = vmatpush3.bf16.msra.mxu1 %v1511_v14  ;;  %v570_v35 = vmul.f32 %v1723_v26, %v557_v31  ;;  %v1070_v39 = vld [vmem:[%s2033_s11 + $0x30] sm:$0xff] }
   0xf   : > { %503 = vst.msk [vmem:[#allocation2 + $0x68] sm:$0x3] %vm490_vm1, %v1543_v7  ;;  %505 = vst.msk [vmem:[#allocation2 + $0x78] sm:$0x3] %vm490_vm1, %v1543_v7  ;;  %s1711_s20 = scalar_lea.vmem %s2022_s0, %s1694_s26  ;;  %v1735_v32 = vld [vmem:[%s2023_s1 + $0x2] ss:$0 sm:$0xff]  ;;  %1500 = vmatprep.subr.bf16.mxu0 %v1499_v19  ;;  %1516 = vmatprep.subr.bf16.mxu1 %v1515_v23  ;;  %s1769_s27 = scalar_lea.vmem %s2035_s13, %s1694_s26 }
  0x10   : > { %507 = vst.msk [vmem:[#allocation2 + $0x88] sm:$0x3] %vm490_vm1, %v1543_v7  ;;  %509 = vst.msk [vmem:[#allocation2 + $0x98] sm:$0x3] %vm490_vm1, %v1543_v7  ;;  %v510_v24 = vld [vmem:[%s1711_s20] sm:$0xff]  ;;  %v511_v25 = vld [vmem:[%s1711_s20 + $0x8] sm:$0xff]  ;;  %s1991_s23 = scalar_lea.vmem %s2036_s14, %s1694_s26 }
  0x11   : > { %v525_v27 = vmul.f32 %v1699_v18, %v510_v24  ;;  %v526_v28 = vmul.f32 %v1699_v18, %v511_v25  ;;  %v1071_v41 = vld [vmem:[%s2033_s11 + $0x38] sm:$0xff]  ;;  %v512_v42 = vld [vmem:[%s1711_s20 + $0x10] sm:$0xff]  ;;  %v1754_v43 = vld [vmem:[%s2031_s9] ss:$0 sm:$0xff] }
  0x12   : > { %1502 = vmatpush3.bf16.msra.mxu0 %v1499_v19  ;;  %v1519_v45 = vpack.c.bf16 %v1071_v41, %v1070_v39  ;;  %v527_v46 = vmul.f32 %v1699_v18, %v512_v42  ;;  %v1041_v47 = vmul.f32 %v1754_v43, %v510_v24  ;;  %v1761_v48 = vld [vmem:[%s2032_s10] ss:$0 sm:$0xff]  ;;  %v513_v49 = vld [vmem:[%s1711_s20 + $0x18] sm:$0xff]  ;;  %1518 = vmatpush3.bf16.msra.mxu1 %v1515_v23  ;;  %v515_v54 = vld [vmem:[%s1711_s20 + $0x28] sm:$0xff] }
  0x13   : > { %v540_v33 = vadd.f32 %v1716_v22, %v525_v27  ;;  %v541_v34 = vadd.f32 %v1716_v22, %v526_v28  ;;  %v586_v36 = vld [vmem:[#allocation2 + $0x1] sm:$0xff]  ;;  %1504 = vmatprep.subr.bf16.mxu0 %v1503_v30  ;;  %v528_v51 = vmul.f32 %v1699_v18, %v513_v49  ;;  %v1042_v52 = vmul.f32 %v1754_v43, %v511_v25  ;;  %v1776_v55 = vld [vmem:[%s1711_s20 + $0x30] sm:$0xff]  ;;  %v1802_v4 = vld [vmem:[%s1711_s20 + $0x38] sm:$0xff] }
  0x14   : > { %v615_v37 = vld [vmem:[#allocation2 + $0x2] sm:$0xff]  ;;  %v599_v38 = vmul.f32 %v1730_v29, %v586_v36  ;;  %1520 = vmatprep.subr.bf16.mxu1 %v1519_v45  ;;  %v542_v56 = vadd.f32 %v1716_v22, %v527_v46  ;;  %v1056_v57 = vadd.f32 %v1761_v48, %v1041_v47  ;;  %v1043_v58 = vmul.f32 %v1754_v43, %v512_v42  ;;  %v1218_v63 = vld [vmem:[%s1769_s27 + $0x10] sm:$0xff]  ;;  %v1219_v24 = vld [vmem:[%s1769_s27 + $0x18] sm:$0xff] }
  0x15   : > { %549 = vst.msk [vmem:[#allocation2 + $0x12] sm:$0xff] %vm488_vm0, %v540_v33  ;;  %550 = vst.msk [vmem:[#allocation2 + $0x22] sm:$0xff] %vm488_vm0, %v541_v34  ;;  %v628_v40 = vmul.f32 %v1735_v32, %v615_v37  ;;  %v514_v50 = vld [vmem:[%s1711_s20 + $0x20] sm:$0xff]  ;;  %v543_v60 = vadd.f32 %v1716_v22, %v528_v51  ;;  %v530_v62 = vmul.f32 %v1699_v18, %v515_v54  ;;  %v1813_v8 = vld [vmem:[%s2023_s1 + $0x8] ss:$0 sm:$0xff]  ;;  %1236 = vperm.xlu1 %1534, %v1218_v63  }
  0x16   : > { %v607_v44 = vadd.f32 %v599_v38, %v570_v35  ;;  %v529_v53 = vmul.f32 %v1699_v18, %v514_v50  ;;  %v1784_v59 = vld [vmem:[%s2023_s1 + $0x4] ss:$0 sm:$0xff]  ;;  %1506 = vmatpush3.bf16.msra.mxu0 %v1503_v30  ;;  %v1793_v0 = vld [vmem:[%s2023_s1 + $0x5] ss:$0 sm:$0xff]  ;;  %551 = vst.msk [vmem:[#allocation2 + $0x32] sm:$0xff] %vm488_vm0, %v542_v56  ;;  %1479 = vmatprep.mubr.msk.f32.mxu1 %vm488_vm0, %v1056_v57  ;;  %v1217_v31 = vld [vmem:[%s1769_s27 + $0x8] sm:$0xff] }
  0x17   : > { %v1057_v1 = vadd.f32 %v1761_v48, %v1042_v52  ;;  %v1044_v2 = vmul.f32 %v1754_v43, %v513_v49  ;;  %v531_v3 = vmul.f32 %v1699_v18, %v1776_v55  ;;  %v1216_v5 = vld [vmem:[%s1769_s27] sm:$0xff]  ;;  %1522 = vmatpush3.bf16.msra.mxu1 %v1519_v45  ;;  %552 = vst.msk [vmem:[#allocation2 + $0x42] sm:$0xff] %vm488_vm0, %v543_v60  ;;  %v1841_v35 = vld [vmem:[%s2023_s1 + $0x9] ss:$0 sm:$0xff]  ;;  %v1846_v36 = vld [vmem:[%s2023_s1 + $0xa] ss:$0 sm:$0xff] }
  0x18   : > { %v544_v61 = vadd.f32 %v1716_v22, %v529_v53  ;;  %v636_v6 = vadd.f32 %v628_v40, %v607_v44  ;;  %v1808_v7 = vld [vmem:[%s2023_s1 + $0x6] ss:$0 sm:$0xff]  ;;  %v1058_v9 = vadd.f32 %v1761_v48, %v1043_v58  ;;  %v545_v10 = vadd.f32 %v1716_v22, %v530_v62  ;;  %1226 = vperm.xlu0 %1533, %v1216_v5   ;;  %v1221_v47 = vld [vmem:[%s1769_s27 + $0x28] sm:$0xff] }
  0x19   : > { %v546_v14 = vadd.f32 %v1716_v22, %v531_v3  ;;  %v1045_v15 = vmul.f32 %v1754_v43, %v514_v50  ;;  %v532_v23 = vmul.f32 %v1699_v18, %v1802_v4  ;;  %v1059_v28 = vadd.f32 %v1761_v48, %v1044_v2  ;;  %1241 = vperm.xlu1 %1534, %v1219_v24  }
  0x1a   : > { %553 = vst.msk [vmem:[#allocation2 + $0x52] sm:$0xff] %vm488_vm0, %v544_v61  ;;  %554 = vst.msk [vmem:[#allocation2 + $0x62] sm:$0xff] %vm488_vm0, %v545_v10  ;;  %1480 = vmatmul.mubr.msk.f32.vlgmr.msra.gmra.mrb[0].mxu1 %vm488_vm0, %v1057_v1  ;;  %v1833_v30 = vmul.f32 %v1754_v43, %v515_v54  ;;  %v1220_v54 = vld [vmem:[%s1769_s27 + $0x20] sm:$0xff] }
  0x1b   : > { %555 = vst.msk [vmem:[#allocation2 + $0x72] sm:$0xff] %vm488_vm0, %v546_v14  ;;  %1482 = vmatprep.mubr.msk.f32.mxu1 %vm488_vm0, %v1058_v9  ;;  %v1060_v45 = vadd.f32 %v1761_v48, %v1045_v15  ;;  %v547_v46 = vadd.f32 %v1716_v22, %v532_v23 }
  0x1c   : > { %v644_v11 = vld [vmem:[#allocation2 + $0x10] sm:$0xff]  ;;  %v733_v19 = vld [vmem:[#allocation2 + $0x20] sm:$0xff]  ;;  %1231 = vperm.xlu0 %1533, %v1217_v31  }
  0x1d   : > { %v674_v12 = vld [vmem:[#allocation2 + $0x11] sm:$0xff]  ;;  %v658_v16 = vmul.f32 %v1784_v59, %v644_v11  ;;  %v763_v20 = vld [vmem:[#allocation2 + $0x21] sm:$0xff]  ;;  %v571_v21 = vmul.f32 %v1723_v26, %v644_v11  ;;  %v747_v18 = vmul.f32 %v1813_v8, %v733_v19  ;;  %v659_v39 = vmul.f32 %v1784_v59, %v733_v19  ;;  %556 = vst.msk [vmem:[#allocation2 + $0x82] sm:$0xff] %vm488_vm0, %v547_v46 }
  0x1e   : > { %v703_v13 = vld [vmem:[#allocation2 + $0x12] sm:$0xff]  ;;  %v687_v17 = vmul.f32 %v1793_v0, %v674_v12  ;;  %v792_v25 = vld [vmem:[#allocation2 + $0x22] sm:$0xff]  ;;  %v600_v27 = vmul.f32 %v1730_v29, %v674_v12  ;;  %v572_v40 = vmul.f32 %v1723_v26, %v733_v19  ;;  %v601_v41 = vmul.f32 %v1730_v29, %v763_v20  ;;  %1483 = vmatmul.mubr.msk.f32.gmra.mrb[2].mxu1 %vm488_vm0, %v1059_v28 }
  0x1f   : > { %v666_v33 = vadd.f32 %v658_v16, %v636_v6  ;;  %v716_v34 = vmul.f32 %v1808_v7, %v703_v13  ;;  %v629_v37 = vmul.f32 %v1735_v32, %v703_v13  ;;  %v630_v44 = vmul.f32 %v1735_v32, %v792_v25  ;;  %v734_v53 = vld [vmem:[#allocation2 + $0x30] sm:$0xff]  ;;  %1485 = vmatprep.mubr.msk.f32.mxu1 %vm488_vm0, %v1060_v45  ;;  %v735_v9 = vld [vmem:[#allocation2 + $0x40] sm:$0xff]  ;;  %v1223_v11 = vld [vmem:[%s1769_s27 + $0x38] sm:$0xff] }
  0x20   : > { %v608_v38 = vadd.f32 %v600_v27, %v571_v21  ;;  %v776_v49 = vmul.f32 %v1841_v35, %v763_v20  ;;  %v805_v50 = vmul.f32 %v1846_v36, %v792_v25  ;;  %v688_v52 = vmul.f32 %v1793_v0, %v763_v20  ;;  %v764_v58 = vld [vmem:[#allocation2 + $0x31] sm:$0xff]  ;;  %1251 = vperm.xlu1 %1534, %v1221_v47   ;;  %v765_v14 = vld [vmem:[#allocation2 + $0x41] sm:$0xff] }
  0x21   : > { %v695_v42 = vadd.f32 %v687_v17, %v666_v33  ;;  %v717_v57 = vmul.f32 %v1808_v7, %v792_v25  ;;  %v793_v60 = vld [vmem:[#allocation2 + $0x32] sm:$0xff]  ;;  %v609_v22 = vadd.f32 %v601_v41, %v572_v40  ;;  %v660_v61 = vmul.f32 %v1784_v59, %v734_v53  ;;  %1246 = vperm.xlu0 %1533, %v1220_v54   ;;  %v794_v24 = vld [vmem:[#allocation2 + $0x42] sm:$0xff]  ;;  %v1881_v25 = vld [vmem:[%s2026_s4] ss:$0 sm:$0xff] }
  0x22   : > { %v637_v51 = vadd.f32 %v629_v37, %v608_v38  ;;  %v748_v63 = vmul.f32 %v1813_v8, %v734_v53  ;;  %v777_v1 = vmul.f32 %v1841_v35, %v764_v58  ;;  %v806_v2 = vmul.f32 %v1846_v36, %v793_v60  ;;  %v1222_v17 = vld [vmem:[%s1769_s27 + $0x30] sm:$0xff] }
  0x23   : > { %v724_v56 = vadd.f32 %v716_v34, %v695_v42  ;;  %v638_v5 = vadd.f32 %v630_v44, %v609_v22  ;;  %v689_v6 = vmul.f32 %v1793_v0, %v764_v58  ;;  %v573_v10 = vmul.f32 %v1723_v26, %v734_v53  ;;  %v736_v42 = vld [vmem:[#allocation2 + $0x50] sm:$0xff] }
  0x24   : > { %v667_v62 = vadd.f32 %v659_v39, %v637_v51  ;;  %v718_v13 = vmul.f32 %v1808_v7, %v793_v60  ;;  %v602_v15 = vmul.f32 %v1730_v29, %v764_v58  ;;  %v631_v16 = vmul.f32 %v1735_v32, %v793_v60  ;;  %1261 = vperm.xlu1 %1534, %v1223_v11   ;;  %v1890_v39 = vld [vmem:[%s2027_s5] ss:$0 sm:$0xff]  ;;  %v766_v53 = vld [vmem:[#allocation2 + $0x51] sm:$0xff] }
  0x25   : > { %v755_v3 = vadd.f32 %v747_v18, %v724_v56  ;;  %v668_v20 = vadd.f32 %v660_v61, %v638_v5  ;;  %v749_v21 = vmul.f32 %v1813_v8, %v735_v9  ;;  %v778_v23 = vmul.f32 %v1841_v35, %v765_v14  ;;  %1256 = vperm.xlu0 %1533, %v1222_v17   ;;  %v795_v54 = vld [vmem:[#allocation2 + $0x52] sm:$0xff]  ;;  %v767_v17 = vld [vmem:[#allocation2 + $0x61] sm:$0xff] }
  0x26   : > { %v696_v12 = vadd.f32 %v688_v52, %v667_v62  ;;  %v807_v28 = vmul.f32 %v1846_v36, %v794_v24  ;;  %v610_v31 = vadd.f32 %v602_v15, %v573_v10  ;;  %v661_v33 = vmul.f32 %v1784_v59, %v735_v9 }
  0x27   : > { %v784_v19 = vadd.f32 %v776_v49, %v755_v3  ;;  %v697_v18 = vadd.f32 %v689_v6, %v668_v20  ;;  %v690_v37 = vmul.f32 %v1793_v0, %v765_v14  ;;  %v574_v38 = vmul.f32 %v1723_v26, %v735_v9  ;;  %v737_v6 = vld [vmem:[#allocation2 + $0x60] sm:$0xff] }
  0x28   : > { %v725_v27 = vadd.f32 %v717_v57, %v696_v12  ;;  %v639_v41 = vadd.f32 %v631_v16, %v610_v31  ;;  %v603_v44 = vmul.f32 %v1730_v29, %v765_v14  ;;  %v632_v45 = vmul.f32 %v1735_v32, %v794_v24  ;;  %v796_v31 = vld [vmem:[#allocation2 + $0x62] sm:$0xff] }
  0x29   : > { %v813_v34 = vadd.f32 %v805_v50, %v784_v19  ;;  %v726_v47 = vadd.f32 %v718_v13, %v697_v18  ;;  %v719_v49 = vmul.f32 %v1808_v7, %v794_v24  ;;  %v750_v50 = vmul.f32 %v1813_v8, %v736_v42 }
  0x2a   : > { %v756_v40 = vadd.f32 %v748_v63, %v725_v27  ;;  %v669_v52 = vadd.f32 %v661_v33, %v639_v41  ;;  %v611_v56 = vadd.f32 %v603_v44, %v574_v38  ;;  %v662_v57 = vmul.f32 %v1784_v59, %v736_v42 }
  0x2b   : > { %v828_v46 = vmul.f32 %v1881_v25, %v813_v34  ;;  %v757_v60 = vadd.f32 %v749_v21, %v726_v47  ;;  %v779_v22 = vmul.f32 %v1841_v35, %v766_v53  ;;  %v808_v61 = vmul.f32 %v1846_v36, %v795_v54 }
  0x2c   : > { %v785_v51 = vadd.f32 %v777_v1, %v756_v40  ;;  %v698_v63 = vadd.f32 %v690_v37, %v669_v52  ;;  %v640_v3 = vadd.f32 %v632_v45, %v611_v56  ;;  %v691_v5 = vmul.f32 %v1793_v0, %v766_v53 }
  0x2d   : > { %v843_v58 = vadd.f32 %v1890_v39, %v828_v46  ;;  %v786_v1 = vadd.f32 %v778_v23, %v757_v60  ;;  %v575_v9 = vmul.f32 %v1723_v26, %v736_v42  ;;  %v604_v10 = vmul.f32 %v1730_v29, %v766_v53  ;;  %v738_v46 = vld [vmem:[#allocation2 + $0x70] sm:$0xff] }
  0x2e   : > { %v814_v62 = vadd.f32 %v806_v2, %v785_v51  ;;  %v633_v11 = vmul.f32 %v1735_v32, %v795_v54  ;;  %v727_v13 = vadd.f32 %v719_v49, %v698_v63  ;;  %v670_v14 = vadd.f32 %v662_v57, %v640_v3  ;;  %v768_v51 = vld [vmem:[#allocation2 + $0x71] sm:$0xff]  ;;  %v739_v3 = vld [vmem:[#allocation2 + $0x80] sm:$0xff] }
  0x2f   : > { %1451 = vmatprep.mubr.msk.f32.mxu0 %vm488_vm0, %v843_v58  ;;  %v720_v2 = vmul.f32 %v1808_v7, %v795_v54  ;;  %v815_v15 = vadd.f32 %v807_v28, %v786_v1  ;;  %v751_v16 = vmul.f32 %v1813_v8, %v737_v6  ;;  %v612_v19 = vadd.f32 %v604_v10, %v575_v9  ;;  %v797_v58 = vld [vmem:[#allocation2 + $0x72] sm:$0xff] }
  0x30   : > { %v829_v12 = vmul.f32 %v1881_v25, %v814_v62  ;;  %v663_v20 = vmul.f32 %v1784_v59, %v737_v6  ;;  %v758_v23 = vadd.f32 %v750_v50, %v727_v13  ;;  %v699_v24 = vadd.f32 %v691_v5, %v670_v14 }
  0x31   : > { %v780_v27 = vmul.f32 %v1841_v35, %v767_v17  ;;  %v830_v33 = vmul.f32 %v1881_v25, %v815_v15  ;;  %v809_v34 = vmul.f32 %v1846_v36, %v796_v31  ;;  %v641_v18 = vadd.f32 %v633_v11, %v612_v19 }
  0x32   : > { %v844_v21 = vadd.f32 %v1890_v39, %v829_v12  ;;  %v692_v28 = vmul.f32 %v1793_v0, %v767_v17  ;;  %v787_v37 = vadd.f32 %v779_v22, %v758_v23  ;;  %v728_v38 = vadd.f32 %v720_v2, %v699_v24 }
  0x33   : > { %v576_v40 = vmul.f32 %v1723_v26, %v737_v6  ;;  %v605_v41 = vmul.f32 %v1730_v29, %v767_v17  ;;  %v845_v42 = vadd.f32 %v1890_v39, %v830_v33  ;;  %v671_v44 = vadd.f32 %v663_v20, %v641_v18  ;;  %v769_v6 = vld [vmem:[#allocation2 + $0x81] sm:$0xff] }
  0x34   : > { %1452 = vmatmul.mubr.msk.f32.vlgmr.msra.gmra.mrb[0].mxu0 %vm488_vm0, %v844_v21  ;;  %v721_v45 = vmul.f32 %v1808_v7, %v796_v31  ;;  %v634_v47 = vmul.f32 %v1735_v32, %v796_v31  ;;  %v816_v49 = vadd.f32 %v808_v61, %v787_v37  ;;  %v759_v50 = vadd.f32 %v751_v16, %v728_v38  ;;  %v798_v16 = vld [vmem:[#allocation2 + $0x82] sm:$0xff] }
  0x35   : > { %v613_v52 = vadd.f32 %v605_v41, %v576_v40  ;;  %v664_v53 = vmul.f32 %v1784_v59, %v738_v46  ;;  %1454 = vmatprep.mubr.msk.f32.mxu0 %vm488_vm0, %v845_v42  ;;  %v700_v54 = vadd.f32 %v692_v28, %v671_v44  ;;  %v752_v56 = vmul.f32 %v1813_v8, %v738_v46  ;;  %v799_v42 = vld [vmem:[#allocation2 + $0x92] sm:$0xff] }
  0x36   : > { %v781_v57 = vmul.f32 %v1841_v35, %v768_v51  ;;  %v693_v60 = vmul.f32 %v1793_v0, %v768_v51  ;;  %v831_v22 = vmul.f32 %v1881_v25, %v816_v49  ;;  %v788_v62 = vadd.f32 %v780_v27, %v759_v50 }
  0x37   : > { %v642_v63 = vadd.f32 %v634_v47, %v613_v52  ;;  %v722_v61 = vmul.f32 %v1808_v7, %v797_v58  ;;  %v729_v5 = vadd.f32 %v721_v45, %v700_v54  ;;  %v1061_v1 = vadd.f32 %v1761_v48, %v1833_v30 }
  0x38   : > { %v577_v9 = vmul.f32 %v1723_v26, %v738_v46  ;;  %v606_v10 = vmul.f32 %v1730_v29, %v768_v51  ;;  %v846_v11 = vadd.f32 %v1890_v39, %v831_v22  ;;  %v817_v12 = vadd.f32 %v809_v34, %v788_v62  ;;  %v740_v34 = vld [vmem:[#allocation2 + $0x90] sm:$0xff]  ;;  %v1974_v22 = vld [vmem:[%s2030_s8] ss:$0 sm:$0xff] }
  0x39   : > { %v672_v13 = vadd.f32 %v664_v53, %v642_v63  ;;  %v635_v14 = vmul.f32 %v1735_v32, %v797_v58  ;;  %v760_v2 = vadd.f32 %v752_v56, %v729_v5  ;;  %v810_v15 = vmul.f32 %v1846_v36, %v797_v58  ;;  %1486 = vmatmul.mubr.msk.f32.gmra.mrb[4].mxu1 %vm488_vm0, %v1061_v1 }
  0x3a   : > { %v614_v17 = vadd.f32 %v606_v10, %v577_v9  ;;  %v665_v19 = vmul.f32 %v1784_v59, %v739_v3  ;;  %1455 = vmatmul.mubr.msk.f32.gmra.mrb[2].mxu0 %vm488_vm0, %v846_v11  ;;  %v832_v26 = vmul.f32 %v1881_v25, %v817_v12  ;;  %v753_v30 = vmul.f32 %v1813_v8, %v739_v3 }
  0x3b   : > { %v701_v29 = vadd.f32 %v693_v60, %v672_v13  ;;  %v694_v20 = vmul.f32 %v1793_v0, %v769_v6  ;;  %v789_v21 = vadd.f32 %v781_v57, %v760_v2  ;;  %v1047_v23 = vmul.f32 %v1754_v43, %v1776_v55 }
  0x3c   : > { %v643_v32 = vadd.f32 %v635_v14, %v614_v17  ;;  %v1048_v24 = vmul.f32 %v1754_v43, %v1802_v4  ;;  %v847_v27 = vadd.f32 %v1890_v39, %v832_v26  ;;  %v782_v31 = vmul.f32 %v1841_v35, %v769_v6  ;;  %v770_v43 = vld [vmem:[#allocation2 + $0x91] sm:$0xff] }
  0x3d   : > { %v730_v59 = vadd.f32 %v722_v61, %v701_v29  ;;  %v723_v33 = vmul.f32 %v1808_v7, %v798_v16  ;;  %v818_v18 = vadd.f32 %v810_v15, %v789_v21  ;;  %v1062_v0 = vadd.f32 %v1761_v48, %v1047_v23 }
  0x3e   : > { %v673_v28 = vadd.f32 %v665_v19, %v643_v32  ;;  %v1063_v37 = vadd.f32 %v1761_v48, %v1048_v24  ;;  %1457 = vmatprep.mubr.msk.f32.mxu0 %vm488_vm0, %v847_v27  ;;  %v811_v38 = vmul.f32 %v1846_v36, %v798_v16  ;;  %v754_v41 = vmul.f32 %v1813_v8, %v740_v34 }
  0x3f   : > { %v761_v55 = vadd.f32 %v753_v30, %v730_v59  ;;  %v833_v4 = vmul.f32 %v1881_v25, %v818_v18  ;;  %1488 = vmatprep.mubr.msk.f32.mxu1 %vm488_vm0, %v1062_v0  ;;  %v783_v45 = vmul.f32 %v1841_v35, %v770_v43  ;;  %v812_v49 = vmul.f32 %v1846_v36, %v799_v42  ;;  %v1969_v36 = vld [vmem:[%s2029_s7] ss:$0 sm:$0xff] }
  0x40   : > { %v702_v40 = vadd.f32 %v694_v20, %v673_v28  ;;  %1489 = vmatmul.mubr.msk.f32.gmra.mrb[6].mxu1 %vm488_vm0, %v1063_v37 }
  0x41   : > { %v790_v7 = vadd.f32 %v782_v31, %v761_v55  ;;  %v848_v44 = vadd.f32 %v1890_v39, %v833_v4 }
  0x42   : > { %v731_v48 = vadd.f32 %v723_v33, %v702_v40 }
  0x43   : > { %v819_v46 = vadd.f32 %v811_v38, %v790_v7  ;;  %1458 = vmatmul.mubr.msk.f32.gmra.mrb[4].mxu0 %vm488_vm0, %v848_v44 }
  0x44   : > { %v762_v47 = vadd.f32 %v754_v41, %v731_v48 }
  0x45   : > { %v834_v50 = vmul.f32 %v1881_v25, %v819_v46 }
  0x46   : > { %v791_v8 = vadd.f32 %v783_v45, %v762_v47 }
  0x47   : > { %v849_v51 = vadd.f32 %v1890_v39, %v834_v50 }
  0x48   : > { %v820_v52 = vadd.f32 %v812_v49, %v791_v8 }
  0x49   : > { %1460 = vmatprep.mubr.msk.f32.mxu0 %vm488_vm0, %v849_v51 }
  0x4a   : > { %v835_v53 = vmul.f32 %v1881_v25, %v820_v52  ;;  %v1979_v25 = vld [vmem:[%s2034_s12] ss:$0 sm:$0xff] }
  0x4c   : > { %v850_v54 = vadd.f32 %v1890_v39, %v835_v53 }
  0x4e   : > { %1461 = vmatmul.mubr.msk.f32.gmra.mrb[6].mxu0 %vm488_vm0, %v850_v54 }
  0x94   : > { %v1237_v26 = vpop.permute.xlu1 %1236 }
  0x97   : > { %v1227_v39 = vpop.permute.xlu0 %1226 }
  0x98   : > { %v1242_v34 = vpop.permute.xlu1 %1241 }
  0x9b   : > { %v1232_v11 = vpop.permute.xlu0 %1231 }
  0x9f   : > { %v1252_v45 = vpop.permute.xlu1 %1251 }
  0xa0   : > { %v1247_v47 = vpop.permute.xlu0 %1246 }
  0xed   : > { %v1481_v35 = vpop.f32.mrb[0].mxu1 }
  0xee   : > { %v1169_v56 = vpop.f32.mrb[1].mxu1  ;;  %v1175_v5 = vadd.f32 %v1481_v35, %v1979_v25 }
  0xef   : > { %v1170_v1 = vadd.f32 %v1979_v25, %v1169_v56 }
  0xf1   : > { %v1484_v57 = vpop.f32.mrb[2].mxu1 }
  0xf2   : > { %v1179_v58 = vpop.f32.mrb[3].mxu1  ;;  %v1185_v21 = vadd.f32 %v1484_v57, %v1979_v25 }
  0xf3   : > { %v1180_v23 = vadd.f32 %v1979_v25, %v1179_v58 }
 0x107   : > { %v1453_v60 = vpop.f32.mrb[0].mxu0 }
 0x108   : > { %v996_v62 = vmul.f32 %v1453_v60, %v1969_v36  ;;  %v949_v63 = vpop.f32.mrb[1].mxu0 }
 0x109   : > { %v995_v61 = vmul.f32 %v1969_v36, %v949_v63 }
 0x10a   : > { %v1011_v3 = vadd.f32 %v1974_v22, %v996_v62  ;;  %v1262_v62 = vpop.permute.xlu1 %1261 }
 0x10b   : > { %v1010_v6 = vadd.f32 %v1974_v22, %v995_v61  ;;  %v1257_v61 = vpop.permute.xlu0 %1256 }
 0x10c   : > { %v1019_v9 = vmax.f32 %v1011_v3, 0.0  ;;  %v1487_v13 = vpop.f32.mrb[4].mxu1 }
 0x10d   : > { %v1018_v10 = vmax.f32 %v1010_v6, 0.0  ;;  %v1456_v14 = vpop.f32.mrb[2].mxu0  ;;  %v1189_v15 = vpop.f32.mrb[5].mxu1  ;;  %v1195_v40 = vadd.f32 %v1487_v13, %v1979_v25 }
 0x10e   : > { %v1209_v12 = vadd.f32 %v1175_v5, %v1019_v9  ;;  %v998_v17 = vmul.f32 %v1456_v14, %v1969_v36  ;;  %v959_v19 = vpop.f32.mrb[3].mxu0  ;;  %v1190_v7 = vadd.f32 %v1979_v25, %v1189_v15 }
 0x10f   : > { %v1208_v2 = vadd.f32 %v1170_v1, %v1018_v10  ;;  %v997_v30 = vmul.f32 %v1969_v36, %v959_v19 }
 0x110   : > { %v1265_v16 = vmul.f32 %v1232_v11, %v1209_v12  ;;  %v1013_v20 = vadd.f32 %v1974_v22, %v998_v17 }
 0x111   : > { %v1264_v29 = vmul.f32 %v1227_v39, %v1208_v2  ;;  %v1012_v32 = vadd.f32 %v1974_v22, %v997_v30 }
 0x112   : > { %1273 = vst [vmem:[%s1991_s23 + $0x8] sm:$0xff] %v1265_v16  ;;  %v1021_v24 = vmax.f32 %v1013_v20, 0.0 }
 0x113   : > { %1272 = vst [vmem:[%s1991_s23] sm:$0xff] %v1264_v29  ;;  %v1020_v27 = vmax.f32 %v1012_v32, 0.0  ;;  %v1490_v59 = vpop.f32.mrb[6].mxu1 }
 0x114   : > { %v1211_v31 = vadd.f32 %v1185_v21, %v1021_v24  ;;  %v1199_v33 = vpop.f32.mrb[7].mxu1  ;;  %v1205_v35 = vadd.f32 %v1490_v59, %v1979_v25 }
 0x115   : > { %v1210_v18 = vadd.f32 %v1180_v23, %v1020_v27  ;;  %v1200_v57 = vadd.f32 %v1979_v25, %v1199_v33 }
 0x116   : > { %v1267_v28 = vmul.f32 %v1242_v34, %v1211_v31  ;;  %v1459_v0 = vpop.f32.mrb[4].mxu0 }
 0x117   : > { %v1000_v37 = vmul.f32 %v1459_v0, %v1969_v36  ;;  %v1266_v55 = vmul.f32 %v1237_v26, %v1210_v18  ;;  %v969_v38 = vpop.f32.mrb[5].mxu0 }
 0x118   : > { %1275 = vst [vmem:[%s1991_s23 + $0x18] sm:$0xff] %v1267_v28  ;;  %v999_v43 = vmul.f32 %v1969_v36, %v969_v38 }
 0x119   : > { %v1015_v4 = vadd.f32 %v1974_v22, %v1000_v37  ;;  %1274 = vst [vmem:[%s1991_s23 + $0x10] sm:$0xff] %v1266_v55 }
 0x11a   : > { %v1014_v41 = vadd.f32 %v1974_v22, %v999_v43 }
 0x11b   : > { %v1023_v42 = vmax.f32 %v1015_v4, 0.0 }
 0x11c   : > { %v1022_v44 = vmax.f32 %v1014_v41, 0.0 }
 0x11d   : > { %v1213_v48 = vadd.f32 %v1195_v40, %v1023_v42 }
 0x11e   : > { %v1212_v46 = vadd.f32 %v1190_v7, %v1022_v44 }
 0x11f   : > { %v1269_v49 = vmul.f32 %v1252_v45, %v1213_v48 }
 0x120   : > { %v1268_v8 = vmul.f32 %v1247_v47, %v1212_v46 }
 0x121   : > { %v1462_v50 = vpop.f32.mrb[6].mxu0  ;;  %1277 = vst [vmem:[%s1991_s23 + $0x28] sm:$0xff] %v1269_v49 }
 0x122   : > { %v1002_v51 = vmul.f32 %v1462_v50, %v1969_v36  ;;  %v979_v52 = vpop.f32.mrb[7].mxu0  ;;  %1276 = vst [vmem:[%s1991_s23 + $0x20] sm:$0xff] %v1268_v8 }
 0x123   : > { %v1001_v53 = vmul.f32 %v1969_v36, %v979_v52 }
 0x124   : > { %v1017_v54 = vadd.f32 %v1974_v22, %v1002_v51 }
 0x125   : > { %v1016_v56 = vadd.f32 %v1974_v22, %v1001_v53 }
 0x126   : > { %v1025_v58 = vmax.f32 %v1017_v54, 0.0 }
 0x127   : > { %v1024_v60 = vmax.f32 %v1016_v56, 0.0 }
 0x128   : > { %v1215_v39 = vadd.f32 %v1205_v35, %v1025_v58 }
 0x129   : > { %v1214_v63 = vadd.f32 %v1200_v57, %v1024_v60 }
 0x12a   : > { %v1271_v3 = vmul.f32 %v1262_v62, %v1215_v39 }
 0x12b   : > { %v1270_v5 = vmul.f32 %v1257_v61, %v1214_v63 }
 0x12c   : > { %1279 = vst [vmem:[%s1991_s23 + $0x38] sm:$0xff] %v1271_v3 }
 0x12d   : > { %1278 = vst [vmem:[%s1991_s23 + $0x30] sm:$0xff] %v1270_v5 }
 0x12e PF: > { %s24_s29 = sadd.s32 1, %s1541_s29  }
 0x12f   : > { %p21_p4 = scmp.ge.s32.totalorder %s24_s29, 4  }
 0x131   :  { %23 = sbr.rel (!%p21_p4) target bundleno = 1 (0x1), region = 113 }

// kernel: fwd.3
= control target key start
LH: loop header
LB: loop body
LE: loop exit
PB: predicated region body
PF: predicated region fallthrough
CT: control target
= control target key end

     0   :  { %s3286_s29 = smov 0   ;;  %s4901_s0 = inlined_call_operand.vmem [shape: f32[2,16,16,8], index: 0, kind: input, shape index: {}]   ;;  %s4902_s1 = inlined_call_operand.vmem [shape: f32[3,3,8], index: 1, kind: input, shape index: {}]   ;;  %s4903_s2 = inlined_call_operand.vmem [shape: f32[1,8], index: 2, kind: input, shape index: {}]   ;;  %s4904_s3 = inlined_call_operand.vmem [shape: f32[1,8], index: 3, kind: input, shape index: {}]   ;;  %s4905_s4 = inlined_call_operand.vmem [shape: f32[1,8], index: 4, kind: input, shape index: {}]   ;;  %s4906_s5 = inlined_call_operand.vmem [shape: f32[1,8], index: 5, kind: input, shape index: {}]   ;;  %s4907_s6 = inlined_call_operand.vmem [shape: f32[8,64], index: 6, kind: input, shape index: {}]   ;;  %s4908_s7 = inlined_call_operand.vmem [shape: f32[1,64], index: 7, kind: input, shape index: {}]   ;;  %s4909_s8 = inlined_call_operand.vmem [shape: f32[1,64], index: 8, kind: input, shape index: {}]   ;;  %s4910_s9 = inlined_call_operand.vmem [shape: f32[1,8], index: 9, kind: input, shape index: {}]   ;;  %s4911_s10 = inlined_call_operand.vmem [shape: f32[1,8], index: 10, kind: input, shape index: {}]   ;;  %s4912_s11 = inlined_call_operand.vmem [shape: f32[8,64], index: 11, kind: input, shape index: {}]   ;;  %s4913_s12 = inlined_call_operand.vmem [shape: f32[1,64], index: 12, kind: input, shape index: {}]   ;;  %s4914_s13 = inlined_call_operand.vmem [shape: f32[2,16,16,1], index: 13, kind: input, shape index: {}]   ;;  %s4915_s14 = inlined_call_operand.vmem [shape: f32[2,16,16,64], index: 14, kind: output, shape index: {}]  }
   0x1 LB: > { %s2904_s30 = sadd.s32 4294967295, %s3207_s29   ;;  %p2908_p0 = scmp.ge.s32.totalorder %s3207_s29, 1  ;;  %s3207_s29 = sphi %s3286_s29, %s24_s29  }
   0x2   : > { %p422_p1 = scmp.lt.s32.totalorder %s3207_s29, 3 }
   0x4   : > { %p423_p2 = pnand %p2908_p0, %p422_p1 }
   0x6   : > { %426 = sbr.rel (%p423_p2) target bundleno = 458 (0x1ca), region = 76 }
   0xd   : > { %v1677_v0 = vld [vmem:[%s4907_s6] sm:$0xff]  ;;  %p3299_p3 = scmp.lt.s32.totalorder %s2904_s30, 1  ;;  %vm488_vm0 = vcmask 64512   ;;  %v3209_v1 = vmov 0.0   ;;  %vm491_vm1 = vcmask 58368   ;;  %v3210_v19 = vmov 0  }
   0xe   : > { %3074 = vmatprep.subr.mxu0 %v1677_v0  ;;  %489 = vst.msk [vmem:[#allocation2] sm:$0xff] %vm488_vm0, %v3209_v1  ;;  %490 = vst.msk [vmem:[#allocation2 + $0x8] sm:$0xff] %vm488_vm0, %v3209_v1  ;;  %v3346_v2 = vld [vmem:[%s4903_s2] ss:$0 sm:$0xff]  ;;  %v3390_v6 = vld [vmem:[%s4902_s1 + $0x1] ss:$0 sm:$0xff]  ;;  %3185 = vset.pattern.permute.xlu1 %v3210_v19 }
   0xf   : > { %493 = vst.msk [vmem:[#allocation2 + $0x18] sm:$0xff] %vm488_vm0, %v3209_v1  ;;  %494 = vst.msk [vmem:[#allocation2 + $0x20] sm:$0xff] %vm488_vm0, %v3209_v1  ;;  %3075 = vmatpush3.msra.mxu0 %v1677_v0  ;;  %s4924_s30 = smov (!%p3299_p3, %s2904_s30), 1  ;;  %v3371_v3 = vld [vmem:[%s4904_s3] ss:$0 sm:$0xff]  ;;  %3184 = vset.pattern.permute.xlu0 %v3210_v19  ;;  %vm2804_vm2 = vcmask 523264  }
  0x10   : > { %496 = vst.msk [vmem:[#allocation2 + $0x30] sm:$0xff] %vm488_vm0, %v3209_v1  ;;  %497 = vst.msk [vmem:[#allocation2 + $0x38] sm:$0xff] %vm488_vm0, %v3209_v1  ;;  %s3366_s20 = sshll.u32 %s4924_s30, 8  ;;  %v3376_v4 = vld [vmem:[%s4902_s1] ss:$0 sm:$0xff] }
  0x11   : > { %499 = vst.msk [vmem:[#allocation2 + $0x48] sm:$0xff] %vm488_vm0, %v3209_v1  ;;  %500 = vst.msk [vmem:[#allocation2 + $0x50] sm:$0xff] %vm488_vm0, %v3209_v1  ;;  %v2219_v5 = vld [vmem:[%s4912_s11] sm:$0xff]  ;;  %s3385_s30 = scalar_lea.vmem %s4901_s0, %s3366_s20  ;;  %s3447_s26 = scalar_lea.vmem %s4914_s13, %s3366_s20 }
  0x12   : > { %502 = vst.msk [vmem:[#allocation2 + $0x60] sm:$0xff] %vm488_vm0, %v3209_v1  ;;  %503 = vst.msk [vmem:[#allocation2 + $0x68] sm:$0xff] %vm488_vm0, %v3209_v1  ;;  %v3395_v7 = vld [vmem:[%s4902_s1 + $0x2] ss:$0 sm:$0xff]  ;;  %3124 = vmatprep.subr.mxu1 %v2219_v5  ;;  %v3400_v8 = vld [vmem:[%s4910_s9] ss:$0 sm:$0xff]  ;;  %s4742_s17 = scalar_lea.vmem %s4915_s14, %s3366_s20 }
  0x13   : > { %505 = vst.msk [vmem:[#allocation2 + $0x78] sm:$0xff] %vm488_vm0, %v3209_v1  ;;  %506 = vst.msk [vmem:[#allocation2 + $0x80] sm:$0xff] %vm488_vm0, %v3209_v1  ;;  %v544_v9 = vld [vmem:[%s3385_s30] sm:$0xff]  ;;  %v546_v10 = vld [vmem:[%s3385_s30 + $0x10] sm:$0xff]  ;;  %3125 = vmatpush3.msra.mxu1 %v2219_v5 }
  0x14   : > { %508 = vst.msk [vmem:[#allocation2 + $0x90] sm:$0xff] %vm488_vm0, %v3209_v1  ;;  %509 = vst.msk [vmem:[#allocation2 + $0x98] sm:$0xff] %vm488_vm0, %v3209_v1  ;;  %v545_v11 = vld [vmem:[%s3385_s30 + $0x8] sm:$0xff]  ;;  %v583_v12 = vmul.f32 %v3346_v2, %v544_v9  ;;  %v585_v13 = vmul.f32 %v3346_v2, %v546_v10  ;;  %v547_v14 = vld [vmem:[%s3385_s30 + $0x18] sm:$0xff]  ;;  %v2148_v16 = vmul.f32 %v3400_v8, %v544_v9 }
  0x15   : > { %511 = vst.msk [vmem:[#allocation2 + $0xa8] sm:$0xff] %vm488_vm0, %v3209_v1  ;;  %512 = vst.msk [vmem:[#allocation2 + $0xb0] sm:$0xff] %vm488_vm0, %v3209_v1  ;;  %v584_v15 = vmul.f32 %v3346_v2, %v545_v11  ;;  %v3413_v17 = vld [vmem:[%s4911_s10] ss:$0 sm:$0xff]  ;;  %v788_v21 = vld [vmem:[#allocation2 + $0x1] sm:$0xff]  ;;  %v586_v23 = vmul.f32 %v3346_v2, %v547_v14  ;;  %v2149_v25 = vmul.f32 %v3400_v8, %v545_v11 }
  0x16   : > { %514 = vst.msk [vmem:[#allocation2 + $0xc0] sm:$0xff] %vm488_vm0, %v3209_v1  ;;  %515 = vst.msk [vmem:[#allocation2 + $0xc8] sm:$0xff] %vm488_vm0, %v3209_v1  ;;  %v548_v18 = vld [vmem:[%s3385_s30 + $0x20] sm:$0xff]  ;;  %v2150_v26 = vmul.f32 %v3400_v8, %v546_v10  ;;  %v622_v27 = vadd.f32 %v3371_v3, %v583_v12  ;;  %v624_v28 = vadd.f32 %v3371_v3, %v585_v13  ;;  %v688_v31 = vld [vmem:[#allocation2 + $0x8] sm:$0xff] }
  0x17   : > { %517 = vst.msk [vmem:[#allocation2 + $0xd8] sm:$0xff] %vm488_vm0, %v3209_v1  ;;  %518 = vst.msk [vmem:[#allocation2 + $0xe0] sm:$0xff] %vm488_vm0, %v3209_v1  ;;  %v687_v20 = vld [vmem:[#allocation2] sm:$0xff]  ;;  %v587_v24 = vmul.f32 %v3346_v2, %v548_v18  ;;  %v825_v30 = vmul.f32 %v3390_v6, %v788_v21  ;;  %v549_v32 = vld [vmem:[%s3385_s30 + $0x28] sm:$0xff]  ;;  %v623_v34 = vadd.f32 %v3371_v3, %v584_v15 }
  0x18   : > { %520 = vst.msk [vmem:[#allocation2 + $0xf0] sm:$0xff] %vm488_vm0, %v3209_v1  ;;  %521 = vst.msk [vmem:[#allocation2 + $0xf8] sm:$0xff] %vm488_vm0, %v3209_v1  ;;  %v889_v22 = vld [vmem:[#allocation2 + $0x2] sm:$0xff]  ;;  %v724_v29 = vmul.f32 %v3376_v4, %v687_v20  ;;  %v625_v35 = vadd.f32 %v3371_v3, %v586_v23  ;;  %v725_v36 = vmul.f32 %v3376_v4, %v688_v31  ;;  %v550_v39 = vld [vmem:[%s3385_s30 + $0x30] sm:$0xff] }
  0x19   : > { %523 = vst.msk [vmem:[#allocation2 + $0x108] sm:$0xff] %vm488_vm0, %v3209_v1  ;;  %524 = vst.msk [vmem:[#allocation2 + $0x110] sm:$0xff] %vm488_vm0, %v3209_v1  ;;  %v926_v33 = vmul.f32 %v3395_v7, %v889_v22  ;;  %v2187_v43 = vadd.f32 %v3413_v17, %v2148_v16  ;;  %v551_v44 = vld [vmem:[%s3385_s30 + $0x38] sm:$0xff]  ;;  %v552_v45 = vld [vmem:[%s3385_s30 + $0x40] sm:$0xff]  ;;  %v626_v46 = vadd.f32 %v3371_v3, %v587_v24 }
  0x1a   : > { %526 = vst.msk [vmem:[#allocation2 + $0x120] sm:$0xff] %vm488_vm0, %v3209_v1  ;;  %527 = vst.msk [vmem:[#allocation2 + $0x128] sm:$0xff] %vm488_vm0, %v3209_v1  ;;  %v857_v40 = vadd.f32 %v825_v30, %v724_v29  ;;  %v2188_v47 = vadd.f32 %v3413_v17, %v2149_v25  ;;  %v588_v48 = vmul.f32 %v3346_v2, %v549_v32  ;;  %v3455_v54 = vld [vmem:[%s3385_s30 + $0x48] sm:$0xff]  ;;  %v3460_v55 = vld [vmem:[%s4902_s1 + $0x4] ss:$0 sm:$0xff] }
  0x1b   : > { %529 = vst.msk [vmem:[#allocation2 + $0x138] sm:$0xff] %vm488_vm0, %v3209_v1  ;;  %530 = vst.msk [vmem:[#allocation2 + $0x140] sm:$0xff] %vm488_vm0, %v3209_v1  ;;  %v2189_v49 = vadd.f32 %v3413_v17, %v2150_v26  ;;  %3126 = vmatprep.mubr.msk.f32.mxu1 %vm488_vm0, %v2187_v43  ;;  %v589_v52 = vmul.f32 %v3346_v2, %v550_v39  ;;  %v2151_v53 = vmul.f32 %v3400_v8, %v547_v14  ;;  %v3465_v56 = vld [vmem:[%s4902_s1 + $0x5] ss:$0 sm:$0xff]  ;;  %v3474_v61 = vld [vmem:[%s3385_s30 + $0x50] sm:$0xff] }
  0x1c   : > { %532 = vst.msk [vmem:[#allocation2 + $0x150] sm:$0xff] %vm488_vm0, %v3209_v1  ;;  %533 = vst.msk [vmem:[#allocation2 + $0x158] sm:$0xff] %vm488_vm0, %v3209_v1  ;;  %v3449_v50 = vadd.f32 %v926_v33, %v857_v40  ;;  %3127 = vmatmul.mubr.msk.f32.vlgmr.msra.gmra.mrb[0].mxu1 %vm488_vm0, %v2188_v47  ;;  %v627_v57 = vadd.f32 %v3371_v3, %v588_v48  ;;  %v590_v58 = vmul.f32 %v3346_v2, %v551_v44  ;;  %v3477_v62 = vld [vmem:[%s3385_s30 + $0x58] sm:$0xff]  ;;  %v3486_v9 = vld [vmem:[%s3385_s30 + $0x60] sm:$0xff] }
  0x1d   : > { %535 = vst.msk [vmem:[#allocation2 + $0x168] sm:$0xff] %vm488_vm0, %v3209_v1  ;;  %536 = vst.msk [vmem:[#allocation2 + $0x170] sm:$0xff] %vm488_vm0, %v3209_v1  ;;  %v2152_v59 = vmul.f32 %v3400_v8, %v548_v18  ;;  %v591_v60 = vmul.f32 %v3346_v2, %v552_v45  ;;  %3129 = vmatprep.mubr.msk.f32.mxu1 %vm488_vm0, %v2189_v49  ;;  %v628_v0 = vadd.f32 %v3371_v3, %v589_v52  ;;  %v2582_v10 = vld [vmem:[%s3447_s26 + $0x10] sm:$0xff]  ;;  %v2580_v11 = vld [vmem:[%s3447_s26] sm:$0xff] }
  0x1e   : > { %538 = vst.msk [vmem:[#allocation2 + $0x180] sm:$0xff] %vm488_vm0, %v3209_v1  ;;  %539 = vst.msk [vmem:[#allocation2 + $0x188] sm:$0xff] %vm488_vm0, %v3209_v1  ;;  %v2153_v5 = vmul.f32 %v3400_v8, %v549_v32  ;;  %v3493_v12 = vld [vmem:[%s4902_s1 + $0x6] ss:$0 sm:$0xff]  ;;  %v3498_v13 = vld [vmem:[%s4902_s1 + $0x8] ss:$0 sm:$0xff]  ;;  %v629_v15 = vadd.f32 %v3371_v3, %v590_v58  ;;  %v592_v19 = vmul.f32 %v3346_v2, %v3455_v54  ;;  %2624 = vperm.xlu1 %3185, %v2582_v10  }
  0x1f   : > { %541 = vst.msk [vmem:[#allocation2 + $0x198] sm:$0xff] %vm488_vm0, %v3209_v1  ;;  %542 = vst.msk [vmem:[#allocation2 + $0x1a0] sm:$0xff] %vm488_vm0, %v3209_v1  ;;  %v3503_v14 = vld [vmem:[%s4902_s1 + $0x9] ss:$0 sm:$0xff]  ;;  %v2191_v16 = vadd.f32 %v3413_v17, %v2152_v59  ;;  %v630_v18 = vadd.f32 %v3371_v3, %v591_v60  ;;  %v3514_v20 = vld [vmem:[%s4902_s1 + $0xa] ss:$0 sm:$0xff]  ;;  %v3519_v22 = vmul.f32 %v3400_v8, %v550_v39  ;;  %2614 = vperm.xlu0 %3184, %v2580_v11  }
  0x20   : > { %492 = vst.msk [vmem:[#allocation2 + $0x10] sm:$0x3] %vm491_vm1, %v3209_v1  ;;  %495 = vst.msk [vmem:[#allocation2 + $0x28] sm:$0x3] %vm491_vm1, %v3209_v1  ;;  %v2192_v21 = vadd.f32 %v3413_v17, %v2153_v5  ;;  %v3523_v23 = vmul.f32 %v3346_v2, %v3474_v61  ;;  %v3526_v24 = vmul.f32 %v3400_v8, %v551_v44  ;;  %v2583_v25 = vld [vmem:[%s3447_s26 + $0x18] sm:$0xff]  ;;  %v2581_v26 = vld [vmem:[%s3447_s26 + $0x8] sm:$0xff] }
  0x21   : > { %498 = vst.msk [vmem:[#allocation2 + $0x40] sm:$0x3] %vm491_vm1, %v3209_v1  ;;  %501 = vst.msk [vmem:[#allocation2 + $0x58] sm:$0x3] %vm491_vm1, %v3209_v1  ;;  %v631_v30 = vadd.f32 %v3371_v3, %v592_v19  ;;  %v3536_v31 = vmul.f32 %v3346_v2, %v3477_v62  ;;  %v3539_v32 = vmul.f32 %v3400_v8, %v552_v45 }
  0x22   : > { %504 = vst.msk [vmem:[#allocation2 + $0x70] sm:$0x3] %vm491_vm1, %v3209_v1  ;;  %507 = vst.msk [vmem:[#allocation2 + $0x88] sm:$0x3] %vm491_vm1, %v3209_v1  ;;  %v3543_v33 = vmul.f32 %v3346_v2, %v3486_v9  ;;  %2629 = vperm.xlu1 %3185, %v2583_v25  }
  0x23   : > { %510 = vst.msk [vmem:[#allocation2 + $0xa0] sm:$0x3] %vm491_vm1, %v3209_v1  ;;  %513 = vst.msk [vmem:[#allocation2 + $0xb8] sm:$0x3] %vm491_vm1, %v3209_v1  ;;  %2619 = vperm.xlu0 %3184, %v2581_v26  }
  0x24   : > { %516 = vst.msk [vmem:[#allocation2 + $0xd0] sm:$0x3] %vm491_vm1, %v3209_v1  ;;  %519 = vst.msk [vmem:[#allocation2 + $0xe8] sm:$0x3] %vm491_vm1, %v3209_v1 }
  0x25   : > { %522 = vst.msk [vmem:[#allocation2 + $0x100] sm:$0x3] %vm491_vm1, %v3209_v1  ;;  %525 = vst.msk [vmem:[#allocation2 + $0x118] sm:$0x3] %vm491_vm1, %v3209_v1 }
  0x26   : > { %528 = vst.msk [vmem:[#allocation2 + $0x130] sm:$0x3] %vm491_vm1, %v3209_v1  ;;  %531 = vst.msk [vmem:[#allocation2 + $0x148] sm:$0x3] %vm491_vm1, %v3209_v1 }
  0x27   : > { %534 = vst.msk [vmem:[#allocation2 + $0x160] sm:$0x3] %vm491_vm1, %v3209_v1  ;;  %537 = vst.msk [vmem:[#allocation2 + $0x178] sm:$0x3] %vm491_vm1, %v3209_v1  ;;  %v789_v37 = vld [vmem:[#allocation2 + $0x9] sm:$0xff] }
  0x28   : > { %540 = vst.msk [vmem:[#allocation2 + $0x190] sm:$0x3] %vm491_vm1, %v3209_v1  ;;  %543 = vst.msk [vmem:[#allocation2 + $0x1a8] sm:$0x3] %vm491_vm1, %v3209_v1  ;;  %v890_v38 = vld [vmem:[#allocation2 + $0xa] sm:$0xff]  ;;  %v826_v41 = vmul.f32 %v3390_v6, %v789_v37  ;;  %v2190_v1 = vadd.f32 %v3413_v17, %v2151_v53 }
  0x29   : > { %655 = vst.msk [vmem:[#allocation2 + $0x1a] sm:$0xff] %vm488_vm0, %v622_v27  ;;  %657 = vst.msk [vmem:[#allocation2 + $0x32] sm:$0xff] %vm488_vm0, %v624_v28  ;;  %v927_v42 = vmul.f32 %v3395_v7, %v890_v38 }
  0x2a   : > { %656 = vst.msk [vmem:[#allocation2 + $0x22] sm:$0xff] %vm488_vm0, %v623_v34  ;;  %658 = vst.msk [vmem:[#allocation2 + $0x3a] sm:$0xff] %vm488_vm0, %v625_v35  ;;  %v858_v51 = vadd.f32 %v826_v41, %v725_v36  ;;  %3130 = vmatmul.mubr.msk.f32.gmra.mrb[2].mxu1 %vm488_vm0, %v2190_v1 }
  0x2b   : > { %659 = vst.msk [vmem:[#allocation2 + $0x4a] sm:$0xff] %vm488_vm0, %v626_v46  ;;  %4919 = vst [vmem:[#allocation3_spill] sm:$0xff] %v3477_v62  ;;  %3132 = vmatprep.mubr.msk.f32.mxu1 %vm488_vm0, %v2191_v16 }
  0x2c   : > { %v3479_v63 = vadd.f32 %v927_v42, %v858_v51  ;;  %4920 = vst [vmem:[#allocation4_spill] sm:$0xff] %v3486_v9  ;;  %660 = vst.msk [vmem:[#allocation2 + $0x52] sm:$0xff] %vm488_vm0, %v627_v57  ;;  %v2586_v9 = vld [vmem:[%s3447_s26 + $0x30] sm:$0xff] }
  0x2d   : > { %661 = vst.msk [vmem:[#allocation2 + $0x62] sm:$0xff] %vm488_vm0, %v628_v0  ;;  %662 = vst.msk [vmem:[#allocation2 + $0x6a] sm:$0xff] %vm488_vm0, %v629_v15 }
  0x2e   : > { %663 = vst.msk [vmem:[#allocation2 + $0x7a] sm:$0xff] %vm488_vm0, %v630_v18  ;;  %664 = vst.msk [vmem:[#allocation2 + $0x82] sm:$0xff] %vm488_vm0, %v631_v30  ;;  %3133 = vmatmul.mubr.msk.f32.gmra.mrb[4].mxu1 %vm488_vm0, %v2192_v21 }
  0x30   : > { %v990_v27 = vld [vmem:[#allocation2 + $0x18] sm:$0xff]  ;;  %v3548_v37 = vld [vmem:[#allocation2 + $0x30] sm:$0xff] }
  0x31   : > { %v1092_v28 = vld [vmem:[#allocation2 + $0x19] sm:$0xff]  ;;  %v1028_v34 = vmul.f32 %v3460_v55, %v990_v27  ;;  %v3550_v38 = vld [vmem:[#allocation2 + $0x31] sm:$0xff]  ;;  %v726_v40 = vmul.f32 %v3376_v4, %v990_v27  ;;  %v1333_v41 = vmul.f32 %v3498_v13, %v3548_v37  ;;  %v1093_v45 = vld [vmem:[#allocation2 + $0x21] sm:$0xff]  ;;  %v1030_v11 = vmul.f32 %v3460_v55, %v3548_v37 }
  0x32   : > { %v1193_v29 = vld [vmem:[#allocation2 + $0x1a] sm:$0xff]  ;;  %v1129_v35 = vmul.f32 %v3465_v56, %v1092_v28  ;;  %v3552_v39 = vld [vmem:[#allocation2 + $0x32] sm:$0xff]  ;;  %v1434_v42 = vmul.f32 %v3503_v14, %v3550_v38  ;;  %v1194_v46 = vld [vmem:[#allocation2 + $0x22] sm:$0xff]  ;;  %v827_v47 = vmul.f32 %v3390_v6, %v1092_v28  ;;  %v1130_v51 = vmul.f32 %v3465_v56, %v1093_v45 }
  0x33   : > { %v1230_v36 = vmul.f32 %v3493_v12, %v1193_v29  ;;  %v3562_v43 = vmul.f32 %v3514_v20, %v3552_v39  ;;  %v991_v44 = vld [vmem:[#allocation2 + $0x20] sm:$0xff]  ;;  %v1060_v48 = vadd.f32 %v1028_v34, %v3449_v50  ;;  %v1231_v52 = vmul.f32 %v3493_v12, %v1194_v46  ;;  %v3570_v53 = vld [vmem:[#allocation2 + $0x38] sm:$0xff]  ;;  %v3587_v15 = vld [vmem:[#allocation2 + $0x48] sm:$0xff] }
  0x34   : > { %v1029_v49 = vmul.f32 %v3460_v55, %v991_v44  ;;  %v3572_v57 = vld [vmem:[#allocation2 + $0x39] sm:$0xff]  ;;  %v1334_v59 = vmul.f32 %v3498_v13, %v3570_v53  ;;  %v859_v0 = vadd.f32 %v827_v47, %v726_v40  ;;  %v928_v10 = vmul.f32 %v3395_v7, %v1193_v29  ;;  %v3589_v16 = vld [vmem:[#allocation2 + $0x49] sm:$0xff] }
  0x35   : > { %v3574_v58 = vld [vmem:[#allocation2 + $0x3a] sm:$0xff]  ;;  %v1435_v60 = vmul.f32 %v3503_v14, %v3572_v57  ;;  %v1161_v1 = vadd.f32 %v1129_v35, %v1060_v48  ;;  %v1131_v18 = vmul.f32 %v3465_v56, %v3550_v38  ;;  %v1232_v19 = vmul.f32 %v3493_v12, %v3552_v39  ;;  %v3599_v25 = vld [vmem:[#allocation2 + $0x4a] sm:$0xff] }
  0x36   : > { %v1536_v50 = vmul.f32 %v3514_v20, %v3574_v58  ;;  %v1061_v5 = vadd.f32 %v1029_v49, %v3479_v63  ;;  %v1335_v21 = vmul.f32 %v3498_v13, %v3587_v15  ;;  %v1436_v63 = vmul.f32 %v3503_v14, %v3589_v16 }
  0x37   : > { %v1262_v26 = vadd.f32 %v1230_v36, %v1161_v1  ;;  %v960_v28 = vadd.f32 %v928_v10, %v859_v0  ;;  %v3603_v29 = vmul.f32 %v3514_v20, %v3599_v25  ;;  %v727_v30 = vmul.f32 %v3376_v4, %v991_v44  ;;  %v3614_v0 = vld [vmem:[#allocation2 + $0x51] sm:$0xff] }
  0x38   : > { %v1162_v27 = vadd.f32 %v1130_v51, %v1061_v5  ;;  %v828_v34 = vmul.f32 %v3390_v6, %v1093_v45  ;;  %v929_v35 = vmul.f32 %v3395_v7, %v1194_v46  ;;  %v1031_v40 = vmul.f32 %v3460_v55, %v3570_v53  ;;  %v3612_v51 = vld [vmem:[#allocation2 + $0x50] sm:$0xff]  ;;  %v2584_v5 = vld [vmem:[%s3447_s26 + $0x20] sm:$0xff] }
  0x39   : > { %v1365_v47 = vadd.f32 %v1333_v41, %v1262_v26  ;;  %v1062_v36 = vadd.f32 %v1030_v11, %v960_v28  ;;  %v1132_v49 = vmul.f32 %v3465_v56, %v3572_v57  ;;  %v1233_v44 = vmul.f32 %v3493_v12, %v3574_v58  ;;  %v3624_v46 = vld [vmem:[#allocation2 + $0x52] sm:$0xff]  ;;  %v3635_v28 = vld [vmem:[%s4905_s4] ss:$0 sm:$0xff]  ;;  %2634 = vperm.xlu0 %3184, %v2584_v5  }
  0x3a   : > { %v1263_v48 = vadd.f32 %v1231_v52, %v1162_v27  ;;  %v860_v1 = vadd.f32 %v828_v34, %v727_v30  ;;  %v1336_v45 = vmul.f32 %v3498_v13, %v3612_v51  ;;  %v3622_v41 = vmul.f32 %v3503_v14, %v3614_v0  ;;  %v2585_v52 = vld [vmem:[%s3447_s26 + $0x28] sm:$0xff] }
  0x3b   : > { %v1466_v10 = vadd.f32 %v1434_v42, %v1365_v47  ;;  %v1163_v26 = vadd.f32 %v1131_v18, %v1062_v36  ;;  %v3630_v27 = vmul.f32 %v3514_v20, %v3624_v46  ;;  %2639 = vperm.xlu1 %3185, %v2585_v52   ;;  %v728_v34 = vmul.f32 %v3376_v4, %v3548_v37  ;;  %v2587_v18 = vld [vmem:[%s3447_s26 + $0x38] sm:$0xff]  ;;  %v3651_v37 = vld [vmem:[%s4906_s5] ss:$0 sm:$0xff] }
  0x3c   : > { %v1366_v11 = vadd.f32 %v1334_v59, %v1263_v48  ;;  %v961_v30 = vadd.f32 %v929_v35, %v860_v1  ;;  %v829_v42 = vmul.f32 %v3390_v6, %v3550_v38  ;;  %v930_v59 = vmul.f32 %v3395_v7, %v3552_v39 }
  0x3d   : > { %v1567_v47 = vadd.f32 %v3562_v43, %v1466_v10  ;;  %v1264_v36 = vadd.f32 %v1232_v19, %v1163_v26  ;;  %v1032_v52 = vmul.f32 %v3460_v55, %v3587_v15  ;;  %v1133_v39 = vmul.f32 %v3465_v56, %v3589_v16  ;;  %v3657_v43 = vld [vmem:[#allocation2 + $0x60] sm:$0xff]  ;;  %2644 = vperm.xlu0 %3184, %v2586_v9  }
  0x3e   : > { %v1467_v48 = vadd.f32 %v1435_v60, %v1366_v11  ;;  %v1063_v35 = vadd.f32 %v1031_v40, %v961_v30  ;;  %v861_v38 = vadd.f32 %v829_v42, %v728_v34  ;;  %v1234_v1 = vmul.f32 %v3493_v12, %v3599_v25  ;;  %v3662_v11 = vld [vmem:[#allocation2 + $0x61] sm:$0xff] }
  0x3f   : > { %v1606_v60 = vmul.f32 %v3635_v28, %v1567_v47  ;;  %v1367_v5 = vadd.f32 %v1335_v21, %v1264_v36  ;;  %v1337_v10 = vmul.f32 %v3498_v13, %v3657_v43  ;;  %v3664_v26 = vld [vmem:[#allocation2 + $0x62] sm:$0xff]  ;;  %2649 = vperm.xlu1 %3185, %v2587_v18   ;;  %v1438_v34 = vmul.f32 %v3503_v14, %v3662_v11 }
  0x40   : > { %v1568_v19 = vadd.f32 %v1536_v50, %v1467_v48  ;;  %v1164_v40 = vadd.f32 %v1132_v49, %v1063_v35  ;;  %v962_v30 = vadd.f32 %v930_v59, %v861_v38  ;;  %v1539_v42 = vmul.f32 %v3514_v20, %v3664_v26  ;;  %v3687_v38 = vld [vmem:[#allocation2 + $0x68] sm:$0xff] }
  0x41   : > { %v1645_v50 = vadd.f32 %v3651_v37, %v1606_v60  ;;  %v1468_v47 = vadd.f32 %v1436_v63, %v1367_v5  ;;  %v729_v48 = vmul.f32 %v3376_v4, %v3570_v53  ;;  %v830_v49 = vmul.f32 %v3390_v6, %v3572_v57  ;;  %v3691_v60 = vld [vmem:[#allocation2 + $0x6a] sm:$0xff] }
  0x42   : > { %v1607_v21 = vmul.f32 %v3635_v28, %v1568_v19  ;;  %v1265_v36 = vadd.f32 %v1233_v44, %v1164_v40  ;;  %v1064_v62 = vadd.f32 %v1032_v52, %v962_v30  ;;  %v931_v59 = vmul.f32 %v3395_v7, %v3574_v58  ;;  %v3689_v58 = vld [vmem:[#allocation2 + $0x69] sm:$0xff] }
  0x43   : > { %3076 = vmatprep.mubr.msk.f32.mxu0 %vm488_vm0, %v1645_v50  ;;  %v1569_v18 = vadd.f32 %v3603_v29, %v1468_v47  ;;  %v1033_v63 = vmul.f32 %v3460_v55, %v3612_v51  ;;  %v1134_v53 = vmul.f32 %v3465_v56, %v3614_v0  ;;  %v862_v35 = vadd.f32 %v830_v49, %v729_v48  ;;  %v3716_v49 = vld [vmem:[#allocation2 + $0x78] sm:$0xff] }
  0x44   : > { %v1646_v9 = vadd.f32 %v3651_v37, %v1607_v21  ;;  %v1368_v44 = vadd.f32 %v1336_v45, %v1265_v36  ;;  %v1165_v52 = vadd.f32 %v1133_v39, %v1064_v62  ;;  %v1235_v57 = vmul.f32 %v3493_v12, %v3624_v46 }
  0x45   : > { %v1608_v29 = vmul.f32 %v3635_v28, %v1569_v18  ;;  %v1338_v19 = vmul.f32 %v3498_v13, %v3687_v38  ;;  %v1439_v62 = vmul.f32 %v3503_v14, %v3689_v58  ;;  %v3701_v45 = vmul.f32 %v3514_v20, %v3691_v60  ;;  %v2589_v18 = vld [vmem:[%s3447_s26 + $0x48] sm:$0xff] }
  0x46   : > { %3077 = vmatmul.mubr.msk.f32.vlgmr.msra.gmra.mrb[0].mxu0 %vm488_vm0, %v1646_v9  ;;  %v1469_v39 = vadd.f32 %v3622_v41, %v1368_v44  ;;  %v1266_v5 = vadd.f32 %v1234_v1, %v1165_v52  ;;  %v963_v40 = vadd.f32 %v931_v59, %v862_v35  ;;  %v730_v30 = vmul.f32 %v3376_v4, %v3587_v15  ;;  %v3718_v59 = vld [vmem:[#allocation2 + $0x79] sm:$0xff] }
  0x47   : > { %v1647_v50 = vadd.f32 %v3651_v37, %v1608_v29  ;;  %v831_v21 = vmul.f32 %v3390_v6, %v3589_v16  ;;  %v932_v47 = vmul.f32 %v3395_v7, %v3599_v25  ;;  %v1034_v48 = vmul.f32 %v3460_v55, %v3657_v43  ;;  %2659 = vperm.xlu1 %3185, %v2589_v18  }
  0x48   : > { %v1570_v41 = vadd.f32 %v3630_v27, %v1469_v39  ;;  %v1369_v1 = vadd.f32 %v1337_v10, %v1266_v5  ;;  %v1065_v36 = vadd.f32 %v1033_v63, %v963_v40  ;;  %v1135_v15 = vmul.f32 %v3465_v56, %v3662_v11  ;;  %v3727_v10 = vld [vmem:[#allocation2 + $0x7a] sm:$0xff] }
  0x49   : > { %3079 = vmatprep.mubr.msk.f32.mxu0 %vm488_vm0, %v1647_v50  ;;  %v863_v16 = vadd.f32 %v831_v21, %v730_v30  ;;  %v1236_v25 = vmul.f32 %v3493_v12, %v3664_v26  ;;  %v1339_v9 = vmul.f32 %v3498_v13, %v3716_v49  ;;  %v1440_v27 = vmul.f32 %v3503_v14, %v3718_v59  ;;  %v2588_v63 = vld [vmem:[%s3447_s26 + $0x40] sm:$0xff] }
  0x4a   : > { %v1609_v44 = vmul.f32 %v3635_v28, %v1570_v41  ;;  %v1470_v52 = vadd.f32 %v1438_v34, %v1369_v1  ;;  %v1166_v35 = vadd.f32 %v1134_v53, %v1065_v36  ;;  %v3734_v29 = vmul.f32 %v3514_v20, %v3727_v10  ;;  %2654 = vperm.xlu0 %3184, %v2588_v63   ;;  %v3751_v36 = vld [vmem:[#allocation2 + $0x81] sm:$0xff] }
  0x4b   : > { %v964_v39 = vadd.f32 %v932_v47, %v863_v16  ;;  %v731_v5 = vmul.f32 %v3376_v4, %v3612_v51  ;;  %v832_v40 = vmul.f32 %v3390_v6, %v3614_v0  ;;  %v933_v30 = vmul.f32 %v3395_v7, %v3624_v46  ;;  %v3749_v0 = vld [vmem:[#allocation2 + $0x80] sm:$0xff] }
  0x4c   : > { %v1648_v50 = vadd.f32 %v3651_v37, %v1609_v44  ;;  %v1571_v34 = vadd.f32 %v1539_v42, %v1470_v52  ;;  %v1267_v53 = vadd.f32 %v1235_v57, %v1166_v35  ;;  %v1035_v21 = vmul.f32 %v3460_v55, %v3687_v38  ;;  %v3759_v16 = vld [vmem:[#allocation2 + $0x82] sm:$0xff] }
  0x4d   : > { %v1066_v41 = vadd.f32 %v1034_v48, %v964_v39  ;;  %v864_v1 = vadd.f32 %v832_v40, %v731_v5  ;;  %v1136_v47 = vmul.f32 %v3465_v56, %v3689_v58  ;;  %v1237_v51 = vmul.f32 %v3493_v12, %v3691_v60 }
  0x4e   : > { %3080 = vmatmul.mubr.msk.f32.gmra.mrb[2].mxu0 %vm488_vm0, %v1648_v50  ;;  %v1610_v46 = vmul.f32 %v3635_v28, %v1571_v34  ;;  %v1370_v42 = vadd.f32 %v1338_v19, %v1267_v53  ;;  %v1340_v57 = vmul.f32 %v3498_v13, %v3749_v0  ;;  %v1441_v48 = vmul.f32 %v3503_v14, %v3751_v36 }
  0x4f   : > { %v1167_v18 = vadd.f32 %v1135_v15, %v1066_v41  ;;  %v965_v63 = vadd.f32 %v933_v30, %v864_v1  ;;  %v1542_v44 = vmul.f32 %v3514_v20, %v3759_v16  ;;  %v2193_v52 = vadd.f32 %v3413_v17, %v3519_v22  ;;  %v2591_v1 = vld [vmem:[%s3447_s26 + $0x58] sm:$0xff] }
  0x50   : > { %v1649_v35 = vadd.f32 %v3651_v37, %v1610_v46  ;;  %v1471_v39 = vadd.f32 %v1439_v62, %v1370_v42  ;;  %v632_v19 = vadd.f32 %v3371_v3, %v3523_v23  ;;  %v732_v5 = vmul.f32 %v3376_v4, %v3657_v43  ;;  %v2590_v46 = vld [vmem:[%s3447_s26 + $0x50] sm:$0xff]  ;;  %2669 = vperm.xlu1 %3185, %v2591_v1  }
  0x51   : > { %v1268_v40 = vadd.f32 %v1236_v25, %v1167_v18  ;;  %v1067_v50 = vadd.f32 %v1035_v21, %v965_v63  ;;  %3135 = vmatprep.mubr.msk.f32.mxu1 %vm488_vm0, %v2193_v52  ;;  %v833_v15 = vmul.f32 %v3390_v6, %v3662_v11  ;;  %v934_v22 = vmul.f32 %v3395_v7, %v3664_v26 }
  0x52   : > { %3082 = vmatprep.mubr.msk.f32.mxu0 %vm488_vm0, %v1649_v35  ;;  %v1572_v62 = vadd.f32 %v3701_v45, %v1471_v39  ;;  %665 = vst.msk [vmem:[#allocation2 + $0x92] sm:$0xff] %vm488_vm0, %v632_v19  ;;  %v1036_v23 = vmul.f32 %v3460_v55, %v3716_v49  ;;  %v1137_v43 = vmul.f32 %v3465_v56, %v3718_v59 }
  0x53   : > { %v1238_v11 = vmul.f32 %v3493_v12, %v3727_v10  ;;  %v1371_v25 = vadd.f32 %v1339_v9, %v1268_v40  ;;  %v1168_v30 = vadd.f32 %v1136_v47, %v1067_v50  ;;  %v865_v34 = vadd.f32 %v833_v15, %v732_v5  ;;  %2664 = vperm.xlu0 %3184, %v2590_v46  }
  0x54   : > { %v2194_v26 = vadd.f32 %v3413_v17, %v3526_v24  ;;  %v1611_v53 = vmul.f32 %v3635_v28, %v1572_v62  ;;  %v633_v45 = vadd.f32 %v3371_v3, %v3536_v31  ;;  %v733_v21 = vmul.f32 %v3376_v4, %v3687_v38 }
  0x55   : > { %v834_v41 = vmul.f32 %v3390_v6, %v3689_v58  ;;  %v1472_v42 = vadd.f32 %v1440_v27, %v1371_v25  ;;  %v1269_v9 = vadd.f32 %v1237_v51, %v1168_v30  ;;  %v966_v47 = vadd.f32 %v934_v22, %v865_v34 }
  0x56   : > { %3136 = vmatmul.mubr.msk.f32.gmra.mrb[6].mxu1 %vm488_vm0, %v2194_v26  ;;  %v935_v24 = vmul.f32 %v3395_v7, %v3691_v60  ;;  %v1650_v18 = vadd.f32 %v3651_v37, %v1611_v53  ;;  %666 = vst.msk [vmem:[#allocation2 + $0x9a] sm:$0xff] %vm488_vm0, %v633_v45  ;;  %v1037_v38 = vmul.f32 %v3460_v55, %v3749_v0  ;;  %v3839_v53 = vld [vmem:[%s3385_s30 + $0x68] sm:$0xff] }
  0x57   : > { %v866_v31 = vadd.f32 %v834_v41, %v733_v21  ;;  %v1138_v58 = vmul.f32 %v3465_v56, %v3751_v36  ;;  %v1573_v27 = vadd.f32 %v3734_v29, %v1472_v42  ;;  %v1372_v51 = vadd.f32 %v1340_v57, %v1269_v9 }
  0x58   : > { %v1068_v63 = vadd.f32 %v1036_v23, %v966_v47  ;;  %v1239_v52 = vmul.f32 %v3493_v12, %v3759_v16  ;;  %3083 = vmatmul.mubr.msk.f32.gmra.mrb[4].mxu0 %vm488_vm0, %v1650_v18  ;;  %v2195_v35 = vadd.f32 %v3413_v17, %v3539_v32  ;;  %v634_v39 = vadd.f32 %v3371_v3, %v3543_v33 }
  0x59   : > { %v967_v60 = vadd.f32 %v935_v24, %v866_v31  ;;  %v734_v19 = vmul.f32 %v3376_v4, %v3716_v49  ;;  %v1612_v29 = vmul.f32 %v3635_v28, %v1573_v27  ;;  %v1473_v57 = vadd.f32 %v1441_v48, %v1372_v51  ;;  %v3815_v40 = vld [vmem:[#allocation2 + $0x90] sm:$0xff]  ;;  %v2592_v27 = vld [vmem:[%s3447_s26 + $0x60] sm:$0xff] }
  0x5a   : > { %v1169_v5 = vadd.f32 %v1137_v43, %v1068_v63  ;;  %v3817_v50 = vld [vmem:[#allocation2 + $0x91] sm:$0xff]  ;;  %v835_v32 = vmul.f32 %v3390_v6, %v3718_v59  ;;  %v1341_v33 = vmul.f32 %v3498_v13, %v3815_v40  ;;  %3138 = vmatprep.mubr.msk.f32.mxu1 %vm488_vm0, %v2195_v35  ;;  %667 = vst.msk [vmem:[#allocation2 + $0xaa] sm:$0xff] %vm488_vm0, %v634_v39 }
  0x5b   : > { %v3819_v15 = vld [vmem:[#allocation2 + $0x92] sm:$0xff]  ;;  %v1442_v49 = vmul.f32 %v3503_v14, %v3817_v50  ;;  %v1069_v22 = vadd.f32 %v1037_v38, %v967_v60  ;;  %v1651_v62 = vadd.f32 %v3651_v37, %v1612_v29  ;;  %v1574_v23 = vadd.f32 %v1542_v44, %v1473_v57  ;;  %2674 = vperm.xlu0 %3184, %v2592_v27  }
  0x5c   : > { %v1543_v48 = vmul.f32 %v3514_v20, %v3819_v15  ;;  %v1270_v43 = vadd.f32 %v1238_v11, %v1169_v5  ;;  %v867_v25 = vadd.f32 %v835_v32, %v734_v19  ;;  %v936_v30 = vmul.f32 %v3395_v7, %v3727_v10 }
  0x5d   : > { %v1170_v59 = vadd.f32 %v1138_v58, %v1069_v22  ;;  %v1038_v34 = vmul.f32 %v3460_v55, %v3815_v40  ;;  %v1139_v26 = vmul.f32 %v3465_v56, %v3817_v50  ;;  %3085 = vmatprep.mubr.msk.f32.mxu0 %vm488_vm0, %v1651_v62  ;;  %v1613_v45 = vmul.f32 %v3635_v28, %v1574_v23  ;;  %v3843_v11 = vld [vmem:[#allocation2 + $0x98] sm:$0xff]  ;;  %v2593_v58 = vld [vmem:[%s3447_s26 + $0x68] sm:$0xff]  ;;  %v3888_v62 = vld [vmem:[%s3385_s30 + $0x70] sm:$0xff] }
  0x5e   : > { %v1373_v44 = vadd.f32 %v1341_v33, %v1270_v43  ;;  %v3845_v21 = vld [vmem:[#allocation2 + $0x99] sm:$0xff]  ;;  %v1240_v41 = vmul.f32 %v3493_v12, %v3819_v15  ;;  %v2157_v1 = vmul.f32 %v3400_v8, %v3455_v54  ;;  %v1342_v42 = vmul.f32 %v3498_v13, %v3843_v11  ;;  %2679 = vperm.xlu1 %3185, %v2593_v58  }
  0x5f   : > { %v3847_v10 = vld [vmem:[#allocation2 + $0x9a] sm:$0xff]  ;;  %v1271_v46 = vadd.f32 %v1239_v52, %v1170_v59  ;;  %v1443_v9 = vmul.f32 %v3503_v14, %v3845_v21  ;;  %v1652_v24 = vadd.f32 %v3651_v37, %v1613_v45  ;;  %v968_v31 = vadd.f32 %v936_v30, %v867_v25 }
  0x60   : > { %v1544_v47 = vmul.f32 %v3514_v20, %v3847_v10  ;;  %v1474_v18 = vadd.f32 %v1442_v49, %v1373_v44  ;;  %v2196_v38 = vadd.f32 %v3413_v17, %v2157_v1  ;;  %v596_v54 = vmul.f32 %v3346_v2, %v3839_v53 }
  0x61   : > { %v1374_v51 = vadd.f32 %v1342_v42, %v1271_v46  ;;  %v735_v63 = vmul.f32 %v3376_v4, %v3749_v0  ;;  %v836_v52 = vmul.f32 %v3390_v6, %v3751_v36  ;;  %3086 = vmatmul.mubr.msk.f32.gmra.mrb[6].mxu0 %vm488_vm0, %v1652_v24  ;;  %v1070_v35 = vadd.f32 %v1038_v34, %v968_v31  ;;  %v3870_v39 = vld [vmem:[#allocation2 + $0xa8] sm:$0xff] }
  0x62   : > { %v1575_v60 = vadd.f32 %v1543_v48, %v1474_v18  ;;  %v3872_v19 = vld [vmem:[#allocation2 + $0xa9] sm:$0xff]  ;;  %3139 = vmatmul.mubr.msk.f32.gmra.mrb[8].mxu1 %vm488_vm0, %v2196_v38  ;;  %v937_v0 = vmul.f32 %v3395_v7, %v3759_v16  ;;  %v1343_v36 = vmul.f32 %v3498_v13, %v3870_v39  ;;  %v635_v48 = vadd.f32 %v3371_v3, %v596_v54 }
  0x63   : > { %v3874_v29 = vld [vmem:[#allocation2 + $0xaa] sm:$0xff]  ;;  %v1475_v57 = vadd.f32 %v1443_v9, %v1374_v51  ;;  %v1444_v5 = vmul.f32 %v3503_v14, %v3872_v19  ;;  %v1171_v49 = vadd.f32 %v1139_v26, %v1070_v35  ;;  %v868_v22 = vadd.f32 %v836_v52, %v735_v63 }
  0x64   : > { %v1545_v32 = vmul.f32 %v3514_v20, %v3874_v29  ;;  %v1614_v33 = vmul.f32 %v3635_v28, %v1575_v60  ;;  %v1039_v23 = vmul.f32 %v3460_v55, %v3843_v11  ;;  %v1140_v43 = vmul.f32 %v3465_v56, %v3845_v21  ;;  %668 = vst.msk [vmem:[#allocation2 + $0xb2] sm:$0xff] %vm488_vm0, %v635_v48  ;;  %v4921_v51 = vld [vmem:[#allocation3_spill] sm:$0xff]  ;;  %v2595_v60 = vld [vmem:[%s3447_s26 + $0x78] sm:$0xff] }
  0x65   : > { %v1576_v16 = vadd.f32 %v1544_v47, %v1475_v57  ;;  %v1241_v25 = vmul.f32 %v3493_v12, %v3847_v10  ;;  %v1272_v30 = vadd.f32 %v1240_v41, %v1171_v49  ;;  %v969_v34 = vadd.f32 %v937_v0, %v868_v22  ;;  %v3912_v47 = vld [vmem:[%s3385_s30 + $0x78] sm:$0xff]  ;;  %v2594_v35 = vld [vmem:[%s3447_s26 + $0x70] sm:$0xff]  ;;  %2689 = vperm.xlu1 %3185, %v2595_v60   ;;  %v3994_v60 = vld [vmem:[%s3385_s30 + $0x88] sm:$0xff] }
  0x66   : > { %v1653_v59 = vadd.f32 %v3651_v37, %v1614_v33  ;;  %v2158_v26 = vmul.f32 %v3400_v8, %v3474_v61  ;;  %v597_v44 = vmul.f32 %v3346_v2, %v3888_v62  ;;  %v736_v1 = vmul.f32 %v3376_v4, %v3815_v40  ;;  %v2597_v33 = vld [vmem:[%s3447_s26 + $0x88] sm:$0xff]  ;;  %2684 = vperm.xlu0 %3184, %v2594_v35  }
  0x67   : > { %v1615_v45 = vmul.f32 %v3635_v28, %v1576_v16  ;;  %v837_v46 = vmul.f32 %v3390_v6, %v3817_v50  ;;  %v1375_v41 = vadd.f32 %v1343_v36, %v1272_v30  ;;  %v1071_v42 = vadd.f32 %v1039_v23, %v969_v34  ;;  %v4922_v23 = vld [vmem:[#allocation4_spill] sm:$0xff]  ;;  %v3956_v30 = vld [vmem:[%s3385_s30 + $0x80] sm:$0xff] }
  0x68   : > { %3088 = vmatprep.mubr.msk.f32.mxu0 %vm488_vm0, %v1653_v59  ;;  %v2197_v9 = vadd.f32 %v3413_v17, %v2158_v26  ;;  %v938_v61 = vmul.f32 %v3395_v7, %v3819_v15  ;;  %v636_v40 = vadd.f32 %v3371_v3, %v597_v44  ;;  %v1040_v50 = vmul.f32 %v3460_v55, %v3870_v39  ;;  %v2596_v34 = vld [vmem:[%s3447_s26 + $0x80] sm:$0xff] }
  0x69   : > { %v1654_v24 = vadd.f32 %v3651_v37, %v1615_v45  ;;  %v869_v18 = vadd.f32 %v837_v46, %v736_v1  ;;  %v1476_v31 = vadd.f32 %v1444_v5, %v1375_v41  ;;  %v1172_v38 = vadd.f32 %v1140_v43, %v1071_v42  ;;  %2699 = vperm.xlu1 %3185, %v2597_v33  }
  0x6a   : > { %3141 = vmatprep.mubr.msk.f32.mxu1 %vm488_vm0, %v2197_v9  ;;  %v1141_v15 = vmul.f32 %v3465_v56, %v3872_v19  ;;  %v1242_v58 = vmul.f32 %v3493_v12, %v3874_v29  ;;  %669 = vst.msk [vmem:[#allocation2 + $0xc2] sm:$0xff] %vm488_vm0, %v636_v40  ;;  %v2159_v54 = vmul.f32 %v3400_v8, %v4921_v51 }
  0x6b   : > { %3089 = vmatmul.mubr.msk.f32.gmra.mrb[8].mxu0 %vm488_vm0, %v1654_v24  ;;  %v970_v27 = vadd.f32 %v938_v61, %v869_v18  ;;  %v598_v63 = vmul.f32 %v3346_v2, %v3912_v47  ;;  %v737_v52 = vmul.f32 %v3376_v4, %v3843_v11  ;;  %v1577_v0 = vadd.f32 %v1545_v32, %v1476_v31  ;;  %v3938_v49 = vld [vmem:[#allocation2 + $0xb0] sm:$0xff] }
  0x6c   : > { %v1273_v57 = vadd.f32 %v1241_v25, %v1172_v38  ;;  %v838_v36 = vmul.f32 %v3390_v6, %v3845_v21  ;;  %v939_v5 = vmul.f32 %v3395_v7, %v3847_v10  ;;  %v3940_v48 = vld [vmem:[#allocation2 + $0xb1] sm:$0xff]  ;;  %v2198_v32 = vadd.f32 %v3413_v17, %v2159_v54  ;;  %2694 = vperm.xlu0 %3184, %v2596_v34  }
  0x6d   : > { %v3942_v22 = vld [vmem:[#allocation2 + $0xb2] sm:$0xff]  ;;  %v1072_v11 = vadd.f32 %v1040_v50, %v970_v27  ;;  %v637_v16 = vadd.f32 %v3371_v3, %v598_v63  ;;  %v2160_v21 = vmul.f32 %v3400_v8, %v4922_v23  ;;  %v1616_v10 = vmul.f32 %v3635_v28, %v1577_v0 }
  0x6e   : > { %v1344_v43 = vmul.f32 %v3498_v13, %v3938_v49  ;;  %v1445_v25 = vmul.f32 %v3503_v14, %v3940_v48  ;;  %v1546_v59 = vmul.f32 %v3514_v20, %v3942_v22  ;;  %3142 = vmatmul.mubr.msk.f32.gmra.mrb[10].mxu1 %vm488_vm0, %v2198_v32  ;;  %v870_v45 = vadd.f32 %v838_v36, %v737_v52  ;;  %v2599_v50 = vld [vmem:[%s3447_s26 + $0x98] sm:$0xff]  ;;  %v2598_v31 = vld [vmem:[%s3447_s26 + $0x90] sm:$0xff] }
  0x6f   : > { %v1173_v26 = vadd.f32 %v1141_v15, %v1072_v11  ;;  %670 = vst.msk [vmem:[#allocation2 + $0xca] sm:$0xff] %vm488_vm0, %v637_v16  ;;  %v1041_v44 = vmul.f32 %v3460_v55, %v3938_v49  ;;  %v1142_v1 = vmul.f32 %v3465_v56, %v3940_v48  ;;  %v1655_v46 = vadd.f32 %v3651_v37, %v1616_v10 }
  0x70   : > { %v1376_v41 = vadd.f32 %v1344_v43, %v1273_v57  ;;  %v1243_v42 = vmul.f32 %v3493_v12, %v3942_v22  ;;  %v2199_v9 = vadd.f32 %v3413_v17, %v2160_v21  ;;  %v971_v24 = vadd.f32 %v939_v5, %v870_v45  ;;  %2709 = vperm.xlu1 %3185, %v2599_v50   ;;  %v2601_v5 = vld [vmem:[%s3447_s26 + $0xa8] sm:$0xff]  ;;  %v4015_v21 = vld [vmem:[%s4903_s2] ss:$0 sm:$0xff] }
  0x71   : > { %v1274_v61 = vadd.f32 %v1242_v58, %v1173_v26  ;;  %v599_v40 = vmul.f32 %v3346_v2, %v3956_v30  ;;  %v738_v18 = vmul.f32 %v3376_v4, %v3870_v39  ;;  %3091 = vmatprep.mubr.msk.f32.mxu0 %vm488_vm0, %v1655_v46  ;;  %v3976_v15 = vld [vmem:[#allocation2 + $0xc0] sm:$0xff]  ;;  %v839_v2 = vmul.f32 %v3390_v6, %v3872_v19 }
  0x72   : > { %v1477_v38 = vadd.f32 %v1445_v25, %v1376_v41  ;;  %v3978_v27 = vld [vmem:[#allocation2 + $0xc1] sm:$0xff]  ;;  %3144 = vmatprep.mubr.msk.f32.mxu1 %vm488_vm0, %v2199_v9  ;;  %v940_v39 = vmul.f32 %v3395_v7, %v3874_v29  ;;  %v1345_v58 = vmul.f32 %v3498_v13, %v3976_v15  ;;  %v1073_v52 = vadd.f32 %v1041_v44, %v971_v24 }
  0x73   : > { %v3980_v51 = vld [vmem:[#allocation2 + $0xc2] sm:$0xff]  ;;  %v1446_v54 = vmul.f32 %v3503_v14, %v3978_v27  ;;  %v638_v0 = vadd.f32 %v3371_v3, %v599_v40  ;;  %v871_v6 = vadd.f32 %v839_v2, %v738_v18  ;;  %v1042_v7 = vmul.f32 %v3460_v55, %v3976_v15  ;;  %2704 = vperm.xlu0 %3184, %v2598_v31   ;;  %v2602_v18 = vld [vmem:[%s3447_s26 + $0xb0] sm:$0xff] }
  0x74   : > { %v1547_v63 = vmul.f32 %v3514_v20, %v3980_v51  ;;  %v1578_v35 = vadd.f32 %v1546_v59, %v1477_v38  ;;  %v1377_v19 = vadd.f32 %v1345_v58, %v1274_v61  ;;  %v1174_v29 = vadd.f32 %v1142_v1, %v1073_v52  ;;  %v2600_v43 = vld [vmem:[%s3447_s26 + $0xa0] sm:$0xff]  ;;  %2719 = vperm.xlu1 %3185, %v2601_v5   ;;  %v2603_v61 = vld [vmem:[%s3447_s26 + $0xb8] sm:$0xff] }
  0x75   : > { %v1143_v57 = vmul.f32 %v3465_v56, %v3978_v27  ;;  %v1244_v36 = vmul.f32 %v3493_v12, %v3980_v51  ;;  %671 = vst.msk [vmem:[#allocation2 + $0xda] sm:$0xff] %vm488_vm0, %v638_v0  ;;  %v972_v16 = vadd.f32 %v940_v39, %v871_v6  ;;  %v2161_v23 = vmul.f32 %v3400_v8, %v3839_v53 }
  0x76   : > { %v1617_v33 = vmul.f32 %v3635_v28, %v1578_v35  ;;  %v4005_v11 = vld [vmem:[#allocation2 + $0xc8] sm:$0xff]  ;;  %v600_v10 = vmul.f32 %v4015_v21, %v3994_v60  ;;  %v1478_v25 = vadd.f32 %v1446_v54, %v1377_v19  ;;  %v1275_v59 = vadd.f32 %v1243_v42, %v1174_v29 }
  0x77   : > { %v4007_v32 = vld [vmem:[#allocation2 + $0xc9] sm:$0xff]  ;;  %v1346_v34 = vmul.f32 %v3498_v13, %v4005_v11  ;;  %v1074_v44 = vadd.f32 %v1042_v7, %v972_v16  ;;  %v2200_v1 = vadd.f32 %v3413_v17, %v2161_v23  ;;  %v739_v9 = vmul.f32 %v3376_v4, %v3938_v49  ;;  %2714 = vperm.xlu0 %3184, %v2600_v43   ;;  %v4039_v17 = vld [vmem:[%s4902_s1 + $0x1] ss:$0 sm:$0xff]  ;;  %v4097_v23 = vld [vmem:[%s4911_s10] ss:$0 sm:$0xff] }
  0x78   : > { %v1447_v26 = vmul.f32 %v3503_v14, %v4007_v32  ;;  %v4024_v45 = vld [vmem:[#allocation2 + $0xca] sm:$0xff]  ;;  %v1656_v8 = vadd.f32 %v3651_v37, %v1617_v33  ;;  %v1579_v46 = vadd.f32 %v1547_v63, %v1478_v25  ;;  %v639_v42 = vadd.f32 %v3371_v3, %v600_v10  ;;  %v4046_v3 = vld [vmem:[%s4902_s1 + $0x2] ss:$0 sm:$0xff]  ;;  %2729 = vperm.xlu1 %3185, %v2603_v61   ;;  %v4103_v10 = vld [vmem:[%s4904_s3] ss:$0 sm:$0xff] }
  0x79   : > { %v1548_v53 = vmul.f32 %v3514_v20, %v4024_v45  ;;  %v1378_v41 = vadd.f32 %v1346_v34, %v1275_v59  ;;  %v1175_v24 = vadd.f32 %v1143_v57, %v1074_v44  ;;  %3145 = vmatmul.mubr.msk.f32.gmra.mrb[12].mxu1 %vm488_vm0, %v2200_v1  ;;  %v840_v40 = vmul.f32 %v4039_v17, %v3940_v48  ;;  %v4051_v49 = vld [vmem:[%s3385_s30 + $0x90] sm:$0xff]  ;;  %v2605_v63 = vld [vmem:[%s3447_s26 + $0xc8] sm:$0xff]  ;;  %v4109_v59 = vld [vmem:[%s3385_s30 + $0x98] sm:$0xff] }
  0x7a   : > { %3092 = vmatmul.mubr.msk.f32.gmra.mrb[10].mxu0 %vm488_vm0, %v1656_v8  ;;  %v941_v4 = vmul.f32 %v4046_v3, %v3942_v22  ;;  %v1618_v50 = vmul.f32 %v3635_v28, %v1579_v46  ;;  %672 = vst.msk [vmem:[#allocation2 + $0xe2] sm:$0xff] %vm488_vm0, %v639_v42  ;;  %v1043_v48 = vmul.f32 %v3460_v55, %v4005_v11  ;;  %v4065_v22 = vld [vmem:[%s4910_s9] ss:$0 sm:$0xff]  ;;  %v2607_v42 = vld [vmem:[%s3447_s26 + $0xd8] sm:$0xff] }
  0x7b   : > { %v1479_v31 = vadd.f32 %v1447_v26, %v1378_v41  ;;  %v1144_v38 = vmul.f32 %v3465_v56, %v4007_v32  ;;  %v1276_v2 = vadd.f32 %v1244_v36, %v1175_v24  ;;  %v872_v39 = vadd.f32 %v840_v40, %v739_v9  ;;  %2724 = vperm.xlu0 %3184, %v2602_v18   ;;  %v2604_v34 = vld [vmem:[%s3447_s26 + $0xc0] sm:$0xff] }
  0x7c   : > { %v1245_v58 = vmul.f32 %v3493_v12, %v4024_v45  ;;  %v2162_v54 = vmul.f32 %v4065_v22, %v3888_v62  ;;  %v1657_v52 = vadd.f32 %v3651_v37, %v1618_v50  ;;  %v4071_v0 = vld [vmem:[#allocation2 + $0xd8] sm:$0xff]  ;;  %v601_v19 = vmul.f32 %v4015_v21, %v4051_v49  ;;  %v4082_v62 = vld [vmem:[%s4902_s1] ss:$0 sm:$0xff]  ;;  %2739 = vperm.xlu1 %3185, %v2605_v63  }
  0x7d   : > { %v1580_v35 = vadd.f32 %v1548_v53, %v1479_v31  ;;  %v4073_v6 = vld [vmem:[#allocation2 + $0xd9] sm:$0xff]  ;;  %v740_v29 = vmul.f32 %v4082_v62, %v3976_v15  ;;  %v1347_v57 = vmul.f32 %v3498_v13, %v4071_v0  ;;  %v973_v33 = vadd.f32 %v941_v4, %v872_v39 }
  0x7e   : > { %v4075_v7 = vld [vmem:[#allocation2 + $0xda] sm:$0xff]  ;;  %v1448_v36 = vmul.f32 %v3503_v14, %v4073_v6  ;;  %3094 = vmatprep.mubr.msk.f32.mxu0 %vm488_vm0, %v1657_v52  ;;  %v2201_v15 = vadd.f32 %v4097_v23, %v2162_v54  ;;  %v640_v43 = vadd.f32 %v4103_v10, %v601_v19  ;;  %v841_v25 = vmul.f32 %v4039_v17, %v3978_v27 }
  0x7f   : > { %v1549_v5 = vmul.f32 %v3514_v20, %v4075_v7  ;;  %v1619_v16 = vmul.f32 %v3635_v28, %v1580_v35  ;;  %v1379_v26 = vadd.f32 %v1347_v57, %v1276_v2  ;;  %v1075_v8 = vadd.f32 %v1043_v48, %v973_v33  ;;  %2734 = vperm.xlu0 %3184, %v2604_v34   ;;  %v2606_v2 = vld [vmem:[%s3447_s26 + $0xd0] sm:$0xff]  ;;  %v4174_v57 = vld [vmem:[%s4902_s1 + $0x6] ss:$0 sm:$0xff] }
  0x80   : > { %v942_v53 = vmul.f32 %v4046_v3, %v3980_v51  ;;  %v1044_v44 = vmul.f32 %v3460_v55, %v4071_v0  ;;  %3147 = vmatprep.mubr.msk.f32.mxu1 %vm488_vm0, %v2201_v15  ;;  %673 = vst.msk [vmem:[#allocation2 + $0xf2] sm:$0xff] %vm488_vm0, %v640_v43  ;;  %v873_v46 = vadd.f32 %v841_v25, %v740_v29  ;;  %v2608_v33 = vld [vmem:[%s3447_s26 + $0xe0] sm:$0xff] }
  0x81   : > { %v1658_v1 = vadd.f32 %v3651_v37, %v1619_v16  ;;  %v1145_v27 = vmul.f32 %v3465_v56, %v4073_v6  ;;  %v1246_v41 = vmul.f32 %v3493_v12, %v4075_v7  ;;  %v1480_v9 = vadd.f32 %v1448_v36, %v1379_v26  ;;  %v4124_v61 = vld [vmem:[#allocation2 + $0xe0] sm:$0xff]  ;;  %2749 = vperm.xlu1 %3185, %v2607_v42  }
  0x82   : > { %v1176_v51 = vadd.f32 %v1144_v38, %v1075_v8  ;;  %v4126_v55 = vld [vmem:[#allocation2 + $0xe1] sm:$0xff]  ;;  %v2163_v40 = vmul.f32 %v4065_v22, %v3912_v47  ;;  %v602_v4 = vmul.f32 %v4015_v21, %v4109_v59  ;;  %v1348_v56 = vmul.f32 %v3498_v13, %v4124_v61 }
  0x83   : > { %v4128_v24 = vld [vmem:[#allocation2 + $0xe2] sm:$0xff]  ;;  %3095 = vmatmul.mubr.msk.f32.gmra.mrb[12].mxu0 %vm488_vm0, %v1658_v1  ;;  %v1449_v12 = vmul.f32 %v3503_v14, %v4126_v55  ;;  %v974_v50 = vadd.f32 %v942_v53, %v873_v46  ;;  %v1581_v31 = vadd.f32 %v1549_v5, %v1480_v9  ;;  %v741_v54 = vmul.f32 %v4082_v62, %v4005_v11 }
  0x84   : > { %v1550_v18 = vmul.f32 %v3514_v20, %v4128_v24  ;;  %v1277_v47 = vadd.f32 %v1245_v58, %v1176_v51  ;;  %v2202_v48 = vadd.f32 %v4097_v23, %v2163_v40  ;;  %v641_v38 = vadd.f32 %v4103_v10, %v602_v4  ;;  %v4151_v20 = vld [vmem:[%s3385_s30 + $0xa0] sm:$0xff]  ;;  %v2609_v58 = vld [vmem:[%s3447_s26 + $0xe8] sm:$0xff]  ;;  %2744 = vperm.xlu0 %3184, %v2606_v2   ;;  %v2611_v4 = vld [vmem:[%s3447_s26 + $0xf8] sm:$0xff] }
  0x85   : > { %v1076_v39 = vadd.f32 %v1044_v44, %v974_v50  ;;  %v842_v13 = vmul.f32 %v4039_v17, %v4007_v32  ;;  %v943_v14 = vmul.f32 %v4046_v3, %v4024_v45  ;;  %v1620_v63 = vmul.f32 %v3635_v28, %v1581_v31  ;;  %v4160_v11 = vld [vmem:[%s4902_s1 + $0x4] ss:$0 sm:$0xff]  ;;  %v4167_v45 = vld [vmem:[%s4902_s1 + $0x5] ss:$0 sm:$0xff]  ;;  %2759 = vperm.xlu1 %3185, %v2609_v58   ;;  %v4195_v53 = vld [vmem:[%s4902_s1 + $0x8] ss:$0 sm:$0xff] }
  0x86   : > { %v1380_v52 = vadd.f32 %v1348_v56, %v1277_v47  ;;  %3148 = vmatmul.mubr.msk.f32.gmra.mrb[14].mxu1 %vm488_vm0, %v2202_v48  ;;  %674 = vst.msk [vmem:[#allocation2 + $0xfa] sm:$0xff] %vm488_vm0, %v641_v38  ;;  %v1045_v32 = vmul.f32 %v4160_v11, %v4124_v61  ;;  %v1146_v35 = vmul.f32 %v4167_v45, %v4126_v55  ;;  %v4202_v1 = vld [vmem:[%s4902_s1 + $0x9] ss:$0 sm:$0xff]  ;;  %v2610_v38 = vld [vmem:[%s3447_s26 + $0xf0] sm:$0xff] }
  0x87   : > { %v1177_v19 = vadd.f32 %v1145_v27, %v1076_v39  ;;  %v874_v29 = vadd.f32 %v842_v13, %v741_v54  ;;  %v1247_v36 = vmul.f32 %v4174_v57, %v4128_v24  ;;  %v2164_v5 = vmul.f32 %v4065_v22, %v3956_v30  ;;  %v4182_v43 = vld [vmem:[#allocation2 + $0xf0] sm:$0xff]  ;;  %v4217_v40 = vld [vmem:[%s3385_s30 + $0xa8] sm:$0xff] }
  0x88   : > { %v1659_v16 = vadd.f32 %v3651_v37, %v1620_v63  ;;  %v1481_v15 = vadd.f32 %v1449_v12, %v1380_v52  ;;  %v4184_v25 = vld [vmem:[#allocation2 + $0xf1] sm:$0xff]  ;;  %v603_v26 = vmul.f32 %v4015_v21, %v4151_v20  ;;  %v742_v8 = vmul.f32 %v4082_v62, %v4071_v0  ;;  %v4209_v0 = vld [vmem:[%s4902_s1 + $0xa] ss:$0 sm:$0xff]  ;;  %2754 = vperm.xlu0 %3184, %v2608_v33  }
  0x89   : > { %v4186_v34 = vld [vmem:[#allocation2 + $0xf2] sm:$0xff]  ;;  %v1278_v30 = vadd.f32 %v1246_v41, %v1177_v19  ;;  %v1349_v44 = vmul.f32 %v4195_v53, %v4182_v43  ;;  %v1450_v46 = vmul.f32 %v4202_v1, %v4184_v25  ;;  %v975_v42 = vadd.f32 %v943_v14, %v874_v29  ;;  %2769 = vperm.xlu1 %3185, %v2611_v4  }
  0x8a   : > { %v1551_v27 = vmul.f32 %v4209_v0, %v4186_v34  ;;  %3097 = vmatprep.mubr.msk.f32.mxu0 %vm488_vm0, %v1659_v16  ;;  %v1582_v41 = vadd.f32 %v1550_v18, %v1481_v15  ;;  %v2203_v9 = vadd.f32 %v4097_v23, %v2164_v5  ;;  %v642_v51 = vadd.f32 %v4103_v10, %v603_v26 }
  0x8b   : > { %v1381_v56 = vadd.f32 %v1349_v44, %v1278_v30  ;;  %v843_v12 = vmul.f32 %v4039_v17, %v4073_v6  ;;  %v944_v50 = vmul.f32 %v4046_v3, %v4075_v7  ;;  %v1046_v31 = vmul.f32 %v4160_v11, %v4182_v43 }
  0x8c   : > { %v1621_v18 = vmul.f32 %v3635_v28, %v1582_v41  ;;  %v1077_v47 = vadd.f32 %v1045_v32, %v975_v42  ;;  %3150 = vmatprep.mubr.msk.f32.mxu1 %vm488_vm0, %v2203_v9  ;;  %675 = vst.msk [vmem:[#allocation2 + $0x10a] sm:$0xff] %vm488_vm0, %v642_v51  ;;  %v1147_v48 = vmul.f32 %v4167_v45, %v4184_v25 }
  0x8d   : > { %v1248_v6 = vmul.f32 %v4174_v57, %v4186_v34  ;;  %v1482_v2 = vadd.f32 %v1450_v46, %v1381_v56  ;;  %v4234_v7 = vld [vmem:[#allocation2 + $0xf8] sm:$0xff]  ;;  %v875_v54 = vadd.f32 %v843_v12, %v742_v8  ;;  %v2165_v13 = vmul.f32 %v4065_v22, %v3994_v60  ;;  %2764 = vperm.xlu0 %3184, %v2610_v38   ;;  %v4259_v8 = vld [vmem:[%s3385_s30 + $0xb0] sm:$0xff] }
  0x8e   : > { %v4236_v39 = vld [vmem:[#allocation2 + $0xf9] sm:$0xff]  ;;  %v604_v14 = vmul.f32 %v4015_v21, %v4217_v40  ;;  %v1660_v58 = vadd.f32 %v3651_v37, %v1621_v18  ;;  %v1178_v63 = vadd.f32 %v1146_v35, %v1077_v47  ;;  %v1350_v52 = vmul.f32 %v4195_v53, %v4234_v7 }
  0x8f   : > { %v1451_v32 = vmul.f32 %v4202_v1, %v4236_v39  ;;  %v4247_v19 = vld [vmem:[#allocation2 + $0xfa] sm:$0xff]  ;;  %v1583_v29 = vadd.f32 %v1551_v27, %v1482_v2  ;;  %v976_v5 = vadd.f32 %v944_v50, %v875_v54  ;;  %v2204_v33 = vadd.f32 %v4097_v23, %v2165_v13 }
  0x90   : > { %v1552_v60 = vmul.f32 %v4209_v0, %v4247_v19  ;;  %3098 = vmatmul.mubr.msk.f32.gmra.mrb[14].mxu0 %vm488_vm0, %v1660_v58  ;;  %v1279_v16 = vadd.f32 %v1247_v36, %v1178_v63  ;;  %v643_v35 = vadd.f32 %v4103_v10, %v604_v14  ;;  %v743_v15 = vmul.f32 %v4082_v62, %v4124_v61  ;;  %v4299_v14 = vld [vmem:[%s3385_s30 + $0xb8] sm:$0xff] }
  0x91   : > { %v844_v26 = vmul.f32 %v4039_v17, %v4126_v55  ;;  %v1622_v30 = vmul.f32 %v3635_v28, %v1583_v29  ;;  %v1078_v44 = vadd.f32 %v1046_v31, %v976_v5  ;;  %3151 = vmatmul.mubr.msk.f32.gmra.mrb[16].mxu1 %vm488_vm0, %v2204_v33  ;;  %v945_v46 = vmul.f32 %v4046_v3, %v4128_v24 }
  0x92   : > { %v1047_v36 = vmul.f32 %v4160_v11, %v4234_v7  ;;  %v1382_v27 = vadd.f32 %v1350_v52, %v1279_v16  ;;  %676 = vst.msk [vmem:[#allocation2 + $0x112] sm:$0xff] %vm488_vm0, %v643_v35  ;;  %v1148_v55 = vmul.f32 %v4167_v45, %v4236_v39  ;;  %v1249_v41 = vmul.f32 %v4174_v57, %v4247_v19 }
  0x93   : > { %v876_v61 = vadd.f32 %v844_v26, %v743_v15  ;;  %v1661_v28 = vadd.f32 %v3651_v37, %v1622_v30  ;;  %v1179_v42 = vadd.f32 %v1147_v48, %v1078_v44  ;;  %v4273_v9 = vld [vmem:[#allocation2 + $0x108] sm:$0xff]  ;;  %v2166_v4 = vmul.f32 %v4065_v22, %v4051_v49  ;;  %v4330_v30 = vld [vmem:[%s4906_s5] ss:$0 sm:$0xff] }
  0x94   : > { %v4275_v51 = vld [vmem:[#allocation2 + $0x109] sm:$0xff]  ;;  %v605_v56 = vmul.f32 %v4015_v21, %v4259_v8  ;;  %v1483_v12 = vadd.f32 %v1451_v32, %v1382_v27  ;;  %v1351_v50 = vmul.f32 %v4195_v53, %v4273_v9  ;;  %v744_v2 = vmul.f32 %v4082_v62, %v4182_v43 }
  0x95   : > { %v4277_v24 = vld [vmem:[#allocation2 + $0x10a] sm:$0xff]  ;;  %v1452_v37 = vmul.f32 %v4202_v1, %v4275_v51  ;;  %3100 = vmatprep.mubr.msk.f32.mxu0 %vm488_vm0, %v1661_v28  ;;  %v1280_v18 = vadd.f32 %v1248_v6, %v1179_v42  ;;  %v977_v47 = vadd.f32 %v945_v46, %v876_v61  ;;  %v2205_v48 = vadd.f32 %v4097_v23, %v2166_v4  ;;  %v4341_v28 = vld [vmem:[%s3385_s30 + $0xc0] sm:$0xff] }
  0x96   : > { %v1553_v31 = vmul.f32 %v4209_v0, %v4277_v24  ;;  %v644_v49 = vadd.f32 %v4103_v10, %v605_v56  ;;  %v1584_v38 = vadd.f32 %v1552_v60, %v1483_v12  ;;  %v845_v54 = vmul.f32 %v4039_v17, %v4184_v25  ;;  %v4310_v25 = vld [vmem:[%s4905_s4] ss:$0 sm:$0xff] }
  0x97   : > { %v946_v13 = vmul.f32 %v4046_v3, %v4186_v34  ;;  %v1383_v58 = vadd.f32 %v1351_v50, %v1280_v18  ;;  %v1079_v63 = vadd.f32 %v1047_v36, %v977_v47  ;;  %3153 = vmatprep.mubr.msk.f32.mxu1 %vm488_vm0, %v2205_v48  ;;  %v1048_v6 = vmul.f32 %v4160_v11, %v4273_v9 }
  0x98   : > { %677 = vst.msk [vmem:[#allocation2 + $0x122] sm:$0xff] %vm488_vm0, %v644_v49  ;;  %v1149_v43 = vmul.f32 %v4167_v45, %v4275_v51  ;;  %v1623_v34 = vmul.f32 %v4310_v25, %v1584_v38  ;;  %v877_v52 = vadd.f32 %v845_v54, %v744_v2  ;;  %v1250_v32 = vmul.f32 %v4174_v57, %v4277_v24 }
  0x99   : > { %v2167_v29 = vmul.f32 %v4065_v22, %v4109_v59  ;;  %v1484_v60 = vadd.f32 %v1452_v37, %v1383_v58  ;;  %v1180_v5 = vadd.f32 %v1148_v55, %v1079_v63  ;;  %v4317_v33 = vld [vmem:[#allocation2 + $0x110] sm:$0xff]  ;;  %v606_v15 = vmul.f32 %v4015_v21, %v4299_v14 }
  0x9a   : > { %v4319_v16 = vld [vmem:[#allocation2 + $0x111] sm:$0xff]  ;;  %v745_v26 = vmul.f32 %v4082_v62, %v4234_v7  ;;  %v1662_v59 = vadd.f32 %v4330_v30, %v1623_v34  ;;  %v1352_v44 = vmul.f32 %v4195_v53, %v4317_v33  ;;  %v978_v55 = vadd.f32 %v946_v13, %v877_v52 }
  0x9b   : > { %v4321_v35 = vld [vmem:[#allocation2 + $0x112] sm:$0xff]  ;;  %v1453_v46 = vmul.f32 %v4202_v1, %v4319_v16  ;;  %v1585_v27 = vadd.f32 %v1553_v31, %v1484_v60  ;;  %v1281_v61 = vadd.f32 %v1249_v41, %v1180_v5  ;;  %v2206_v7 = vadd.f32 %v4097_v23, %v2167_v29  ;;  %v4381_v5 = vld [vmem:[%s3385_s30 + $0xc8] sm:$0xff] }
  0x9c   : > { %v1554_v36 = vmul.f32 %v4209_v0, %v4321_v35  ;;  %3101 = vmatmul.mubr.msk.f32.gmra.mrb[16].mxu0 %vm488_vm0, %v1662_v59  ;;  %v645_v42 = vadd.f32 %v4103_v10, %v606_v15  ;;  %v846_v4 = vmul.f32 %v4039_v17, %v4236_v39  ;;  %v947_v56 = vmul.f32 %v4046_v3, %v4247_v19 }
  0x9d   : > { %v1049_v12 = vmul.f32 %v4160_v11, %v4317_v33  ;;  %v1624_v41 = vmul.f32 %v4310_v25, %v1585_v27  ;;  %v1384_v50 = vadd.f32 %v1352_v44, %v1281_v61  ;;  %v1080_v37 = vadd.f32 %v1048_v6, %v978_v55  ;;  %3154 = vmatmul.mubr.msk.f32.gmra.mrb[18].mxu1 %vm488_vm0, %v2206_v7 }
  0x9e   : > { %v1150_v31 = vmul.f32 %v4167_v45, %v4319_v16  ;;  %678 = vst.msk [vmem:[#allocation2 + $0x12a] sm:$0xff] %vm488_vm0, %v645_v42  ;;  %v878_v39 = vadd.f32 %v846_v4, %v745_v26  ;;  %v1251_v19 = vmul.f32 %v4174_v57, %v4321_v35  ;;  %v2168_v47 = vmul.f32 %v4065_v22, %v4151_v20 }
  0x9f   : > { %v4355_v18 = vld [vmem:[#allocation2 + $0x120] sm:$0xff]  ;;  %v607_v48 = vmul.f32 %v4015_v21, %v4341_v28  ;;  %v1663_v49 = vadd.f32 %v4330_v30, %v1624_v41  ;;  %v1485_v38 = vadd.f32 %v1453_v46, %v1384_v50  ;;  %v1181_v2 = vadd.f32 %v1149_v43, %v1080_v37 }
  0xa0   : > { %v1353_v54 = vmul.f32 %v4195_v53, %v4355_v18  ;;  %v4367_v13 = vld [vmem:[#allocation2 + $0x121] sm:$0xff]  ;;  %v979_v6 = vadd.f32 %v947_v56, %v878_v39  ;;  %v2207_v34 = vadd.f32 %v4097_v23, %v2168_v47  ;;  %v746_v60 = vmul.f32 %v4082_v62, %v4273_v9 }
  0xa1   : > { %v4369_v58 = vld [vmem:[#allocation2 + $0x122] sm:$0xff]  ;;  %v1454_v63 = vmul.f32 %v4202_v1, %v4367_v13  ;;  %3103 = vmatprep.mubr.msk.f32.mxu0 %vm488_vm0, %v1663_v49  ;;  %v1586_v52 = vadd.f32 %v1554_v36, %v1485_v38  ;;  %v1282_v43 = vadd.f32 %v1250_v32, %v1181_v2  ;;  %v646_v29 = vadd.f32 %v4103_v10, %v607_v48  ;;  %v4421_v49 = vld [vmem:[%s3385_s30 + $0xd0] sm:$0xff] }
  0xa2   : > { %v1555_v20 = vmul.f32 %v4209_v0, %v4369_v58  ;;  %v1081_v15 = vadd.f32 %v1049_v12, %v979_v6  ;;  %3156 = vmatprep.mubr.msk.f32.mxu1 %vm488_vm0, %v2207_v34  ;;  %v847_v26 = vmul.f32 %v4039_v17, %v4275_v51  ;;  %v948_v59 = vmul.f32 %v4046_v3, %v4277_v24 }
  0xa3   : > { %v1050_v44 = vmul.f32 %v4160_v11, %v4355_v18  ;;  %v1625_v32 = vmul.f32 %v4310_v25, %v1586_v52  ;;  %v1385_v46 = vadd.f32 %v1353_v54, %v1282_v43  ;;  %679 = vst.msk [vmem:[#allocation2 + $0x13a] sm:$0xff] %vm488_vm0, %v646_v29  ;;  %v1151_v9 = vmul.f32 %v4167_v45, %v4367_v13 }
  0xa4   : > { %v1252_v36 = vmul.f32 %v4174_v57, %v4369_v58  ;;  %v1182_v27 = vadd.f32 %v1150_v31, %v1081_v15  ;;  %v879_v61 = vadd.f32 %v847_v26, %v746_v60  ;;  %v2169_v51 = vmul.f32 %v4065_v22, %v4217_v40 }
  0xa5   : > { %v608_v24 = vmul.f32 %v4015_v21, %v4381_v5  ;;  %v1664_v55 = vadd.f32 %v4330_v30, %v1625_v32  ;;  %v1486_v7 = vadd.f32 %v1454_v63, %v1385_v46  ;;  %v4401_v42 = vld [vmem:[#allocation2 + $0x128] sm:$0xff]  ;;  %v747_v12 = vmul.f32 %v4082_v62, %v4317_v33 }
  0xa6   : > { %v4403_v4 = vld [vmem:[#allocation2 + $0x129] sm:$0xff]  ;;  %v848_v41 = vmul.f32 %v4039_v17, %v4319_v16  ;;  %v1283_v40 = vadd.f32 %v1251_v19, %v1182_v27  ;;  %v1354_v50 = vmul.f32 %v4195_v53, %v4401_v42  ;;  %v980_v47 = vadd.f32 %v948_v59, %v879_v61 }
  0xa7   : > { %v4405_v56 = vld [vmem:[#allocation2 + $0x12a] sm:$0xff]  ;;  %v1455_v37 = vmul.f32 %v4202_v1, %v4403_v4  ;;  %3104 = vmatmul.mubr.msk.f32.gmra.mrb[18].mxu0 %vm488_vm0, %v1664_v55  ;;  %v1587_v39 = vadd.f32 %v1555_v20, %v1486_v7  ;;  %v2208_v48 = vadd.f32 %v4097_v23, %v2169_v51  ;;  %v647_v33 = vadd.f32 %v4103_v10, %v608_v24  ;;  %v4459_v7 = vld [vmem:[%s3385_s30 + $0xd8] sm:$0xff] }
  0xa8   : > { %v1556_v31 = vmul.f32 %v4209_v0, %v4405_v56  ;;  %v1386_v16 = vadd.f32 %v1354_v50, %v1283_v40  ;;  %v880_v19 = vadd.f32 %v848_v41, %v747_v12  ;;  %v949_v38 = vmul.f32 %v4046_v3, %v4321_v35 }
  0xa9   : > { %v1051_v2 = vmul.f32 %v4160_v11, %v4401_v42  ;;  %v1626_v54 = vmul.f32 %v4310_v25, %v1587_v39  ;;  %v1082_v63 = vadd.f32 %v1050_v44, %v980_v47  ;;  %3157 = vmatmul.mubr.msk.f32.gmra.mrb[20].mxu1 %vm488_vm0, %v2208_v48  ;;  %680 = vst.msk [vmem:[#allocation2 + $0x142] sm:$0xff] %vm488_vm0, %v647_v33 }
  0xaa   : > { %v1152_v20 = vmul.f32 %v4167_v45, %v4403_v4  ;;  %v1253_v6 = vmul.f32 %v4174_v57, %v4405_v56  ;;  %v1487_v34 = vadd.f32 %v1455_v37, %v1386_v16  ;;  %v4434_v52 = vld [vmem:[#allocation2 + $0x138] sm:$0xff]  ;;  %v981_v43 = vadd.f32 %v949_v38, %v880_v19 }
  0xab   : > { %v4436_v35 = vld [vmem:[#allocation2 + $0x139] sm:$0xff]  ;;  %v2170_v29 = vmul.f32 %v4065_v22, %v4259_v8  ;;  %v609_v60 = vmul.f32 %v4015_v21, %v4421_v49  ;;  %v1665_v15 = vadd.f32 %v4330_v30, %v1626_v54  ;;  %v1183_v26 = vadd.f32 %v1151_v9, %v1082_v63 }
  0xac   : > { %v1355_v59 = vmul.f32 %v4195_v53, %v4434_v52  ;;  %v1456_v44 = vmul.f32 %v4202_v1, %v4436_v35  ;;  %v4447_v32 = vld [vmem:[#allocation2 + $0x13a] sm:$0xff]  ;;  %v1588_v46 = vadd.f32 %v1556_v31, %v1487_v34  ;;  %v1083_v8 = vadd.f32 %v1051_v2, %v981_v43 }
  0xad   : > { %v1557_v27 = vmul.f32 %v4209_v0, %v4447_v32  ;;  %v2209_v61 = vadd.f32 %v4097_v23, %v2170_v29  ;;  %3106 = vmatprep.mubr.msk.f32.mxu0 %vm488_vm0, %v1665_v15  ;;  %v1284_v51 = vadd.f32 %v1252_v36, %v1183_v26  ;;  %v648_v9 = vadd.f32 %v4103_v10, %v609_v60  ;;  %v4499_v15 = vld [vmem:[%s3385_s30 + $0xe0] sm:$0xff] }
  0xae   : > { %v748_v24 = vmul.f32 %v4082_v62, %v4355_v18  ;;  %v849_v55 = vmul.f32 %v4039_v17, %v4367_v13  ;;  %v1627_v12 = vmul.f32 %v4310_v25, %v1588_v46  ;;  %v1184_v41 = vadd.f32 %v1152_v20, %v1083_v8 }
  0xaf   : > { %3159 = vmatprep.mubr.msk.f32.mxu1 %vm488_vm0, %v2209_v61  ;;  %v950_v40 = vmul.f32 %v4046_v3, %v4369_v58  ;;  %v1052_v36 = vmul.f32 %v4160_v11, %v4434_v52  ;;  %v1387_v50 = vadd.f32 %v1355_v59, %v1284_v51  ;;  %681 = vst.msk [vmem:[#allocation2 + $0x152] sm:$0xff] %vm488_vm0, %v648_v9 }
  0xb0   : > { %v881_v18 = vadd.f32 %v849_v55, %v748_v24  ;;  %v1153_v13 = vmul.f32 %v4167_v45, %v4436_v35  ;;  %v1254_v37 = vmul.f32 %v4174_v57, %v4447_v32  ;;  %v1666_v31 = vadd.f32 %v4330_v30, %v1627_v12  ;;  %v4473_v47 = vld [vmem:[#allocation2 + $0x140] sm:$0xff] }
  0xb1   : > { %v1285_v39 = vadd.f32 %v1253_v6, %v1184_v41  ;;  %v4475_v48 = vld [vmem:[#allocation2 + $0x141] sm:$0xff]  ;;  %v2171_v33 = vmul.f32 %v4065_v22, %v4299_v14  ;;  %v610_v16 = vmul.f32 %v4015_v21, %v4459_v7  ;;  %v1488_v19 = vadd.f32 %v1456_v44, %v1387_v50 }
  0xb2   : > { %v4477_v58 = vld [vmem:[#allocation2 + $0x142] sm:$0xff]  ;;  %v1356_v38 = vmul.f32 %v4195_v53, %v4473_v47  ;;  %v1457_v2 = vmul.f32 %v4202_v1, %v4475_v48  ;;  %3107 = vmatmul.mubr.msk.f32.gmra.mrb[20].mxu0 %vm488_vm0, %v1666_v31  ;;  %v982_v63 = vadd.f32 %v950_v40, %v881_v18  ;;  %v749_v6 = vmul.f32 %v4082_v62, %v4401_v42 }
  0xb3   : > { %v1558_v54 = vmul.f32 %v4209_v0, %v4477_v58  ;;  %v2210_v20 = vadd.f32 %v4097_v23, %v2171_v33  ;;  %v649_v14 = vadd.f32 %v4103_v10, %v610_v16  ;;  %v1589_v34 = vadd.f32 %v1557_v27, %v1488_v19 }
  0xb4   : > { %v1388_v43 = vadd.f32 %v1356_v38, %v1285_v39  ;;  %v850_v29 = vmul.f32 %v4039_v17, %v4403_v4  ;;  %v951_v60 = vmul.f32 %v4046_v3, %v4405_v56  ;;  %v1084_v26 = vadd.f32 %v1052_v36, %v982_v63 }
  0xb5   : > { %3160 = vmatmul.mubr.msk.f32.gmra.mrb[22].mxu1 %vm488_vm0, %v2210_v20  ;;  %682 = vst.msk [vmem:[#allocation2 + $0x15a] sm:$0xff] %vm488_vm0, %v649_v14  ;;  %v1053_v59 = vmul.f32 %v4160_v11, %v4473_v47  ;;  %v1154_v42 = vmul.f32 %v4167_v45, %v4475_v48  ;;  %v1255_v44 = vmul.f32 %v4174_v57, %v4477_v58 }
  0xb6   : > { %v1628_v4 = vmul.f32 %v4310_v25, %v1589_v34  ;;  %v1489_v46 = vadd.f32 %v1457_v2, %v1388_v43  ;;  %v882_v56 = vadd.f32 %v850_v29, %v749_v6  ;;  %v2172_v27 = vmul.f32 %v4065_v22, %v4341_v28  ;;  %v4512_v61 = vld [vmem:[#allocation2 + $0x150] sm:$0xff]  ;;  %v4543_v2 = vld [vmem:[%s3385_s30 + $0xe8] sm:$0xff] }
  0xb7   : > { %v1185_v8 = vadd.f32 %v1153_v13, %v1084_v26  ;;  %v4514_v51 = vld [vmem:[#allocation2 + $0x151] sm:$0xff]  ;;  %v611_v9 = vmul.f32 %v4015_v21, %v4499_v15  ;;  %v750_v24 = vmul.f32 %v4082_v62, %v4434_v52  ;;  %v851_v55 = vmul.f32 %v4039_v17, %v4436_v35 }
  0xb8   : > { %v1667_v12 = vadd.f32 %v4330_v30, %v1628_v4  ;;  %v1590_v41 = vadd.f32 %v1558_v54, %v1489_v46  ;;  %v1357_v28 = vmul.f32 %v4195_v53, %v4512_v61  ;;  %v1458_v40 = vmul.f32 %v4202_v1, %v4514_v51  ;;  %v4527_v36 = vld [vmem:[#allocation2 + $0x152] sm:$0xff] }
  0xb9   : > { %v1286_v50 = vadd.f32 %v1254_v37, %v1185_v8  ;;  %v1559_v18 = vmul.f32 %v4209_v0, %v4527_v36  ;;  %v983_v52 = vadd.f32 %v951_v60, %v882_v56  ;;  %v2211_v13 = vadd.f32 %v4097_v23, %v2172_v27 }
  0xba   : > { %3109 = vmatprep.mubr.msk.f32.mxu0 %vm488_vm0, %v1667_v12  ;;  %v1629_v35 = vmul.f32 %v4310_v25, %v1590_v41  ;;  %v650_v31 = vadd.f32 %v4103_v10, %v611_v9  ;;  %v883_v39 = vadd.f32 %v851_v55, %v750_v24  ;;  %v952_v33 = vmul.f32 %v4046_v3, %v4447_v32  ;;  %v4572_v9 = vld [vmem:[%s3385_s30 + $0xf0] sm:$0xff] }
  0xbb   : > { %v1389_v16 = vadd.f32 %v1357_v28, %v1286_v50  ;;  %v1085_v19 = vadd.f32 %v1053_v59, %v983_v52  ;;  %3162 = vmatprep.mubr.msk.f32.mxu1 %vm488_vm0, %v2211_v13  ;;  %v1054_v37 = vmul.f32 %v4160_v11, %v4512_v61  ;;  %v1155_v38 = vmul.f32 %v4167_v45, %v4514_v51 }
  0xbc   : > { %v1668_v54 = vadd.f32 %v4330_v30, %v1629_v35  ;;  %v4546_v63 = vld [vmem:[#allocation2 + $0x158] sm:$0xff]  ;;  %683 = vst.msk [vmem:[#allocation2 + $0x16a] sm:$0xff] %vm488_vm0, %v650_v31  ;;  %v984_v32 = vadd.f32 %v952_v33, %v883_v39  ;;  %v1256_v14 = vmul.f32 %v4174_v57, %v4527_v36  ;;  %v2173_v6 = vmul.f32 %v4065_v22, %v4381_v5 }
  0xbd   : > { %v4548_v20 = vld [vmem:[#allocation2 + $0x159] sm:$0xff]  ;;  %v1490_v34 = vadd.f32 %v1458_v40, %v1389_v16  ;;  %v1186_v43 = vadd.f32 %v1154_v42, %v1085_v19  ;;  %v1358_v29 = vmul.f32 %v4195_v53, %v4546_v63  ;;  %v612_v5 = vmul.f32 %v4015_v21, %v4543_v2 }
  0xbe   : > { %v1459_v60 = vmul.f32 %v4202_v1, %v4548_v20  ;;  %v4559_v26 = vld [vmem:[#allocation2 + $0x15a] sm:$0xff]  ;;  %3110 = vmatmul.mubr.msk.f32.gmra.mrb[22].mxu0 %vm488_vm0, %v1668_v54  ;;  %v1086_v4 = vadd.f32 %v1054_v37, %v984_v32  ;;  %v2212_v46 = vadd.f32 %v4097_v23, %v2173_v6  ;;  %v751_v27 = vmul.f32 %v4082_v62, %v4473_v47 }
  0xbf   : > { %v1560_v59 = vmul.f32 %v4209_v0, %v4559_v26  ;;  %v1591_v42 = vadd.f32 %v1559_v18, %v1490_v34  ;;  %v1287_v56 = vadd.f32 %v1255_v44, %v1186_v43  ;;  %v852_v8 = vmul.f32 %v4039_v17, %v4475_v48 }
  0xc0   : > { %v1187_v24 = vadd.f32 %v1155_v38, %v1086_v4  ;;  %3163 = vmatmul.mubr.msk.f32.gmra.mrb[24].mxu1 %vm488_vm0, %v2212_v46  ;;  %v651_v55 = vadd.f32 %v4103_v10, %v612_v5  ;;  %v953_v12 = vmul.f32 %v4046_v3, %v4477_v58  ;;  %v1055_v41 = vmul.f32 %v4160_v11, %v4546_v63 }
  0xc1   : > { %v1630_v44 = vmul.f32 %v4310_v25, %v1591_v42  ;;  %v1390_v28 = vadd.f32 %v1358_v29, %v1287_v56  ;;  %v884_v47 = vadd.f32 %v852_v8, %v751_v27  ;;  %v1156_v48 = vmul.f32 %v4167_v45, %v4548_v20 }
  0xc2   : > { %v1288_v40 = vadd.f32 %v1256_v14, %v1187_v24  ;;  %684 = vst.msk [vmem:[#allocation2 + $0x172] sm:$0xff] %vm488_vm0, %v651_v55  ;;  %v1257_v50 = vmul.f32 %v4174_v57, %v4559_v26  ;;  %v2174_v18 = vmul.f32 %v4065_v22, %v4421_v49  ;;  %v613_v58 = vmul.f32 %v4015_v21, %v4572_v9 }
  0xc3   : > { %v1669_v52 = vadd.f32 %v4330_v30, %v1630_v44  ;;  %v1491_v13 = vadd.f32 %v1459_v60, %v1390_v28  ;;  %v1321_v35 = vld [vmem:[#allocation2 + $0x168] sm:$0xff]  ;;  %v985_v33 = vadd.f32 %v953_v12, %v884_v47  ;;  %v752_v16 = vmul.f32 %v4082_v62, %v4512_v61  ;;  %v4608_v61 = vld [vmem:[%s3385_s30 + $0xf8] sm:$0xff] }
  0xc4   : > { %v4591_v31 = vld [vmem:[#allocation2 + $0x169] sm:$0xff]  ;;  %v1359_v19 = vmul.f32 %v4195_v53, %v1321_v35  ;;  %v2213_v38 = vadd.f32 %v4097_v23, %v2174_v18  ;;  %v652_v14 = vadd.f32 %v4103_v10, %v613_v58  ;;  %v853_v6 = vmul.f32 %v4039_v17, %v4514_v51 }
  0xc5   : > { %v4593_v39 = vld [vmem:[#allocation2 + $0x16a] sm:$0xff]  ;;  %v1460_v49 = vmul.f32 %v4202_v1, %v4591_v31  ;;  %3112 = vmatprep.mubr.msk.f32.mxu0 %vm488_vm0, %v1669_v52  ;;  %v1592_v54 = vadd.f32 %v1560_v59, %v1491_v13  ;;  %v1087_v32 = vadd.f32 %v1055_v41, %v985_v33  ;;  %v954_v43 = vmul.f32 %v4046_v3, %v4527_v36 }
  0xc6   : > { %v1561_v37 = vmul.f32 %v4209_v0, %v4593_v39  ;;  %v1391_v34 = vadd.f32 %v1359_v19, %v1288_v40  ;;  %3165 = vmatprep.mubr.msk.f32.mxu1 %vm488_vm0, %v2213_v38  ;;  %v1056_v29 = vmul.f32 %v4160_v11, %v1321_v35  ;;  %v1157_v60 = vmul.f32 %v4167_v45, %v4591_v31 }
  0xc7   : > { %v1631_v59 = vmul.f32 %v4310_v25, %v1592_v54  ;;  %v1188_v4 = vadd.f32 %v1156_v48, %v1087_v32  ;;  %685 = vst.msk [vmem:[#allocation2 + $0x182] sm:$0xff] %vm488_vm0, %v652_v14  ;;  %v885_v46 = vadd.f32 %v853_v6, %v752_v16  ;;  %v1258_v51 = vmul.f32 %v4174_v57, %v4593_v39 }
  0xc8   : > { %v1492_v5 = vadd.f32 %v1460_v49, %v1391_v34  ;;  %v2175_v42 = vmul.f32 %v4065_v22, %v4459_v7  ;;  %v614_v36 = vmul.f32 %v4015_v21, %v4608_v61  ;;  %v753_v56 = vmul.f32 %v4082_v62, %v4546_v63 }
  0xc9   : > { %v1670_v27 = vadd.f32 %v4330_v30, %v1631_v59  ;;  %v1289_v8 = vadd.f32 %v1257_v50, %v1188_v4  ;;  %v4627_v24 = vld [vmem:[#allocation2 + $0x170] sm:$0xff]  ;;  %v986_v41 = vadd.f32 %v954_v43, %v885_v46  ;;  %v854_v44 = vmul.f32 %v4039_v17, %v4548_v20 }
  0xca   : > { %v4629_v55 = vld [vmem:[#allocation2 + $0x171] sm:$0xff]  ;;  %v1593_v7 = vadd.f32 %v1561_v37, %v1492_v5  ;;  %v1360_v21 = vmul.f32 %v4195_v53, %v4627_v24  ;;  %v2214_v48 = vadd.f32 %v4097_v23, %v2175_v42  ;;  %v653_v40 = vadd.f32 %v4103_v10, %v614_v36 }
  0xcb   : > { %v4631_v12 = vld [vmem:[#allocation2 + $0x172] sm:$0xff]  ;;  %v1461_v63 = vmul.f32 %v4202_v1, %v4629_v55  ;;  %3113 = vmatmul.mubr.msk.f32.gmra.mrb[24].mxu0 %vm488_vm0, %v1670_v27  ;;  %v1088_v47 = vadd.f32 %v1056_v29, %v986_v41  ;;  %v886_v50 = vadd.f32 %v854_v44, %v753_v56  ;;  %v955_v58 = vmul.f32 %v4046_v3, %v4559_v26 }
  0xcc   : > { %v1562_v28 = vmul.f32 %v4209_v0, %v4631_v12  ;;  %v1632_v20 = vmul.f32 %v4310_v25, %v1593_v7  ;;  %v1392_v18 = vadd.f32 %v1360_v21, %v1289_v8  ;;  %v1057_v52 = vmul.f32 %v4160_v11, %v4627_v24  ;;  %3166 = vmatmul.mubr.msk.f32.gmra.mrb[26].mxu1 %vm488_vm0, %v2214_v48 }
  0xcd   : > { %v1189_v13 = vadd.f32 %v1157_v60, %v1088_v47  ;;  %686 = vst.msk [vmem:[#allocation2 + $0x18a] sm:$0xff] %vm488_vm0, %v653_v40  ;;  %v1158_v33 = vmul.f32 %v4167_v45, %v4629_v55  ;;  %v2176_v10 = vmul.f32 %v4065_v22, %v4499_v15  ;;  %v987_v26 = vadd.f32 %v955_v58, %v886_v50  ;;  %v1325_v47 = vld [vmem:[#allocation2 + $0x198] sm:$0xff] }
  0xce   : > { %v1671_v16 = vadd.f32 %v4330_v30, %v1632_v20  ;;  %v1493_v19 = vadd.f32 %v1461_v63, %v1392_v18  ;;  %v1323_v49 = vld [vmem:[#allocation2 + $0x180] sm:$0xff]  ;;  %v754_v38 = vmul.f32 %v4082_v62, %v1321_v35  ;;  %v1259_v6 = vmul.f32 %v4174_v57, %v4631_v12 }
  0xcf   : > { %v1425_v37 = vld [vmem:[#allocation2 + $0x181] sm:$0xff]  ;;  %v1290_v54 = vadd.f32 %v1258_v51, %v1189_v13  ;;  %v1361_v32 = vmul.f32 %v4195_v53, %v1323_v49  ;;  %v1089_v43 = vadd.f32 %v1057_v52, %v987_v26  ;;  %v2215_v29 = vadd.f32 %v4097_v23, %v2176_v10  ;;  %v1427_v50 = vld [vmem:[#allocation2 + $0x199] sm:$0xff] }
  0xd0   : > { %v1462_v14 = vmul.f32 %v4202_v1, %v1425_v37  ;;  %3115 = vmatprep.mubr.msk.f32.mxu0 %vm488_vm0, %v1671_v16  ;;  %v1594_v34 = vadd.f32 %v1562_v28, %v1493_v19  ;;  %v1526_v15 = vld [vmem:[#allocation2 + $0x182] sm:$0xff]  ;;  %v855_v60 = vmul.f32 %v4039_v17, %v4591_v31  ;;  %v956_v4 = vmul.f32 %v4046_v3, %v4593_v39  ;;  %v1528_v19 = vld [vmem:[#allocation2 + $0x19a] sm:$0xff] }
  0xd1   : > { %v1393_v59 = vadd.f32 %v1361_v32, %v1290_v54  ;;  %v1563_v35 = vmul.f32 %v4209_v0, %v1526_v15  ;;  %v1190_v51 = vadd.f32 %v1158_v33, %v1089_v43  ;;  %3168 = vmatprep.mubr.msk.f32.mxu1 %vm488_vm0, %v2215_v29  ;;  %v1058_v42 = vmul.f32 %v4160_v11, %v1323_v49  ;;  %v1326_v32 = vld [vmem:[#allocation2 + $0x1a0] sm:$0xff] }
  0xd2   : > { %v1633_v46 = vmul.f32 %v4310_v25, %v1594_v34  ;;  %v887_v5 = vadd.f32 %v855_v60, %v754_v38  ;;  %v1159_v56 = vmul.f32 %v4167_v45, %v1425_v37  ;;  %v2177_v39 = vmul.f32 %v4065_v22, %v4543_v2  ;;  %v1428_v43 = vld [vmem:[#allocation2 + $0x1a1] sm:$0xff] }
  0xd3   : > { %v1494_v36 = vadd.f32 %v1462_v14, %v1393_v59  ;;  %v1291_v31 = vadd.f32 %v1259_v6, %v1190_v51  ;;  %v1260_v28 = vmul.f32 %v4174_v57, %v1526_v15  ;;  %v755_v18 = vmul.f32 %v4082_v62, %v4627_v24 }
  0xd4   : > { %v1672_v27 = vadd.f32 %v4330_v30, %v1633_v46  ;;  %v1324_v8 = vld [vmem:[#allocation2 + $0x188] sm:$0xff]  ;;  %v988_v44 = vadd.f32 %v956_v4, %v887_v5  ;;  %v2216_v20 = vadd.f32 %v4097_v23, %v2177_v39  ;;  %v856_v2 = vmul.f32 %v4039_v17, %v4629_v55 }
  0xd5   : > { %v1426_v41 = vld [vmem:[#allocation2 + $0x189] sm:$0xff]  ;;  %v1595_v7 = vadd.f32 %v1563_v35, %v1494_v36  ;;  %v1362_v21 = vmul.f32 %v4195_v53, %v1324_v8  ;;  %v957_v33 = vmul.f32 %v4046_v3, %v4631_v12  ;;  %v1363_v16 = vmul.f32 %v4195_v53, %v1325_v47 }
  0xd6   : > { %v1463_v63 = vmul.f32 %v4202_v1, %v1426_v41  ;;  %3116 = vmatmul.mubr.msk.f32.gmra.mrb[26].mxu0 %vm488_vm0, %v1672_v27  ;;  %v1527_v48 = vld [vmem:[#allocation2 + $0x18a] sm:$0xff]  ;;  %v1090_v40 = vadd.f32 %v1058_v42, %v988_v44  ;;  %3169 = vmatmul.mubr.msk.f32.gmra.mrb[28].mxu1 %vm488_vm0, %v2216_v20  ;;  %v888_v49 = vadd.f32 %v856_v2, %v755_v18 }
  0xd7   : > { %v1634_v58 = vmul.f32 %v4310_v25, %v1595_v7  ;;  %v1394_v52 = vadd.f32 %v1362_v21, %v1291_v31  ;;  %v1564_v13 = vmul.f32 %v4209_v0, %v1527_v48  ;;  %v1059_v62 = vmul.f32 %v4160_v11, %v1324_v8 }
  0xd8   : > { %v1191_v10 = vadd.f32 %v1159_v56, %v1090_v40  ;;  %v1464_v55 = vmul.f32 %v4202_v1, %v1427_v50  ;;  %v989_v26 = vadd.f32 %v957_v33, %v888_v49  ;;  %v1160_v38 = vmul.f32 %v4167_v45, %v1426_v41  ;;  %v2625_v49 = vpop.permute.xlu1 %2624 }
  0xd9   : > { %v1673_v24 = vadd.f32 %v4330_v30, %v1634_v58  ;;  %v1495_v17 = vadd.f32 %v1463_v63, %v1394_v52  ;;  %v2178_v3 = vmul.f32 %v4065_v22, %v4572_v9  ;;  %v1565_v54 = vmul.f32 %v4209_v0, %v1528_v19  ;;  %v2615_v63 = vpop.permute.xlu0 %2614 }
  0xda   : > { %v1292_v37 = vadd.f32 %v1260_v28, %v1191_v10  ;;  %v2179_v11 = vmul.f32 %v4065_v22, %v4608_v61  ;;  %v1091_v6 = vadd.f32 %v1059_v62, %v989_v26  ;;  %v1261_v34 = vmul.f32 %v4174_v57, %v1527_v48  ;;  %v1529_v22 = vld [vmem:[#allocation2 + $0x1a2] sm:$0xff] }
  0xdb   : > { %3118 = vmatprep.mubr.msk.f32.mxu0 %vm488_vm0, %v1673_v24  ;;  %v1596_v12 = vadd.f32 %v1564_v13, %v1495_v17  ;;  %v2217_v15 = vadd.f32 %v4097_v23, %v2178_v3  ;;  %v1364_v59 = vmul.f32 %v4195_v53, %v1326_v32  ;;  %v1465_v4 = vmul.f32 %v4202_v1, %v1428_v43 }
  0xdc   : > { %v1395_v14 = vadd.f32 %v1363_v16, %v1292_v37  ;;  %v2218_v9 = vadd.f32 %v4097_v23, %v2179_v11  ;;  %v1192_v60 = vadd.f32 %v1160_v38, %v1091_v6  ;;  %v1566_v51 = vmul.f32 %v4209_v0, %v1529_v22  ;;  %v4720_v0 = vld [vmem:[%s4908_s7] ss:$0 sm:$0xff] }
  0xdd   : > { %v1635_v45 = vmul.f32 %v4310_v25, %v1596_v12  ;;  %3171 = vmatprep.mubr.msk.f32.mxu1 %vm488_vm0, %v2217_v15  ;;  %v2620_v58 = vpop.permute.xlu0 %2619 }
  0xde   : > { %v1496_v29 = vadd.f32 %v1464_v55, %v1395_v14  ;;  %3172 = vmatmul.mubr.msk.f32.gmra.mrb[30].mxu1 %vm488_vm0, %v2218_v9  ;;  %v1293_v57 = vadd.f32 %v1261_v34, %v1192_v60 }
  0xdf   : > { %v1674_v35 = vadd.f32 %v4330_v30, %v1635_v45 }
  0xe0   : > { %v1597_v61 = vadd.f32 %v1565_v54, %v1496_v29  ;;  %v1396_v23 = vadd.f32 %v1364_v59, %v1293_v57  ;;  %v2630_v54 = vpop.permute.xlu1 %2629 }
  0xe1   : > { %3119 = vmatmul.mubr.msk.f32.gmra.mrb[28].mxu0 %vm488_vm0, %v1674_v35 }
  0xe2   : > { %v1636_v46 = vmul.f32 %v4310_v25, %v1597_v61  ;;  %v1497_v5 = vadd.f32 %v1465_v4, %v1396_v23  ;;  %v2635_v4 = vpop.permute.xlu0 %2634 }
  0xe4   : > { %v1675_v53 = vadd.f32 %v4330_v30, %v1636_v46  ;;  %v1598_v42 = vadd.f32 %v1566_v51, %v1497_v5  ;;  %v2640_v57 = vpop.permute.xlu1 %2639 }
  0xe6   : > { %3121 = vmatprep.mubr.msk.f32.mxu0 %vm488_vm0, %v1675_v53  ;;  %v1637_v36 = vmul.f32 %v4310_v25, %v1598_v42  ;;  %v4725_v25 = vld [vmem:[%s4909_s8] ss:$0 sm:$0xff] }
  0xe8   : > { %v1676_v56 = vadd.f32 %v4330_v30, %v1637_v36  ;;  %v4730_v30 = vld [vmem:[%s4913_s12] ss:$0 sm:$0xff] }
  0xea   : > { %3122 = vmatmul.mubr.msk.f32.gmra.mrb[30].mxu0 %vm488_vm0, %v1676_v56 }
  0xef   : > { %v3128_v1 = vpop.f32.mrb[0].mxu1 }
  0xf0   : > { %v2389_v27 = vpop.f32.mrb[1].mxu1  ;;  %v2395_v48 = vadd.f32 %v3128_v1, %v4730_v30 }
  0xf1   : > { %v2390_v50 = vadd.f32 %v4730_v30, %v2389_v27 }
  0xfd   : > { %v3131_v31 = vpop.f32.mrb[2].mxu1 }
  0xfe   : > { %v2399_v8 = vpop.f32.mrb[3].mxu1  ;;  %v2405_v17 = vadd.f32 %v3131_v31, %v4730_v30 }
  0xff   : > { %v2400_v37 = vadd.f32 %v4730_v30, %v2399_v8 }
 0x101   : > { %v3134_v41 = vpop.f32.mrb[4].mxu1 }
 0x102   : > { %v2409_v44 = vpop.f32.mrb[5].mxu1  ;;  %v2415_v29 = vadd.f32 %v3134_v41, %v4730_v30 }
 0x103   : > { %v2410_v59 = vadd.f32 %v4730_v30, %v2409_v44 }
 0x119   : > { %v3078_v39 = vpop.f32.mrb[0].mxu0 }
 0x11a   : > { %v2007_v7 = vmul.f32 %v3078_v39, %v4720_v0  ;;  %v1840_v21 = vpop.f32.mrb[1].mxu0 }
 0x11b   : > { %v2006_v28 = vmul.f32 %v4720_v0, %v1840_v21  ;;  %v2650_v21 = vpop.permute.xlu1 %2649 }
 0x11c   : > { %v2046_v47 = vadd.f32 %v4725_v25, %v2007_v7 }
 0x11d   : > { %v2045_v40 = vadd.f32 %v4725_v25, %v2006_v28  ;;  %v2645_v28 = vpop.permute.xlu0 %2644 }
 0x11e   : > { %v2078_v20 = vmax.f32 %v2046_v47, 0.0 }
 0x11f   : > { %v2077_v18 = vmax.f32 %v2045_v40, 0.0 }
 0x120   : > { %v2549_v2 = vadd.f32 %v2395_v48, %v2078_v20 }
 0x121   : > { %v2548_v52 = vadd.f32 %v2390_v50, %v2077_v18  ;;  %v3081_v33 = vpop.f32.mrb[2].mxu0 }
 0x122   : > { %v2773_v13 = vmul.f32 %v2620_v58, %v2549_v2  ;;  %v2009_v10 = vmul.f32 %v3081_v33, %v4720_v0  ;;  %v1850_v19 = vpop.f32.mrb[3].mxu0 }
 0x123   : > { %v2772_v16 = vmul.f32 %v2615_v63, %v2548_v52  ;;  %v2008_v62 = vmul.f32 %v4720_v0, %v1850_v19 }
 0x124   : > { %2806 = vst.msk [vmem:[%s4742_s17 + $0x8] sm:$0xff] %vm2804_vm2, %v2773_v13  ;;  %v2048_v24 = vadd.f32 %v4725_v25, %v2009_v10 }
 0x125   : > { %2805 = vst.msk [vmem:[%s4742_s17] sm:$0xff] %vm2804_vm2, %v2772_v16  ;;  %v2047_v55 = vadd.f32 %v4725_v25, %v2008_v62  ;;  %v2660_v62 = vpop.permute.xlu1 %2659 }
 0x126   : > { %v2080_v26 = vmax.f32 %v2048_v24, 0.0 }
 0x127   : > { %v2079_v38 = vmax.f32 %v2047_v55, 0.0 }
 0x128   : > { %v2551_v3 = vadd.f32 %v2405_v17, %v2080_v26  ;;  %v2655_v17 = vpop.permute.xlu0 %2654 }
 0x129   : > { %v3137_v12 = vpop.f32.mrb[6].mxu1  ;;  %v2550_v32 = vadd.f32 %v2400_v37, %v2079_v38 }
 0x12a   : > { %v2419_v11 = vpop.f32.mrb[7].mxu1  ;;  %v2775_v14 = vmul.f32 %v2630_v54, %v2551_v3  ;;  %v2425_v31 = vadd.f32 %v3137_v12, %v4730_v30 }
 0x12b   : > { %v3084_v6 = vpop.f32.mrb[4].mxu0  ;;  %v2774_v34 = vmul.f32 %v2625_v49, %v2550_v32  ;;  %v2420_v41 = vadd.f32 %v4730_v30, %v2419_v11 }
 0x12c   : > { %2808 = vst.msk [vmem:[%s4742_s17 + $0x18] sm:$0xff] %vm2804_vm2, %v2775_v14  ;;  %v2011_v15 = vmul.f32 %v3084_v6, %v4720_v0  ;;  %v1860_v45 = vpop.f32.mrb[5].mxu0 }
 0x12d   : > { %2807 = vst.msk [vmem:[%s4742_s17 + $0x10] sm:$0xff] %vm2804_vm2, %v2774_v34  ;;  %v2010_v43 = vmul.f32 %v4720_v0, %v1860_v45 }
 0x12e   : > { %v2050_v9 = vadd.f32 %v4725_v25, %v2011_v15 }
 0x12f   : > { %v2049_v60 = vadd.f32 %v4725_v25, %v2010_v43 }
 0x130   : > { %v2082_v35 = vmax.f32 %v2050_v9, 0.0  ;;  %v2670_v9 = vpop.permute.xlu1 %2669 }
 0x131   : > { %v2081_v22 = vmax.f32 %v2049_v60, 0.0  ;;  %v2665_v60 = vpop.permute.xlu0 %2664 }
 0x132   : > { %v2553_v61 = vadd.f32 %v2415_v29, %v2082_v35 }
 0x133   : > { %v2552_v46 = vadd.f32 %v2410_v59, %v2081_v22 }
 0x134   : > { %v2777_v23 = vmul.f32 %v2640_v57, %v2553_v61  ;;  %v3087_v51 = vpop.f32.mrb[6].mxu0 }
 0x135   : > { %v3140_v53 = vpop.f32.mrb[8].mxu1  ;;  %v2013_v5 = vmul.f32 %v3087_v51, %v4720_v0  ;;  %v2776_v42 = vmul.f32 %v2635_v4, %v2552_v46  ;;  %v1870_v36 = vpop.f32.mrb[7].mxu0 }
 0x136   : > { %v2429_v56 = vpop.f32.mrb[9].mxu1  ;;  %2810 = vst.msk [vmem:[%s4742_s17 + $0x28] sm:$0xff] %vm2804_vm2, %v2777_v23  ;;  %v2012_v1 = vmul.f32 %v4720_v0, %v1870_v36  ;;  %v2435_v58 = vadd.f32 %v3140_v53, %v4730_v30 }
 0x137   : > { %v2052_v27 = vadd.f32 %v4725_v25, %v2013_v5  ;;  %2809 = vst.msk [vmem:[%s4742_s17 + $0x20] sm:$0xff] %vm2804_vm2, %v2776_v42  ;;  %v2430_v13 = vadd.f32 %v4730_v30, %v2429_v56 }
 0x138   : > { %v2051_v8 = vadd.f32 %v4725_v25, %v2012_v1 }
 0x139   : > { %v2084_v44 = vmax.f32 %v2052_v27, 0.0  ;;  %v2680_v27 = vpop.permute.xlu1 %2679 }
 0x13a   : > { %v2083_v39 = vmax.f32 %v2051_v8, 0.0  ;;  %v2675_v8 = vpop.permute.xlu0 %2674 }
 0x13b   : > { %v2555_v7 = vadd.f32 %v2425_v31, %v2084_v44 }
 0x13c   : > { %v2554_v63 = vadd.f32 %v2420_v41, %v2083_v39 }
 0x13d   : > { %v2779_v47 = vmul.f32 %v2650_v21, %v2555_v7 }
 0x13e   : > { %v3090_v48 = vpop.f32.mrb[8].mxu0  ;;  %v2778_v50 = vmul.f32 %v2645_v28, %v2554_v63 }
 0x13f   : > { %v2015_v40 = vmul.f32 %v3090_v48, %v4720_v0  ;;  %v1880_v20 = vpop.f32.mrb[9].mxu0  ;;  %2812 = vst.msk [vmem:[%s4742_s17 + $0x38] sm:$0xff] %vm2804_vm2, %v2779_v47 }
 0x140   : > { %v2014_v18 = vmul.f32 %v4720_v0, %v1880_v20  ;;  %2811 = vst.msk [vmem:[%s4742_s17 + $0x30] sm:$0xff] %vm2804_vm2, %v2778_v50 }
 0x141   : > { %v2054_v2 = vadd.f32 %v4725_v25, %v2015_v40  ;;  %v3143_v33 = vpop.f32.mrb[10].mxu1 }
 0x142   : > { %v2053_v52 = vadd.f32 %v4725_v25, %v2014_v18  ;;  %v2439_v16 = vpop.f32.mrb[11].mxu1  ;;  %v2445_v14 = vadd.f32 %v3143_v33, %v4730_v30  ;;  %v2685_v33 = vpop.permute.xlu0 %2684 }
 0x143   : > { %v2086_v10 = vmax.f32 %v2054_v2, 0.0  ;;  %v2440_v34 = vadd.f32 %v4730_v30, %v2439_v16 }
 0x144   : > { %v2085_v19 = vmax.f32 %v2053_v52, 0.0  ;;  %v2690_v52 = vpop.permute.xlu1 %2689 }
 0x145   : > { %v2557_v49 = vadd.f32 %v2435_v58, %v2086_v10 }
 0x146   : > { %v2556_v24 = vadd.f32 %v2430_v13, %v2085_v19 }
 0x147   : > { %v2781_v55 = vmul.f32 %v2660_v62, %v2557_v49 }
 0x148   : > { %v2780_v37 = vmul.f32 %v2655_v17, %v2556_v24 }
 0x149   : > { %2814 = vst.msk [vmem:[%s4742_s17 + $0x48] sm:$0xff] %vm2804_vm2, %v2781_v55 }
 0x14a   : > { %2813 = vst.msk [vmem:[%s4742_s17 + $0x40] sm:$0xff] %vm2804_vm2, %v2780_v37 }
 0x14c   : > { %v3146_v38 = vpop.f32.mrb[12].mxu1 }
 0x14d   : > { %v3093_v26 = vpop.f32.mrb[10].mxu0  ;;  %v2449_v54 = vpop.f32.mrb[13].mxu1  ;;  %v2455_v23 = vadd.f32 %v3146_v38, %v4730_v30 }
 0x14e   : > { %v2017_v3 = vmul.f32 %v3093_v26, %v4720_v0  ;;  %v1890_v12 = vpop.f32.mrb[11].mxu0  ;;  %v2450_v5 = vadd.f32 %v4730_v30, %v2449_v54 }
 0x14f   : > { %v2016_v32 = vmul.f32 %v4720_v0, %v1890_v12 }
 0x150   : > { %v2056_v11 = vadd.f32 %v4725_v25, %v2017_v3 }
 0x151   : > { %v2055_v6 = vadd.f32 %v4725_v25, %v2016_v32 }
 0x152   : > { %v2088_v15 = vmax.f32 %v2056_v11, 0.0  ;;  %v2700_v11 = vpop.permute.xlu1 %2699 }
 0x153   : > { %v2087_v45 = vmax.f32 %v2055_v6, 0.0  ;;  %v2695_v6 = vpop.permute.xlu0 %2694 }
 0x154   : > { %v2559_v43 = vadd.f32 %v2445_v14, %v2088_v15 }
 0x155   : > { %v2558_v29 = vadd.f32 %v2440_v34, %v2087_v45 }
 0x156   : > { %v2783_v59 = vmul.f32 %v2670_v9, %v2559_v43  ;;  %v3096_v35 = vpop.f32.mrb[12].mxu0 }
 0x157   : > { %v2019_v22 = vmul.f32 %v3096_v35, %v4720_v0  ;;  %v2782_v61 = vmul.f32 %v2665_v60, %v2558_v29  ;;  %v1900_v57 = vpop.f32.mrb[13].mxu0 }
 0x158   : > { %2816 = vst.msk [vmem:[%s4742_s17 + $0x58] sm:$0xff] %vm2804_vm2, %v2783_v59  ;;  %v2018_v4 = vmul.f32 %v4720_v0, %v1900_v57 }
 0x159   : > { %v2058_v46 = vadd.f32 %v4725_v25, %v2019_v22  ;;  %2815 = vst.msk [vmem:[%s4742_s17 + $0x50] sm:$0xff] %vm2804_vm2, %v2782_v61  ;;  %v3149_v51 = vpop.f32.mrb[14].mxu1 }
 0x15a   : > { %v2057_v53 = vadd.f32 %v4725_v25, %v2018_v4  ;;  %v2459_v42 = vpop.f32.mrb[15].mxu1  ;;  %v2465_v40 = vadd.f32 %v3149_v51, %v4730_v30  ;;  %v2710_v51 = vpop.permute.xlu1 %2709 }
 0x15b   : > { %v2090_v36 = vmax.f32 %v2058_v46, 0.0  ;;  %v2460_v20 = vadd.f32 %v4730_v30, %v2459_v42 }
 0x15c   : > { %v2089_v56 = vmax.f32 %v2057_v53, 0.0 }
 0x15d   : > { %v2561_v1 = vadd.f32 %v2455_v23, %v2090_v36 }
 0x15e   : > { %v2560_v31 = vadd.f32 %v2450_v5, %v2089_v56  ;;  %v2705_v5 = vpop.permute.xlu0 %2704 }
 0x15f   : > { %v2785_v41 = vmul.f32 %v2680_v27, %v2561_v1 }
 0x160   : > { %v2784_v44 = vmul.f32 %v2675_v8, %v2560_v31 }
 0x161   : > { %2818 = vst.msk [vmem:[%s4742_s17 + $0x68] sm:$0xff] %vm2804_vm2, %v2785_v41 }
 0x162   : > { %2817 = vst.msk [vmem:[%s4742_s17 + $0x60] sm:$0xff] %vm2804_vm2, %v2784_v44 }
 0x163   : > { %v3099_v39 = vpop.f32.mrb[14].mxu0 }
 0x164   : > { %v2021_v7 = vmul.f32 %v3099_v39, %v4720_v0  ;;  %v1910_v21 = vpop.f32.mrb[15].mxu0  ;;  %v3152_v63 = vpop.f32.mrb[16].mxu1 }
 0x165   : > { %v2020_v28 = vmul.f32 %v4720_v0, %v1910_v21  ;;  %v2469_v47 = vpop.f32.mrb[17].mxu1  ;;  %v2475_v26 = vadd.f32 %v3152_v63, %v4730_v30 }
 0x166   : > { %v2060_v48 = vadd.f32 %v4725_v25, %v2021_v7  ;;  %v2470_v3 = vadd.f32 %v4730_v30, %v2469_v47 }
 0x167   : > { %v2059_v50 = vadd.f32 %v4725_v25, %v2020_v28 }
 0x168   : > { %v2092_v18 = vmax.f32 %v2060_v48, 0.0  ;;  %v2720_v48 = vpop.permute.xlu1 %2719 }
 0x169   : > { %v2091_v2 = vmax.f32 %v2059_v50, 0.0  ;;  %v2715_v50 = vpop.permute.xlu0 %2714 }
 0x16a   : > { %v2563_v58 = vadd.f32 %v2465_v40, %v2092_v18 }
 0x16b   : > { %v2562_v13 = vadd.f32 %v2460_v20, %v2091_v2 }
 0x16c   : > { %v2787_v10 = vmul.f32 %v2690_v52, %v2563_v58 }
 0x16d   : > { %v2786_v16 = vmul.f32 %v2685_v33, %v2562_v13 }
 0x16e   : > { %2820 = vst.msk [vmem:[%s4742_s17 + $0x78] sm:$0xff] %vm2804_vm2, %v2787_v10 }
 0x16f   : > { %v3102_v19 = vpop.f32.mrb[16].mxu0  ;;  %2819 = vst.msk [vmem:[%s4742_s17 + $0x70] sm:$0xff] %vm2804_vm2, %v2786_v16 }
 0x170   : > { %v2023_v49 = vmul.f32 %v3102_v19, %v4720_v0  ;;  %v1920_v62 = vpop.f32.mrb[17].mxu0  ;;  %v3155_v24 = vpop.f32.mrb[18].mxu1 }
 0x171   : > { %v2022_v17 = vmul.f32 %v4720_v0, %v1920_v62  ;;  %v2479_v55 = vpop.f32.mrb[19].mxu1  ;;  %v2485_v35 = vadd.f32 %v3155_v24, %v4730_v30 }
 0x172   : > { %v2062_v37 = vadd.f32 %v4725_v25, %v2023_v49  ;;  %v2480_v57 = vadd.f32 %v4730_v30, %v2479_v55 }
 0x173   : > { %v2061_v38 = vadd.f32 %v4725_v25, %v2022_v17 }
 0x174   : > { %v2094_v12 = vmax.f32 %v2062_v37, 0.0  ;;  %v2730_v37 = vpop.permute.xlu1 %2729 }
 0x175   : > { %v2093_v54 = vmax.f32 %v2061_v38, 0.0  ;;  %v2725_v38 = vpop.permute.xlu0 %2724 }
 0x176   : > { %v2565_v32 = vadd.f32 %v2475_v26, %v2094_v12 }
 0x177   : > { %v2564_v14 = vadd.f32 %v2470_v3, %v2093_v54 }
 0x178   : > { %v2789_v34 = vmul.f32 %v2700_v11, %v2565_v32 }
 0x179   : > { %v2788_v15 = vmul.f32 %v2695_v6, %v2564_v14 }
 0x17a   : > { %2822 = vst.msk [vmem:[%s4742_s17 + $0x88] sm:$0xff] %vm2804_vm2, %v2789_v34  ;;  %v3105_v45 = vpop.f32.mrb[18].mxu0 }
 0x17b   : > { %v2025_v43 = vmul.f32 %v3105_v45, %v4720_v0  ;;  %2821 = vst.msk [vmem:[%s4742_s17 + $0x80] sm:$0xff] %vm2804_vm2, %v2788_v15  ;;  %v1930_v9 = vpop.f32.mrb[19].mxu0 }
 0x17c   : > { %v2024_v29 = vmul.f32 %v4720_v0, %v1930_v9  ;;  %v3158_v60 = vpop.f32.mrb[20].mxu1 }
 0x17d   : > { %v2064_v59 = vadd.f32 %v4725_v25, %v2025_v43  ;;  %v2489_v22 = vpop.f32.mrb[21].mxu1  ;;  %v2495_v44 = vadd.f32 %v3158_v60, %v4730_v30 }
 0x17e   : > { %v2063_v61 = vadd.f32 %v4725_v25, %v2024_v29  ;;  %v2490_v21 = vadd.f32 %v4730_v30, %v2489_v22 }
 0x17f   : > { %v2096_v4 = vmax.f32 %v2064_v59, 0.0 }
 0x180   : > { %v2095_v46 = vmax.f32 %v2063_v61, 0.0  ;;  %v2735_v61 = vpop.permute.xlu0 %2734 }
 0x181   : > { %v2567_v23 = vadd.f32 %v2485_v35, %v2096_v4  ;;  %v2740_v35 = vpop.permute.xlu1 %2739 }
 0x182   : > { %v2566_v53 = vadd.f32 %v2480_v57, %v2095_v46 }
 0x183   : > { %v2791_v42 = vmul.f32 %v2710_v51, %v2567_v23 }
 0x184   : > { %v2790_v36 = vmul.f32 %v2705_v5, %v2566_v53 }
 0x185   : > { %2824 = vst.msk [vmem:[%s4742_s17 + $0x98] sm:$0xff] %vm2804_vm2, %v2791_v42  ;;  %v3108_v56 = vpop.f32.mrb[20].mxu0 }
 0x186   : > { %v2027_v1 = vmul.f32 %v3108_v56, %v4720_v0  ;;  %2823 = vst.msk [vmem:[%s4742_s17 + $0x90] sm:$0xff] %vm2804_vm2, %v2790_v36  ;;  %v1940_v27 = vpop.f32.mrb[21].mxu0 }
 0x187   : > { %v2026_v31 = vmul.f32 %v4720_v0, %v1940_v27 }
 0x188   : > { %v3161_v8 = vpop.f32.mrb[22].mxu1  ;;  %v2066_v41 = vadd.f32 %v4725_v25, %v2027_v1 }
 0x189   : > { %v2499_v39 = vpop.f32.mrb[23].mxu1  ;;  %v2065_v7 = vadd.f32 %v4725_v25, %v2026_v31  ;;  %v2505_v16 = vadd.f32 %v3161_v8, %v4730_v30 }
 0x18a   : > { %v2098_v63 = vmax.f32 %v2066_v41, 0.0  ;;  %v2500_v62 = vadd.f32 %v4730_v30, %v2499_v39 }
 0x18b   : > { %v2097_v28 = vmax.f32 %v2065_v7, 0.0  ;;  %v2745_v7 = vpop.permute.xlu0 %2744 }
 0x18c   : > { %v2569_v47 = vadd.f32 %v2495_v44, %v2098_v63  ;;  %v2750_v44 = vpop.permute.xlu1 %2749 }
 0x18d   : > { %v2568_v40 = vadd.f32 %v2490_v21, %v2097_v28 }
 0x18e   : > { %v2793_v20 = vmul.f32 %v2720_v48, %v2569_v47 }
 0x18f   : > { %v2792_v18 = vmul.f32 %v2715_v50, %v2568_v40 }
 0x190   : > { %2826 = vst.msk [vmem:[%s4742_s17 + $0xa8] sm:$0xff] %vm2804_vm2, %v2793_v20 }
 0x191   : > { %v3111_v2 = vpop.f32.mrb[22].mxu0  ;;  %2825 = vst.msk [vmem:[%s4742_s17 + $0xa0] sm:$0xff] %vm2804_vm2, %v2792_v18 }
 0x192   : > { %v2029_v58 = vmul.f32 %v3111_v2, %v4720_v0  ;;  %v1950_v52 = vpop.f32.mrb[23].mxu0 }
 0x193   : > { %v2028_v13 = vmul.f32 %v4720_v0, %v1950_v52  ;;  %v3164_v33 = vpop.f32.mrb[24].mxu1 }
 0x194   : > { %v2068_v10 = vadd.f32 %v4725_v25, %v2029_v58  ;;  %v2509_v19 = vpop.f32.mrb[25].mxu1  ;;  %v2515_v15 = vadd.f32 %v3164_v33, %v4730_v30 }
 0x195   : > { %v2067_v49 = vadd.f32 %v4725_v25, %v2028_v13  ;;  %v2510_v9 = vadd.f32 %v4730_v30, %v2509_v19 }
 0x196   : > { %v2100_v24 = vmax.f32 %v2068_v10, 0.0 }
 0x197   : > { %v2099_v17 = vmax.f32 %v2067_v49, 0.0  ;;  %v2755_v49 = vpop.permute.xlu0 %2754 }
 0x198   : > { %v2571_v55 = vadd.f32 %v2505_v16, %v2100_v24  ;;  %v2760_v16 = vpop.permute.xlu1 %2759 }
 0x199   : > { %v2570_v26 = vadd.f32 %v2500_v62, %v2099_v17 }
 0x19a   : > { %v2795_v3 = vmul.f32 %v2730_v37, %v2571_v55 }
 0x19b   : > { %v2794_v12 = vmul.f32 %v2725_v38, %v2570_v26 }
 0x19c   : > { %2828 = vst.msk [vmem:[%s4742_s17 + $0xb8] sm:$0xff] %vm2804_vm2, %v2795_v3 }
 0x19d   : > { %2827 = vst.msk [vmem:[%s4742_s17 + $0xb0] sm:$0xff] %vm2804_vm2, %v2794_v12 }
 0x19e   : > { %v3114_v54 = vpop.f32.mrb[24].mxu0 }
 0x19f   : > { %v2031_v32 = vmul.f32 %v3114_v54, %v4720_v0  ;;  %v1960_v11 = vpop.f32.mrb[25].mxu0  ;;  %v3167_v6 = vpop.f32.mrb[26].mxu1 }
 0x1a0   : > { %v2030_v14 = vmul.f32 %v4720_v0, %v1960_v11  ;;  %v2519_v45 = vpop.f32.mrb[27].mxu1  ;;  %v2525_v36 = vadd.f32 %v3167_v6, %v4730_v30  ;;  %v2770_v6 = vpop.permute.xlu1 %2769 }
 0x1a1   : > { %v2070_v34 = vadd.f32 %v4725_v25, %v2031_v32  ;;  %v2520_v27 = vadd.f32 %v4730_v30, %v2519_v45 }
 0x1a2   : > { %v2069_v43 = vadd.f32 %v4725_v25, %v2030_v14 }
 0x1a3   : > { %v2102_v29 = vmax.f32 %v2070_v34, 0.0 }
 0x1a4   : > { %v2101_v60 = vmax.f32 %v2069_v43, 0.0 }
 0x1a5   : > { %v2573_v59 = vadd.f32 %v2515_v15, %v2102_v29  ;;  %v2765_v15 = vpop.permute.xlu0 %2764 }
 0x1a6   : > { %v2572_v22 = vadd.f32 %v2510_v9, %v2101_v60 }
 0x1a7   : > { %v2797_v57 = vmul.f32 %v2740_v35, %v2573_v59 }
 0x1a8   : > { %v2796_v4 = vmul.f32 %v2735_v61, %v2572_v22 }
 0x1a9   : > { %2830 = vst.msk [vmem:[%s4742_s17 + $0xc8] sm:$0xff] %vm2804_vm2, %v2797_v57  ;;  %v3117_v46 = vpop.f32.mrb[26].mxu0  ;;  %v3170_v5 = vpop.f32.mrb[28].mxu1 }
 0x1aa   : > { %v2033_v23 = vmul.f32 %v3117_v46, %v4720_v0  ;;  %2829 = vst.msk [vmem:[%s4742_s17 + $0xc0] sm:$0xff] %vm2804_vm2, %v2796_v4  ;;  %v1970_v51 = vpop.f32.mrb[27].mxu0  ;;  %v2529_v56 = vpop.f32.mrb[29].mxu1  ;;  %v2535_v2 = vadd.f32 %v3170_v5, %v4730_v30 }
 0x1ab   : > { %v2032_v53 = vmul.f32 %v4720_v0, %v1970_v51  ;;  %v2530_v52 = vadd.f32 %v4730_v30, %v2529_v56 }
 0x1ac   : > { %v2072_v42 = vadd.f32 %v4725_v25, %v2033_v23 }
 0x1ad   : > { %v2071_v1 = vadd.f32 %v4725_v25, %v2032_v53 }
 0x1ae   : > { %v2104_v31 = vmax.f32 %v2072_v42, 0.0 }
 0x1af   : > { %v2103_v8 = vmax.f32 %v2071_v1, 0.0 }
 0x1b0   : > { %v2575_v41 = vadd.f32 %v2525_v36, %v2104_v31 }
 0x1b1   : > { %v2574_v39 = vadd.f32 %v2520_v27, %v2103_v8  ;;  %v3173_v63 = vpop.f32.mrb[30].mxu1 }
 0x1b2   : > { %v2799_v21 = vmul.f32 %v2750_v44, %v2575_v41  ;;  %v2539_v47 = vpop.f32.mrb[31].mxu1  ;;  %v2545_v3 = vadd.f32 %v3173_v63, %v4730_v30 }
 0x1b3   : > { %v2798_v28 = vmul.f32 %v2745_v7, %v2574_v39  ;;  %v2540_v54 = vadd.f32 %v4730_v30, %v2539_v47 }
 0x1b4   : > { %2832 = vst.msk [vmem:[%s4742_s17 + $0xd8] sm:$0xff] %vm2804_vm2, %v2799_v21  ;;  %v3120_v48 = vpop.f32.mrb[28].mxu0 }
 0x1b5   : > { %v2035_v40 = vmul.f32 %v3120_v48, %v4720_v0  ;;  %2831 = vst.msk [vmem:[%s4742_s17 + $0xd0] sm:$0xff] %vm2804_vm2, %v2798_v28  ;;  %v1980_v50 = vpop.f32.mrb[29].mxu0 }
 0x1b6   : > { %v2034_v20 = vmul.f32 %v4720_v0, %v1980_v50 }
 0x1b7   : > { %v2074_v18 = vadd.f32 %v4725_v25, %v2035_v40 }
 0x1b8   : > { %v2073_v58 = vadd.f32 %v4725_v25, %v2034_v20 }
 0x1b9   : > { %v2106_v13 = vmax.f32 %v2074_v18, 0.0 }
 0x1ba   : > { %v2105_v33 = vmax.f32 %v2073_v58, 0.0 }
 0x1bb   : > { %v2577_v10 = vadd.f32 %v2535_v2, %v2106_v13 }
 0x1bc   : > { %v2576_v19 = vadd.f32 %v2530_v52, %v2105_v33 }
 0x1bd   : > { %v2801_v62 = vmul.f32 %v2760_v16, %v2577_v10  ;;  %v3123_v17 = vpop.f32.mrb[30].mxu0 }
 0x1be   : > { %v2800_v24 = vmul.f32 %v2755_v49, %v2576_v19  ;;  %v2037_v55 = vmul.f32 %v3123_v17, %v4720_v0  ;;  %v1990_v37 = vpop.f32.mrb[31].mxu0 }
 0x1bf   : > { %2834 = vst.msk [vmem:[%s4742_s17 + $0xe8] sm:$0xff] %vm2804_vm2, %v2801_v62  ;;  %v2036_v26 = vmul.f32 %v4720_v0, %v1990_v37 }
 0x1c0   : > { %2833 = vst.msk [vmem:[%s4742_s17 + $0xe0] sm:$0xff] %vm2804_vm2, %v2800_v24  ;;  %v2076_v38 = vadd.f32 %v4725_v25, %v2037_v55 }
 0x1c1   : > { %v2075_v12 = vadd.f32 %v4725_v25, %v2036_v26 }
 0x1c2   : > { %v2108_v32 = vmax.f32 %v2076_v38, 0.0 }
 0x1c3   : > { %v2107_v11 = vmax.f32 %v2075_v12, 0.0 }
 0x1c4   : > { %v2579_v14 = vadd.f32 %v2545_v3, %v2108_v32 }
 0x1c5   : > { %v2578_v34 = vadd.f32 %v2540_v54, %v2107_v11 }
 0x1c6   : > { %v2803_v45 = vmul.f32 %v2770_v6, %v2579_v14 }
 0x1c7   : > { %v2802_v43 = vmul.f32 %v2765_v15, %v2578_v34 }
 0x1c8   : > { %2836 = vst.msk [vmem:[%s4742_s17 + $0xf8] sm:$0xff] %vm2804_vm2, %v2803_v45 }
 0x1c9   : > { %2835 = vst.msk [vmem:[%s4742_s17 + $0xf0] sm:$0xff] %vm2804_vm2, %v2802_v43 }
 0x1ca PF: > { %s24_s29 = sadd.s32 1, %s3207_s29  }
 0x1cb   : > { %p21_p4 = scmp.ge.s32.totalorder %s24_s29, 4  }
 0x1cd   :  { %23 = sbr.rel (!%p21_p4) target bundleno = 1 (0x1), region = 113 }

</bundles_post_ra>
